<compile_context>
chip_gen: v5e
topology: v5e:2x2
jax: 0.10.0
libtpu: 0.0.40
codegen_flags: <defaults>
</compile_context>

<pallas_src>
import jax
import jax.numpy as jnp
from jax.experimental import pallas as pl
from jax.experimental.pallas import tpu as pltpu

EPS = 1e-5
# 3x3 tap offsets; tap index t = i*3 + j  <->  (di, dj) = (i-1, j-1)
OFFSETS = tuple((di, dj) for di in (-1, 0, 1) for dj in (-1, 0, 1))


def _tap_matrices(w_oihw):
    """(Cout, Cin, 3, 3) -> (9, Cout, Cin) with tap index t = i*3 + j."""
    co, ci, kh, kw = w_oihw.shape
    return jnp.transpose(w_oihw, (2, 3, 0, 1)).reshape(kh * kw, co, ci)


# ----------------------------------------------------------------------------
# Wrapper: parameter packing + one pallas_call
# ----------------------------------------------------------------------------
def basic_block_forward(x_nchw, params):
    """x_nchw: (N, Cin, H, W) f32  ->  (N, 4*mid, H, W) f32 (NCHW)."""
    N, Cin, H, W = x_nchw.shape
    mid = params["conv_1x1"]["w"].shape[0]
    C4 = 4 * mid
    NHW = N * H * W
    f32 = jnp.float32

    # Channels-first, flattened spatial on the lane axis.
    x_cf = jnp.transpose(x_nchw, (1, 0, 2, 3)).reshape(Cin, NHW).astype(f32)

    # Boundary masks (9, NHW): 1 where the (di,dj)-shifted neighbour of a
    # pixel lies inside the same image (handles zero padding and row/image
    # wrap of the flattened lane shifts). Computed once in the wrapper.
    idx = jnp.arange(NHW, dtype=jnp.int32)
    hh = (idx // W) % H
    ww = idx % W
    masks = jnp.stack([
        (((hh + di) >= 0) & ((hh + di) < H) &
         ((ww + dj) >= 0) & ((ww + dj) < W)).astype(f32)
        for di, dj in OFFSETS])                                    # (9, NHW)

    # Fused entry weights [1x1 (centre tap only) | 3x3 | 5x5_1 | 7x7_1] on Cout.
    w1 = params["conv_1x1"]["w"]                                   # (mid,Cin,1,1)
    w1_as3 = jnp.zeros((mid, Cin, 3, 3), f32).at[:, :, 1, 1].set(w1[:, :, 0, 0])
    entry_names = ("conv_1x1", "conv_3x3", "conv_5x5_1", "conv_7x7_1")
    w_entry = _tap_matrices(jnp.concatenate(
        [w1_as3, params["conv_3x3"]["w"], params["conv_5x5_1"]["w"],
         params["conv_7x7_1"]["w"]], axis=0))                      # (9, C4, Cin)
    g_entry = jnp.concatenate([params[k]["gamma"] for k in entry_names]).reshape(C4, 1)
    b_entry = jnp.concatenate([params[k]["beta"] for k in entry_names]).reshape(C4, 1)

    chain = ("conv_5x5_2", "conv_7x7_2", "conv_7x7_3")
    w_mid = jnp.concatenate([_tap_matrices(params[k]["w"]) for k in chain],
                            axis=0)                                # (27, mid, mid)
    g_mid = jnp.stack([params[k]["gamma"].reshape(mid, 1) for k in chain])
    b_mid = jnp.stack([params[k]["beta"].reshape(mid, 1) for k in chain])

    g_out = params["bn"]["gamma"].reshape(C4, 1)
    b_out = params["bn"]["beta"].reshape(C4, 1)
    # NOTE: conv biases intentionally not passed (exactly cancelled by
    # training-mode BN mean subtraction).

    shifts = tuple(di * W + dj for di, dj in OFFSETS)

    def kernel(x_ref, mask_ref, we_ref, ge_ref, be_ref,
               wm_ref, gm_ref, bm_ref, go_ref, bo_ref, o_ref):
        mask = mask_ref[...]                                       # (9, NHW)

        def shift(v, t):
            # out[:, p] = v[:, p + s] if that neighbour is valid, else 0.
            # Static lane shift (lane rotations, no halo scratch, no
            # sublane-crossing loads) + precomputed boundary mask.
            s = shifts[t]
            if s == 0:
                return v
            c = v.shape[0]
            if s > 0:
                sh = jnp.concatenate([v[:, s:], jnp.zeros((c, s), v.dtype)],
                                     axis=1)
            else:
                sh = jnp.concatenate([jnp.zeros((c, -s), v.dtype), v[:, :s]],
                                     axis=1)
            return sh * mask[t:t + 1, :]

        def bn_relu(y, g, b):
            # Training-mode BatchNorm over the flattened N*H*W (lane) axis,
            # two-pass (centered) statistics, then ReLU.
            mean = jnp.mean(y, axis=1, keepdims=True)
            d = y - mean
            var = jnp.mean(d * d, axis=1, keepdims=True)
            return jnp.maximum(d * jax.lax.rsqrt(var + EPS) * g + b, 0.0)

        # ---- fused entry convs: one accumulator, 9 dots -------------------
        x = x_ref[...]                                             # (Cin, NHW)
        acc = jnp.zeros((C4, NHW), jnp.float32)
        for t in range(9):
            acc = acc + jnp.dot(we_ref[t], shift(x, t),
                                preferred_element_type=jnp.float32)
        entry = bn_relu(acc, ge_ref[...], be_ref[...])             # (C4, NHW)
        # rows: [0:mid]=1x1, [mid:2mid]=3x3, [2mid:3mid]=5x5_1, [3mid:4mid]=7x7_1

        # ---- chained 3x3 convs; intermediates stay on-chip -----------------
        def chain_conv(v, c):
            a = jnp.zeros((mid, NHW), jnp.float32)
            for t in range(9):
                a = a + jnp.dot(wm_ref[c * 9 + t], shift(v, t),
                                preferred_element_type=jnp.float32)
            return bn_relu(a, gm_ref[c], bm_ref[c])

        c5 = chain_conv(entry[2 * mid:3 * mid, :], 0)              # conv_5x5_2
        c7 = chain_conv(entry[3 * mid:4 * mid, :], 1)              # conv_7x7_2
        c7 = chain_conv(c7, 2)                                     # conv_7x7_3

        # ---- final per-channel BN + ReLU, stored at static channel offsets -
        go = go_ref[...]
        bo = bo_ref[...]
        o_ref[0:2 * mid, :] = bn_relu(entry[0:2 * mid, :],
                                      go[0:2 * mid], bo[0:2 * mid])
        o_ref[2 * mid:3 * mid, :] = bn_relu(c5, go[2 * mid:3 * mid],
                                            bo[2 * mid:3 * mid])
        o_ref[3 * mid:4 * mid, :] = bn_relu(c7, go[3 * mid:4 * mid],
                                            bo[3 * mid:4 * mid])

    vmem = pl.BlockSpec(memory_space=pltpu.MemorySpace.VMEM)
    out_cf = pl.pallas_call(
        kernel,
        out_shape=jax.ShapeDtypeStruct((C4, NHW), f32),            # lane-dense
        in_specs=[vmem] * 10,
        out_specs=vmem,
    )(x_cf, masks, w_entry, g_entry, b_entry,
      w_mid, g_mid, b_mid, g_out, b_out)

    # (C4, N*H*W) -> (N, C4, H, W)
    return jnp.transpose(out_cf.reshape(C4, N, H, W), (1, 0, 2, 3))


# ----------------------------------------------------------------------------
# Parameters (PyTorch-style OIHW conv weights + bias; BN affine gamma/beta)
# ----------------------------------------------------------------------------
def make_conv_params(key, cin, cout, k):
    k_w, k_b, k_g, k_bt = jax.random.split(key, 4)
    return dict(
        w=0.1 * jax.random.normal(k_w, (cout, cin, k, k), jnp.float32),
        b=0.1 * jax.random.normal(k_b, (cout,), jnp.float32),
        gamma=1.0 + 0.1 * jax.random.normal(k_g, (cout,), jnp.float32),
        beta=0.1 * jax.random.normal(k_bt, (cout,), jnp.float32),
    )


def make_basic_block_params(key, in_channels, out_channels):
    mid = out_channels // 4
    keys = jax.random.split(key, 9)
    return {
        "conv_1x1":   make_conv_params(keys[0], in_channels, mid, 1),
        "conv_3x3":   make_conv_params(keys[1], in_channels, mid, 3),
        "conv_5x5_1": make_conv_params(keys[2], in_channels, mid, 3),
        "conv_5x5_2": make_conv_params(keys[3], mid, mid, 3),
        "conv_7x7_1": make_conv_params(keys[4], in_channels, mid, 3),
        "conv_7x7_2": make_conv_params(keys[5], mid, mid, 3),
        "conv_7x7_3": make_conv_params(keys[6], mid, mid, 3),
        "bn": dict(
            gamma=1.0 + 0.1 * jax.random.normal(keys[7], (out_channels,),
                                                jnp.float32),
            beta=0.1 * jax.random.normal(keys[8], (out_channels,),
                                         jnp.float32),
        ),
    }


# ----------------------------------------------------------------------------
# Pure-JAX reference (faithful to the PyTorch module: conv bias included,
# training-mode BatchNorm with batch statistics)
# ----------------------------------------------------------------------------
def _ref_conv_bn_relu(x, p, pad):
    y = jax.lax.conv_general_dilated(
        x, p["w"], window_strides=(1, 1),
        padding=[(pad, pad), (pad, pad)],
        dimension_numbers=("NCHW", "OIHW", "NCHW"))
    y = y + p["b"][None, :, None, None]
    mean = y.mean(axis=(0, 2, 3), keepdims=True)
    var = ((y - mean) ** 2).mean(axis=(0, 2, 3), keepdims=True)
    y = (y - mean) / jnp.sqrt(var + EPS) * p["gamma"][None, :, None, None] \
        + p["beta"][None, :, None, None]
    return jnp.maximum(y, 0.0)


def _ref_forward(x, params):
    c1 = _ref_conv_bn_relu(x, params["conv_1x1"], 0)
    c3 = _ref_conv_bn_relu(x, params["conv_3x3"], 1)
    c5 = _ref_conv_bn_relu(x, params["conv_5x5_1"], 1)
    c5 = _ref_conv_bn_relu(c5, params["conv_5x5_2"], 1)
    c7 = _ref_conv_bn_relu(x, params["conv_7x7_1"], 1)
    c7 = _ref_conv_bn_relu(c7, params["conv_7x7_2"], 1)
    c7 = _ref_conv_bn_relu(c7, params["conv_7x7_3"], 1)
    out = jnp.concatenate([c1, c3, c5, c7], axis=1)
    mean = out.mean(axis=(0, 2, 3), keepdims=True)
    var = ((out - mean) ** 2).mean(axis=(0, 2, 3), keepdims=True)
    out = (out - mean) / jnp.sqrt(var + EPS) \
        * params["bn"]["gamma"][None, :, None, None] \
        + params["bn"]["beta"][None, :, None, None]
    return jnp.maximum(out, 0.0)


# ----------------------------------------------------------------------------
if __name__ == "__main__":
    key = jax.random.PRNGKey(0)
    k_x, k_p = jax.random.split(key)

    N, C_IN, H, W = 2, 4, 16, 16
    C_OUT = 8                    # mid_channels = 2

    x = jax.random.normal(k_x, (N, C_IN, H, W), jnp.float32)   # NCHW like PyTorch
    params = make_basic_block_params(k_p, C_IN, C_OUT)

    out = jax.jit(basic_block_forward)(x, params)
    out = jax.block_until_ready(out)

    ref = _ref_forward(x, params)
    assert out.shape == (N, C_OUT, H, W), out.shape
    max_err = float(jnp.max(jnp.abs(out - ref)))
    assert max_err < 1e-3, f"max abs err {max_err}"

    print("KERNEL_OK")
</pallas_src>

<mosaic_0001>
module attributes {stable_mosaic.version = 11 : i64} {
  func.func @kernel(%arg0: memref<4x512xf32, #tpu.memory_space<vmem>>, %arg1: memref<9x512xf32, #tpu.memory_space<vmem>>, %arg2: memref<9x8x4xf32, #tpu.memory_space<vmem>>, %arg3: memref<8x1xf32, #tpu.memory_space<vmem>>, %arg4: memref<8x1xf32, #tpu.memory_space<vmem>>, %arg5: memref<27x2x2xf32, #tpu.memory_space<vmem>>, %arg6: memref<3x2x1xf32, #tpu.memory_space<vmem>>, %arg7: memref<3x2x1xf32, #tpu.memory_space<vmem>>, %arg8: memref<8x1xf32, #tpu.memory_space<vmem>>, %arg9: memref<8x1xf32, #tpu.memory_space<vmem>>, %arg10: memref<8x512xf32, #tpu.memory_space<vmem>>) attributes {dimension_semantics = [], scalar_prefetch = 0 : i64, scratch_operands = 0 : i64, tpu.core_type = #tpu.core_type<tc>} {
    %c0 = arith.constant 0 : index
    %c0_0 = arith.constant 0 : index
    %0 = vector.load %arg1[%c0, %c0_0] : memref<9x512xf32, #tpu.memory_space<vmem>>, vector<9x512xf32>
    %c0_1 = arith.constant 0 : index
    %c0_2 = arith.constant 0 : index
    %1 = vector.load %arg0[%c0_1, %c0_2] : memref<4x512xf32, #tpu.memory_space<vmem>>, vector<4x512xf32>
    %cst = arith.constant 0.000000e+00 : f32
    %2 = vector.broadcast %cst : f32 to vector<8x512xf32>
    %c0_3 = arith.constant 0 : index
    %c0_4 = arith.constant 0 : index
    %c0_5 = arith.constant 0 : index
    %3 = vector.load %arg2[%c0_3, %c0_4, %c0_5] : memref<9x8x4xf32, #tpu.memory_space<vmem>>, vector<1x8x4xf32>
    %4 = vector.shape_cast %3 : vector<1x8x4xf32> to vector<8x4xf32>
    %cst_6 = arith.constant 0.000000e+00 : f32
    %5 = vector.broadcast %cst_6 : f32 to vector<4x17xf32>
    %6 = vector.extract_strided_slice %1 {offsets = [0, 0], sizes = [4, 495], strides = [1, 1]} : vector<4x512xf32> to vector<4x495xf32>
    %7 = tpu.concatenate %5, %6 in 1 : vector<4x17xf32>, vector<4x495xf32> -> vector<4x512xf32>
    %8 = vector.extract_strided_slice %0 {offsets = [0, 0], sizes = [1, 512], strides = [1, 1]} : vector<9x512xf32> to vector<1x512xf32>
    %9 = vector.broadcast %8 : vector<1x512xf32> to vector<4x512xf32>
    %10 = arith.mulf %7, %9 : vector<4x512xf32>
    %cst_7 = arith.constant dense<0.000000e+00> : vector<8x512xf32>
    %11 = tpu.matmul %4, %10, %cst_7 {dimension_numbers = #tpu.dot_dimension_numbers<[1], [0], [0], [1], [0, 0, 1, 1], [], []>} : vector<8x4xf32>, vector<4x512xf32>, vector<8x512xf32> -> vector<8x512xf32>
    %12 = arith.addf %2, %11 : vector<8x512xf32>
    %c1 = arith.constant 1 : index
    %c0_8 = arith.constant 0 : index
    %c0_9 = arith.constant 0 : index
    %13 = vector.load %arg2[%c1, %c0_8, %c0_9] : memref<9x8x4xf32, #tpu.memory_space<vmem>>, vector<1x8x4xf32>
    %14 = vector.shape_cast %13 : vector<1x8x4xf32> to vector<8x4xf32>
    %cst_10 = arith.constant 0.000000e+00 : f32
    %15 = vector.broadcast %cst_10 : f32 to vector<4x16xf32>
    %16 = vector.extract_strided_slice %1 {offsets = [0, 0], sizes = [4, 496], strides = [1, 1]} : vector<4x512xf32> to vector<4x496xf32>
    %17 = tpu.concatenate %15, %16 in 1 : vector<4x16xf32>, vector<4x496xf32> -> vector<4x512xf32>
    %18 = vector.extract_strided_slice %0 {offsets = [1, 0], sizes = [1, 512], strides = [1, 1]} : vector<9x512xf32> to vector<1x512xf32>
    %19 = vector.broadcast %18 : vector<1x512xf32> to vector<4x512xf32>
    %20 = arith.mulf %17, %19 : vector<4x512xf32>
    %cst_11 = arith.constant dense<0.000000e+00> : vector<8x512xf32>
    %21 = tpu.matmul %14, %20, %cst_11 {dimension_numbers = #tpu.dot_dimension_numbers<[1], [0], [0], [1], [0, 0, 1, 1], [], []>} : vector<8x4xf32>, vector<4x512xf32>, vector<8x512xf32> -> vector<8x512xf32>
    %22 = arith.addf %12, %21 : vector<8x512xf32>
    %c2 = arith.constant 2 : index
    %c0_12 = arith.constant 0 : index
    %c0_13 = arith.constant 0 : index
    %23 = vector.load %arg2[%c2, %c0_12, %c0_13] : memref<9x8x4xf32, #tpu.memory_space<vmem>>, vector<1x8x4xf32>
    %24 = vector.shape_cast %23 : vector<1x8x4xf32> to vector<8x4xf32>
    %cst_14 = arith.constant 0.000000e+00 : f32
    %25 = vector.broadcast %cst_14 : f32 to vector<4x15xf32>
    %26 = vector.extract_strided_slice %1 {offsets = [0, 0], sizes = [4, 497], strides = [1, 1]} : vector<4x512xf32> to vector<4x497xf32>
    %27 = tpu.concatenate %25, %26 in 1 : vector<4x15xf32>, vector<4x497xf32> -> vector<4x512xf32>
    %28 = vector.extract_strided_slice %0 {offsets = [2, 0], sizes = [1, 512], strides = [1, 1]} : vector<9x512xf32> to vector<1x512xf32>
    %29 = vector.broadcast %28 : vector<1x512xf32> to vector<4x512xf32>
    %30 = arith.mulf %27, %29 : vector<4x512xf32>
    %cst_15 = arith.constant dense<0.000000e+00> : vector<8x512xf32>
    %31 = tpu.matmul %24, %30, %cst_15 {dimension_numbers = #tpu.dot_dimension_numbers<[1], [0], [0], [1], [0, 0, 1, 1], [], []>} : vector<8x4xf32>, vector<4x512xf32>, vector<8x512xf32> -> vector<8x512xf32>
    %32 = arith.addf %22, %31 : vector<8x512xf32>
    %c3 = arith.constant 3 : index
    %c0_16 = arith.constant 0 : index
    %c0_17 = arith.constant 0 : index
    %33 = vector.load %arg2[%c3, %c0_16, %c0_17] : memref<9x8x4xf32, #tpu.memory_space<vmem>>, vector<1x8x4xf32>
    %34 = vector.shape_cast %33 : vector<1x8x4xf32> to vector<8x4xf32>
    %cst_18 = arith.constant 0.000000e+00 : f32
    %35 = vector.broadcast %cst_18 : f32 to vector<4x1xf32>
    %36 = vector.extract_strided_slice %1 {offsets = [0, 0], sizes = [4, 511], strides = [1, 1]} : vector<4x512xf32> to vector<4x511xf32>
    %37 = tpu.concatenate %35, %36 in 1 : vector<4x1xf32>, vector<4x511xf32> -> vector<4x512xf32>
    %38 = vector.extract_strided_slice %0 {offsets = [3, 0], sizes = [1, 512], strides = [1, 1]} : vector<9x512xf32> to vector<1x512xf32>
    %39 = vector.broadcast %38 : vector<1x512xf32> to vector<4x512xf32>
    %40 = arith.mulf %37, %39 : vector<4x512xf32>
    %cst_19 = arith.constant dense<0.000000e+00> : vector<8x512xf32>
    %41 = tpu.matmul %34, %40, %cst_19 {dimension_numbers = #tpu.dot_dimension_numbers<[1], [0], [0], [1], [0, 0, 1, 1], [], []>} : vector<8x4xf32>, vector<4x512xf32>, vector<8x512xf32> -> vector<8x512xf32>
    %42 = arith.addf %32, %41 : vector<8x512xf32>
    %c4 = arith.constant 4 : index
    %c0_20 = arith.constant 0 : index
    %c0_21 = arith.constant 0 : index
    %43 = vector.load %arg2[%c4, %c0_20, %c0_21] : memref<9x8x4xf32, #tpu.memory_space<vmem>>, vector<1x8x4xf32>
    %44 = vector.shape_cast %43 : vector<1x8x4xf32> to vector<8x4xf32>
    %cst_22 = arith.constant dense<0.000000e+00> : vector<8x512xf32>
    %45 = tpu.matmul %44, %1, %cst_22 {dimension_numbers = #tpu.dot_dimension_numbers<[1], [0], [0], [1], [0, 0, 1, 1], [], []>} : vector<8x4xf32>, vector<4x512xf32>, vector<8x512xf32> -> vector<8x512xf32>
    %46 = arith.addf %42, %45 : vector<8x512xf32>
    %c5 = arith.constant 5 : index
    %c0_23 = arith.constant 0 : index
    %c0_24 = arith.constant 0 : index
    %47 = vector.load %arg2[%c5, %c0_23, %c0_24] : memref<9x8x4xf32, #tpu.memory_space<vmem>>, vector<1x8x4xf32>
    %48 = vector.shape_cast %47 : vector<1x8x4xf32> to vector<8x4xf32>
    %49 = vector.extract_strided_slice %1 {offsets = [0, 1], sizes = [4, 511], strides = [1, 1]} : vector<4x512xf32> to vector<4x511xf32>
    %cst_25 = arith.constant 0.000000e+00 : f32
    %50 = vector.broadcast %cst_25 : f32 to vector<4x1xf32>
    %51 = tpu.concatenate %49, %50 in 1 : vector<4x511xf32>, vector<4x1xf32> -> vector<4x512xf32>
    %52 = vector.extract_strided_slice %0 {offsets = [5, 0], sizes = [1, 512], strides = [1, 1]} : vector<9x512xf32> to vector<1x512xf32>
    %53 = vector.broadcast %52 : vector<1x512xf32> to vector<4x512xf32>
    %54 = arith.mulf %51, %53 : vector<4x512xf32>
    %cst_26 = arith.constant dense<0.000000e+00> : vector<8x512xf32>
    %55 = tpu.matmul %48, %54, %cst_26 {dimension_numbers = #tpu.dot_dimension_numbers<[1], [0], [0], [1], [0, 0, 1, 1], [], []>} : vector<8x4xf32>, vector<4x512xf32>, vector<8x512xf32> -> vector<8x512xf32>
    %56 = arith.addf %46, %55 : vector<8x512xf32>
    %c6 = arith.constant 6 : index
    %c0_27 = arith.constant 0 : index
    %c0_28 = arith.constant 0 : index
    %57 = vector.load %arg2[%c6, %c0_27, %c0_28] : memref<9x8x4xf32, #tpu.memory_space<vmem>>, vector<1x8x4xf32>
    %58 = vector.shape_cast %57 : vector<1x8x4xf32> to vector<8x4xf32>
    %59 = vector.extract_strided_slice %1 {offsets = [0, 15], sizes = [4, 497], strides = [1, 1]} : vector<4x512xf32> to vector<4x497xf32>
    %cst_29 = arith.constant 0.000000e+00 : f32
    %60 = vector.broadcast %cst_29 : f32 to vector<4x15xf32>
    %61 = tpu.concatenate %59, %60 in 1 : vector<4x497xf32>, vector<4x15xf32> -> vector<4x512xf32>
    %62 = vector.extract_strided_slice %0 {offsets = [6, 0], sizes = [1, 512], strides = [1, 1]} : vector<9x512xf32> to vector<1x512xf32>
    %63 = vector.broadcast %62 : vector<1x512xf32> to vector<4x512xf32>
    %64 = arith.mulf %61, %63 : vector<4x512xf32>
    %cst_30 = arith.constant dense<0.000000e+00> : vector<8x512xf32>
    %65 = tpu.matmul %58, %64, %cst_30 {dimension_numbers = #tpu.dot_dimension_numbers<[1], [0], [0], [1], [0, 0, 1, 1], [], []>} : vector<8x4xf32>, vector<4x512xf32>, vector<8x512xf32> -> vector<8x512xf32>
    %66 = arith.addf %56, %65 : vector<8x512xf32>
    %c7 = arith.constant 7 : index
    %c0_31 = arith.constant 0 : index
    %c0_32 = arith.constant 0 : index
    %67 = vector.load %arg2[%c7, %c0_31, %c0_32] : memref<9x8x4xf32, #tpu.memory_space<vmem>>, vector<1x8x4xf32>
    %68 = vector.shape_cast %67 : vector<1x8x4xf32> to vector<8x4xf32>
    %69 = vector.extract_strided_slice %1 {offsets = [0, 16], sizes = [4, 496], strides = [1, 1]} : vector<4x512xf32> to vector<4x496xf32>
    %cst_33 = arith.constant 0.000000e+00 : f32
    %70 = vector.broadcast %cst_33 : f32 to vector<4x16xf32>
    %71 = tpu.concatenate %69, %70 in 1 : vector<4x496xf32>, vector<4x16xf32> -> vector<4x512xf32>
    %72 = vector.extract_strided_slice %0 {offsets = [7, 0], sizes = [1, 512], strides = [1, 1]} : vector<9x512xf32> to vector<1x512xf32>
    %73 = vector.broadcast %72 : vector<1x512xf32> to vector<4x512xf32>
    %74 = arith.mulf %71, %73 : vector<4x512xf32>
    %cst_34 = arith.constant dense<0.000000e+00> : vector<8x512xf32>
    %75 = tpu.matmul %68, %74, %cst_34 {dimension_numbers = #tpu.dot_dimension_numbers<[1], [0], [0], [1], [0, 0, 1, 1], [], []>} : vector<8x4xf32>, vector<4x512xf32>, vector<8x512xf32> -> vector<8x512xf32>
    %76 = arith.addf %66, %75 : vector<8x512xf32>
    %c8 = arith.constant 8 : index
    %c0_35 = arith.constant 0 : index
    %c0_36 = arith.constant 0 : index
    %77 = vector.load %arg2[%c8, %c0_35, %c0_36] : memref<9x8x4xf32, #tpu.memory_space<vmem>>, vector<1x8x4xf32>
    %78 = vector.shape_cast %77 : vector<1x8x4xf32> to vector<8x4xf32>
    %79 = vector.extract_strided_slice %1 {offsets = [0, 17], sizes = [4, 495], strides = [1, 1]} : vector<4x512xf32> to vector<4x495xf32>
    %cst_37 = arith.constant 0.000000e+00 : f32
    %80 = vector.broadcast %cst_37 : f32 to vector<4x17xf32>
    %81 = tpu.concatenate %79, %80 in 1 : vector<4x495xf32>, vector<4x17xf32> -> vector<4x512xf32>
    %82 = vector.extract_strided_slice %0 {offsets = [8, 0], sizes = [1, 512], strides = [1, 1]} : vector<9x512xf32> to vector<1x512xf32>
    %83 = vector.broadcast %82 : vector<1x512xf32> to vector<4x512xf32>
    %84 = arith.mulf %81, %83 : vector<4x512xf32>
    %cst_38 = arith.constant dense<0.000000e+00> : vector<8x512xf32>
    %85 = tpu.matmul %78, %84, %cst_38 {dimension_numbers = #tpu.dot_dimension_numbers<[1], [0], [0], [1], [0, 0, 1, 1], [], []>} : vector<8x4xf32>, vector<4x512xf32>, vector<8x512xf32> -> vector<8x512xf32>
    %86 = arith.addf %76, %85 : vector<8x512xf32>
    %c0_39 = arith.constant 0 : index
    %c0_40 = arith.constant 0 : index
    %87 = vector.load %arg3[%c0_39, %c0_40] : memref<8x1xf32, #tpu.memory_space<vmem>>, vector<8x1xf32>
    %c0_41 = arith.constant 0 : index
    %c0_42 = arith.constant 0 : index
    %88 = vector.load %arg4[%c0_41, %c0_42] : memref<8x1xf32, #tpu.memory_space<vmem>>, vector<8x1xf32>
    %cst_43 = arith.constant dense<0.000000e+00> : vector<8xf32>
    %89 = vector.multi_reduction <add>, %86, %cst_43 [1] : vector<8x512xf32> to vector<8xf32>
    %90 = vector.shape_cast %89 : vector<8xf32> to vector<8x1xf32>
    %cst_44 = arith.constant 5.120000e+02 : f32
    %91 = vector.broadcast %cst_44 : f32 to vector<8x1xf32>
    %92 = arith.divf %90, %91 : vector<8x1xf32>
    %93 = vector.broadcast %92 : vector<8x1xf32> to vector<8x512xf32>
    %94 = arith.subf %86, %93 : vector<8x512xf32>
    %95 = arith.mulf %94, %94 : vector<8x512xf32>
    %cst_45 = arith.constant dense<0.000000e+00> : vector<8xf32>
    %96 = vector.multi_reduction <add>, %95, %cst_45 [1] : vector<8x512xf32> to vector<8xf32>
    %97 = vector.shape_cast %96 : vector<8xf32> to vector<8x1xf32>
    %cst_46 = arith.constant 5.120000e+02 : f32
    %98 = vector.broadcast %cst_46 : f32 to vector<8x1xf32>
    %99 = arith.divf %97, %98 : vector<8x1xf32>
    %cst_47 = arith.constant 9.99999974E-6 : f32
    %100 = vector.broadcast %cst_47 : f32 to vector<8x1xf32>
    %101 = arith.addf %99, %100 : vector<8x1xf32>
    %102 = math.rsqrt %101 : vector<8x1xf32>
    %103 = vector.broadcast %102 : vector<8x1xf32> to vector<8x512xf32>
    %104 = arith.mulf %94, %103 : vector<8x512xf32>
    %105 = vector.broadcast %87 : vector<8x1xf32> to vector<8x512xf32>
    %106 = arith.mulf %104, %105 : vector<8x512xf32>
    %107 = vector.broadcast %88 : vector<8x1xf32> to vector<8x512xf32>
    %108 = arith.addf %106, %107 : vector<8x512xf32>
    %cst_48 = arith.constant 0.000000e+00 : f32
    %109 = vector.broadcast %cst_48 : f32 to vector<8x512xf32>
    %110 = arith.maximumf %108, %109 : vector<8x512xf32>
    %111 = vector.extract_strided_slice %110 {offsets = [4, 0], sizes = [2, 512], strides = [1, 1]} : vector<8x512xf32> to vector<2x512xf32>
    %cst_49 = arith.constant 0.000000e+00 : f32
    %112 = vector.broadcast %cst_49 : f32 to vector<2x512xf32>
    %c0_50 = arith.constant 0 : index
    %c0_51 = arith.constant 0 : index
    %c0_52 = arith.constant 0 : index
    %113 = vector.load %arg5[%c0_50, %c0_51, %c0_52] : memref<27x2x2xf32, #tpu.memory_space<vmem>>, vector<1x2x2xf32>
    %114 = vector.shape_cast %113 : vector<1x2x2xf32> to vector<2x2xf32>
    %cst_53 = arith.constant 0.000000e+00 : f32
    %115 = vector.broadcast %cst_53 : f32 to vector<2x17xf32>
    %116 = vector.extract_strided_slice %111 {offsets = [0, 0], sizes = [2, 495], strides = [1, 1]} : vector<2x512xf32> to vector<2x495xf32>
    %117 = tpu.concatenate %115, %116 in 1 : vector<2x17xf32>, vector<2x495xf32> -> vector<2x512xf32>
    %118 = vector.extract_strided_slice %0 {offsets = [0, 0], sizes = [1, 512], strides = [1, 1]} : vector<9x512xf32> to vector<1x512xf32>
    %119 = vector.broadcast %118 : vector<1x512xf32> to vector<2x512xf32>
    %120 = arith.mulf %117, %119 : vector<2x512xf32>
    %cst_54 = arith.constant dense<0.000000e+00> : vector<2x512xf32>
    %121 = tpu.matmul %114, %120, %cst_54 {dimension_numbers = #tpu.dot_dimension_numbers<[1], [0], [0], [1], [0, 0, 1, 1], [], []>} : vector<2x2xf32>, vector<2x512xf32>, vector<2x512xf32> -> vector<2x512xf32>
    %122 = arith.addf %112, %121 : vector<2x512xf32>
    %c1_55 = arith.constant 1 : index
    %c0_56 = arith.constant 0 : index
    %c0_57 = arith.constant 0 : index
    %123 = vector.load %arg5[%c1_55, %c0_56, %c0_57] : memref<27x2x2xf32, #tpu.memory_space<vmem>>, vector<1x2x2xf32>
    %124 = vector.shape_cast %123 : vector<1x2x2xf32> to vector<2x2xf32>
    %cst_58 = arith.constant 0.000000e+00 : f32
    %125 = vector.broadcast %cst_58 : f32 to vector<2x16xf32>
    %126 = vector.extract_strided_slice %111 {offsets = [0, 0], sizes = [2, 496], strides = [1, 1]} : vector<2x512xf32> to vector<2x496xf32>
    %127 = tpu.concatenate %125, %126 in 1 : vector<2x16xf32>, vector<2x496xf32> -> vector<2x512xf32>
    %128 = vector.extract_strided_slice %0 {offsets = [1, 0], sizes = [1, 512], strides = [1, 1]} : vector<9x512xf32> to vector<1x512xf32>
    %129 = vector.broadcast %128 : vector<1x512xf32> to vector<2x512xf32>
    %130 = arith.mulf %127, %129 : vector<2x512xf32>
    %cst_59 = arith.constant dense<0.000000e+00> : vector<2x512xf32>
    %131 = tpu.matmul %124, %130, %cst_59 {dimension_numbers = #tpu.dot_dimension_numbers<[1], [0], [0], [1], [0, 0, 1, 1], [], []>} : vector<2x2xf32>, vector<2x512xf32>, vector<2x512xf32> -> vector<2x512xf32>
    %132 = arith.addf %122, %131 : vector<2x512xf32>
    %c2_60 = arith.constant 2 : index
    %c0_61 = arith.constant 0 : index
    %c0_62 = arith.constant 0 : index
    %133 = vector.load %arg5[%c2_60, %c0_61, %c0_62] : memref<27x2x2xf32, #tpu.memory_space<vmem>>, vector<1x2x2xf32>
    %134 = vector.shape_cast %133 : vector<1x2x2xf32> to vector<2x2xf32>
    %cst_63 = arith.constant 0.000000e+00 : f32
    %135 = vector.broadcast %cst_63 : f32 to vector<2x15xf32>
    %136 = vector.extract_strided_slice %111 {offsets = [0, 0], sizes = [2, 497], strides = [1, 1]} : vector<2x512xf32> to vector<2x497xf32>
    %137 = tpu.concatenate %135, %136 in 1 : vector<2x15xf32>, vector<2x497xf32> -> vector<2x512xf32>
    %138 = vector.extract_strided_slice %0 {offsets = [2, 0], sizes = [1, 512], strides = [1, 1]} : vector<9x512xf32> to vector<1x512xf32>
    %139 = vector.broadcast %138 : vector<1x512xf32> to vector<2x512xf32>
    %140 = arith.mulf %137, %139 : vector<2x512xf32>
    %cst_64 = arith.constant dense<0.000000e+00> : vector<2x512xf32>
    %141 = tpu.matmul %134, %140, %cst_64 {dimension_numbers = #tpu.dot_dimension_numbers<[1], [0], [0], [1], [0, 0, 1, 1], [], []>} : vector<2x2xf32>, vector<2x512xf32>, vector<2x512xf32> -> vector<2x512xf32>
    %142 = arith.addf %132, %141 : vector<2x512xf32>
    %c3_65 = arith.constant 3 : index
    %c0_66 = arith.constant 0 : index
    %c0_67 = arith.constant 0 : index
    %143 = vector.load %arg5[%c3_65, %c0_66, %c0_67] : memref<27x2x2xf32, #tpu.memory_space<vmem>>, vector<1x2x2xf32>
    %144 = vector.shape_cast %143 : vector<1x2x2xf32> to vector<2x2xf32>
    %cst_68 = arith.constant 0.000000e+00 : f32
    %145 = vector.broadcast %cst_68 : f32 to vector<2x1xf32>
    %146 = vector.extract_strided_slice %111 {offsets = [0, 0], sizes = [2, 511], strides = [1, 1]} : vector<2x512xf32> to vector<2x511xf32>
    %147 = tpu.concatenate %145, %146 in 1 : vector<2x1xf32>, vector<2x511xf32> -> vector<2x512xf32>
    %148 = vector.extract_strided_slice %0 {offsets = [3, 0], sizes = [1, 512], strides = [1, 1]} : vector<9x512xf32> to vector<1x512xf32>
    %149 = vector.broadcast %148 : vector<1x512xf32> to vector<2x512xf32>
    %150 = arith.mulf %147, %149 : vector<2x512xf32>
    %cst_69 = arith.constant dense<0.000000e+00> : vector<2x512xf32>
    %151 = tpu.matmul %144, %150, %cst_69 {dimension_numbers = #tpu.dot_dimension_numbers<[1], [0], [0], [1], [0, 0, 1, 1], [], []>} : vector<2x2xf32>, vector<2x512xf32>, vector<2x512xf32> -> vector<2x512xf32>
    %152 = arith.addf %142, %151 : vector<2x512xf32>
    %c4_70 = arith.constant 4 : index
    %c0_71 = arith.constant 0 : index
    %c0_72 = arith.constant 0 : index
    %153 = vector.load %arg5[%c4_70, %c0_71, %c0_72] : memref<27x2x2xf32, #tpu.memory_space<vmem>>, vector<1x2x2xf32>
    %154 = vector.shape_cast %153 : vector<1x2x2xf32> to vector<2x2xf32>
    %cst_73 = arith.constant dense<0.000000e+00> : vector<2x512xf32>
    %155 = tpu.matmul %154, %111, %cst_73 {dimension_numbers = #tpu.dot_dimension_numbers<[1], [0], [0], [1], [0, 0, 1, 1], [], []>} : vector<2x2xf32>, vector<2x512xf32>, vector<2x512xf32> -> vector<2x512xf32>
    %156 = arith.addf %152, %155 : vector<2x512xf32>
    %c5_74 = arith.constant 5 : index
    %c0_75 = arith.constant 0 : index
    %c0_76 = arith.constant 0 : index
    %157 = vector.load %arg5[%c5_74, %c0_75, %c0_76] : memref<27x2x2xf32, #tpu.memory_space<vmem>>, vector<1x2x2xf32>
    %158 = vector.shape_cast %157 : vector<1x2x2xf32> to vector<2x2xf32>
    %159 = vector.extract_strided_slice %111 {offsets = [0, 1], sizes = [2, 511], strides = [1, 1]} : vector<2x512xf32> to vector<2x511xf32>
    %cst_77 = arith.constant 0.000000e+00 : f32
    %160 = vector.broadcast %cst_77 : f32 to vector<2x1xf32>
    %161 = tpu.concatenate %159, %160 in 1 : vector<2x511xf32>, vector<2x1xf32> -> vector<2x512xf32>
    %162 = vector.extract_strided_slice %0 {offsets = [5, 0], sizes = [1, 512], strides = [1, 1]} : vector<9x512xf32> to vector<1x512xf32>
    %163 = vector.broadcast %162 : vector<1x512xf32> to vector<2x512xf32>
    %164 = arith.mulf %161, %163 : vector<2x512xf32>
    %cst_78 = arith.constant dense<0.000000e+00> : vector<2x512xf32>
    %165 = tpu.matmul %158, %164, %cst_78 {dimension_numbers = #tpu.dot_dimension_numbers<[1], [0], [0], [1], [0, 0, 1, 1], [], []>} : vector<2x2xf32>, vector<2x512xf32>, vector<2x512xf32> -> vector<2x512xf32>
    %166 = arith.addf %156, %165 : vector<2x512xf32>
    %c6_79 = arith.constant 6 : index
    %c0_80 = arith.constant 0 : index
    %c0_81 = arith.constant 0 : index
    %167 = vector.load %arg5[%c6_79, %c0_80, %c0_81] : memref<27x2x2xf32, #tpu.memory_space<vmem>>, vector<1x2x2xf32>
    %168 = vector.shape_cast %167 : vector<1x2x2xf32> to vector<2x2xf32>
    %169 = vector.extract_strided_slice %111 {offsets = [0, 15], sizes = [2, 497], strides = [1, 1]} : vector<2x512xf32> to vector<2x497xf32>
    %cst_82 = arith.constant 0.000000e+00 : f32
    %170 = vector.broadcast %cst_82 : f32 to vector<2x15xf32>
    %171 = tpu.concatenate %169, %170 in 1 : vector<2x497xf32>, vector<2x15xf32> -> vector<2x512xf32>
    %172 = vector.extract_strided_slice %0 {offsets = [6, 0], sizes = [1, 512], strides = [1, 1]} : vector<9x512xf32> to vector<1x512xf32>
    %173 = vector.broadcast %172 : vector<1x512xf32> to vector<2x512xf32>
    %174 = arith.mulf %171, %173 : vector<2x512xf32>
    %cst_83 = arith.constant dense<0.000000e+00> : vector<2x512xf32>
    %175 = tpu.matmul %168, %174, %cst_83 {dimension_numbers = #tpu.dot_dimension_numbers<[1], [0], [0], [1], [0, 0, 1, 1], [], []>} : vector<2x2xf32>, vector<2x512xf32>, vector<2x512xf32> -> vector<2x512xf32>
    %176 = arith.addf %166, %175 : vector<2x512xf32>
    %c7_84 = arith.constant 7 : index
    %c0_85 = arith.constant 0 : index
    %c0_86 = arith.constant 0 : index
    %177 = vector.load %arg5[%c7_84, %c0_85, %c0_86] : memref<27x2x2xf32, #tpu.memory_space<vmem>>, vector<1x2x2xf32>
    %178 = vector.shape_cast %177 : vector<1x2x2xf32> to vector<2x2xf32>
    %179 = vector.extract_strided_slice %111 {offsets = [0, 16], sizes = [2, 496], strides = [1, 1]} : vector<2x512xf32> to vector<2x496xf32>
    %cst_87 = arith.constant 0.000000e+00 : f32
    %180 = vector.broadcast %cst_87 : f32 to vector<2x16xf32>
    %181 = tpu.concatenate %179, %180 in 1 : vector<2x496xf32>, vector<2x16xf32> -> vector<2x512xf32>
    %182 = vector.extract_strided_slice %0 {offsets = [7, 0], sizes = [1, 512], strides = [1, 1]} : vector<9x512xf32> to vector<1x512xf32>
    %183 = vector.broadcast %182 : vector<1x512xf32> to vector<2x512xf32>
    %184 = arith.mulf %181, %183 : vector<2x512xf32>
    %cst_88 = arith.constant dense<0.000000e+00> : vector<2x512xf32>
    %185 = tpu.matmul %178, %184, %cst_88 {dimension_numbers = #tpu.dot_dimension_numbers<[1], [0], [0], [1], [0, 0, 1, 1], [], []>} : vector<2x2xf32>, vector<2x512xf32>, vector<2x512xf32> -> vector<2x512xf32>
    %186 = arith.addf %176, %185 : vector<2x512xf32>
    %c8_89 = arith.constant 8 : index
    %c0_90 = arith.constant 0 : index
    %c0_91 = arith.constant 0 : index
    %187 = vector.load %arg5[%c8_89, %c0_90, %c0_91] : memref<27x2x2xf32, #tpu.memory_space<vmem>>, vector<1x2x2xf32>
    %188 = vector.shape_cast %187 : vector<1x2x2xf32> to vector<2x2xf32>
    %189 = vector.extract_strided_slice %111 {offsets = [0, 17], sizes = [2, 495], strides = [1, 1]} : vector<2x512xf32> to vector<2x495xf32>
    %cst_92 = arith.constant 0.000000e+00 : f32
    %190 = vector.broadcast %cst_92 : f32 to vector<2x17xf32>
    %191 = tpu.concatenate %189, %190 in 1 : vector<2x495xf32>, vector<2x17xf32> -> vector<2x512xf32>
    %192 = vector.extract_strided_slice %0 {offsets = [8, 0], sizes = [1, 512], strides = [1, 1]} : vector<9x512xf32> to vector<1x512xf32>
    %193 = vector.broadcast %192 : vector<1x512xf32> to vector<2x512xf32>
    %194 = arith.mulf %191, %193 : vector<2x512xf32>
    %cst_93 = arith.constant dense<0.000000e+00> : vector<2x512xf32>
    %195 = tpu.matmul %188, %194, %cst_93 {dimension_numbers = #tpu.dot_dimension_numbers<[1], [0], [0], [1], [0, 0, 1, 1], [], []>} : vector<2x2xf32>, vector<2x512xf32>, vector<2x512xf32> -> vector<2x512xf32>
    %196 = arith.addf %186, %195 : vector<2x512xf32>
    %c0_94 = arith.constant 0 : index
    %c0_95 = arith.constant 0 : index
    %c0_96 = arith.constant 0 : index
    %197 = vector.load %arg6[%c0_94, %c0_95, %c0_96] : memref<3x2x1xf32, #tpu.memory_space<vmem>>, vector<1x2x1xf32>
    %198 = vector.shape_cast %197 : vector<1x2x1xf32> to vector<2x1xf32>
    %c0_97 = arith.constant 0 : index
    %c0_98 = arith.constant 0 : index
    %c0_99 = arith.constant 0 : index
    %199 = vector.load %arg7[%c0_97, %c0_98, %c0_99] : memref<3x2x1xf32, #tpu.memory_space<vmem>>, vector<1x2x1xf32>
    %200 = vector.shape_cast %199 : vector<1x2x1xf32> to vector<2x1xf32>
    %cst_100 = arith.constant dense<0.000000e+00> : vector<2xf32>
    %201 = vector.multi_reduction <add>, %196, %cst_100 [1] : vector<2x512xf32> to vector<2xf32>
    %202 = vector.shape_cast %201 : vector<2xf32> to vector<2x1xf32>
    %cst_101 = arith.constant 5.120000e+02 : f32
    %203 = vector.broadcast %cst_101 : f32 to vector<2x1xf32>
    %204 = arith.divf %202, %203 : vector<2x1xf32>
    %205 = vector.broadcast %204 : vector<2x1xf32> to vector<2x512xf32>
    %206 = arith.subf %196, %205 : vector<2x512xf32>
    %207 = arith.mulf %206, %206 : vector<2x512xf32>
    %cst_102 = arith.constant dense<0.000000e+00> : vector<2xf32>
    %208 = vector.multi_reduction <add>, %207, %cst_102 [1] : vector<2x512xf32> to vector<2xf32>
    %209 = vector.shape_cast %208 : vector<2xf32> to vector<2x1xf32>
    %cst_103 = arith.constant 5.120000e+02 : f32
    %210 = vector.broadcast %cst_103 : f32 to vector<2x1xf32>
    %211 = arith.divf %209, %210 : vector<2x1xf32>
    %cst_104 = arith.constant 9.99999974E-6 : f32
    %212 = vector.broadcast %cst_104 : f32 to vector<2x1xf32>
    %213 = arith.addf %211, %212 : vector<2x1xf32>
    %214 = math.rsqrt %213 : vector<2x1xf32>
    %215 = vector.broadcast %214 : vector<2x1xf32> to vector<2x512xf32>
    %216 = arith.mulf %206, %215 : vector<2x512xf32>
    %217 = vector.broadcast %198 : vector<2x1xf32> to vector<2x512xf32>
    %218 = arith.mulf %216, %217 : vector<2x512xf32>
    %219 = vector.broadcast %200 : vector<2x1xf32> to vector<2x512xf32>
    %220 = arith.addf %218, %219 : vector<2x512xf32>
    %cst_105 = arith.constant 0.000000e+00 : f32
    %221 = vector.broadcast %cst_105 : f32 to vector<2x512xf32>
    %222 = arith.maximumf %220, %221 : vector<2x512xf32>
    %223 = vector.extract_strided_slice %110 {offsets = [6, 0], sizes = [2, 512], strides = [1, 1]} : vector<8x512xf32> to vector<2x512xf32>
    %cst_106 = arith.constant 0.000000e+00 : f32
    %224 = vector.broadcast %cst_106 : f32 to vector<2x512xf32>
    %c9 = arith.constant 9 : index
    %c0_107 = arith.constant 0 : index
    %c0_108 = arith.constant 0 : index
    %225 = vector.load %arg5[%c9, %c0_107, %c0_108] : memref<27x2x2xf32, #tpu.memory_space<vmem>>, vector<1x2x2xf32>
    %226 = vector.shape_cast %225 : vector<1x2x2xf32> to vector<2x2xf32>
    %cst_109 = arith.constant 0.000000e+00 : f32
    %227 = vector.broadcast %cst_109 : f32 to vector<2x17xf32>
    %228 = vector.extract_strided_slice %223 {offsets = [0, 0], sizes = [2, 495], strides = [1, 1]} : vector<2x512xf32> to vector<2x495xf32>
    %229 = tpu.concatenate %227, %228 in 1 : vector<2x17xf32>, vector<2x495xf32> -> vector<2x512xf32>
    %230 = vector.extract_strided_slice %0 {offsets = [0, 0], sizes = [1, 512], strides = [1, 1]} : vector<9x512xf32> to vector<1x512xf32>
    %231 = vector.broadcast %230 : vector<1x512xf32> to vector<2x512xf32>
    %232 = arith.mulf %229, %231 : vector<2x512xf32>
    %cst_110 = arith.constant dense<0.000000e+00> : vector<2x512xf32>
    %233 = tpu.matmul %226, %232, %cst_110 {dimension_numbers = #tpu.dot_dimension_numbers<[1], [0], [0], [1], [0, 0, 1, 1], [], []>} : vector<2x2xf32>, vector<2x512xf32>, vector<2x512xf32> -> vector<2x512xf32>
    %234 = arith.addf %224, %233 : vector<2x512xf32>
    %c10 = arith.constant 10 : index
    %c0_111 = arith.constant 0 : index
    %c0_112 = arith.constant 0 : index
    %235 = vector.load %arg5[%c10, %c0_111, %c0_112] : memref<27x2x2xf32, #tpu.memory_space<vmem>>, vector<1x2x2xf32>
    %236 = vector.shape_cast %235 : vector<1x2x2xf32> to vector<2x2xf32>
    %cst_113 = arith.constant 0.000000e+00 : f32
    %237 = vector.broadcast %cst_113 : f32 to vector<2x16xf32>
    %238 = vector.extract_strided_slice %223 {offsets = [0, 0], sizes = [2, 496], strides = [1, 1]} : vector<2x512xf32> to vector<2x496xf32>
    %239 = tpu.concatenate %237, %238 in 1 : vector<2x16xf32>, vector<2x496xf32> -> vector<2x512xf32>
    %240 = vector.extract_strided_slice %0 {offsets = [1, 0], sizes = [1, 512], strides = [1, 1]} : vector<9x512xf32> to vector<1x512xf32>
    %241 = vector.broadcast %240 : vector<1x512xf32> to vector<2x512xf32>
    %242 = arith.mulf %239, %241 : vector<2x512xf32>
    %cst_114 = arith.constant dense<0.000000e+00> : vector<2x512xf32>
    %243 = tpu.matmul %236, %242, %cst_114 {dimension_numbers = #tpu.dot_dimension_numbers<[1], [0], [0], [1], [0, 0, 1, 1], [], []>} : vector<2x2xf32>, vector<2x512xf32>, vector<2x512xf32> -> vector<2x512xf32>
    %244 = arith.addf %234, %243 : vector<2x512xf32>
    %c11 = arith.constant 11 : index
    %c0_115 = arith.constant 0 : index
    %c0_116 = arith.constant 0 : index
    %245 = vector.load %arg5[%c11, %c0_115, %c0_116] : memref<27x2x2xf32, #tpu.memory_space<vmem>>, vector<1x2x2xf32>
    %246 = vector.shape_cast %245 : vector<1x2x2xf32> to vector<2x2xf32>
    %cst_117 = arith.constant 0.000000e+00 : f32
    %247 = vector.broadcast %cst_117 : f32 to vector<2x15xf32>
    %248 = vector.extract_strided_slice %223 {offsets = [0, 0], sizes = [2, 497], strides = [1, 1]} : vector<2x512xf32> to vector<2x497xf32>
    %249 = tpu.concatenate %247, %248 in 1 : vector<2x15xf32>, vector<2x497xf32> -> vector<2x512xf32>
    %250 = vector.extract_strided_slice %0 {offsets = [2, 0], sizes = [1, 512], strides = [1, 1]} : vector<9x512xf32> to vector<1x512xf32>
    %251 = vector.broadcast %250 : vector<1x512xf32> to vector<2x512xf32>
    %252 = arith.mulf %249, %251 : vector<2x512xf32>
    %cst_118 = arith.constant dense<0.000000e+00> : vector<2x512xf32>
    %253 = tpu.matmul %246, %252, %cst_118 {dimension_numbers = #tpu.dot_dimension_numbers<[1], [0], [0], [1], [0, 0, 1, 1], [], []>} : vector<2x2xf32>, vector<2x512xf32>, vector<2x512xf32> -> vector<2x512xf32>
    %254 = arith.addf %244, %253 : vector<2x512xf32>
    %c12 = arith.constant 12 : index
    %c0_119 = arith.constant 0 : index
    %c0_120 = arith.constant 0 : index
    %255 = vector.load %arg5[%c12, %c0_119, %c0_120] : memref<27x2x2xf32, #tpu.memory_space<vmem>>, vector<1x2x2xf32>
    %256 = vector.shape_cast %255 : vector<1x2x2xf32> to vector<2x2xf32>
    %cst_121 = arith.constant 0.000000e+00 : f32
    %257 = vector.broadcast %cst_121 : f32 to vector<2x1xf32>
    %258 = vector.extract_strided_slice %223 {offsets = [0, 0], sizes = [2, 511], strides = [1, 1]} : vector<2x512xf32> to vector<2x511xf32>
    %259 = tpu.concatenate %257, %258 in 1 : vector<2x1xf32>, vector<2x511xf32> -> vector<2x512xf32>
    %260 = vector.extract_strided_slice %0 {offsets = [3, 0], sizes = [1, 512], strides = [1, 1]} : vector<9x512xf32> to vector<1x512xf32>
    %261 = vector.broadcast %260 : vector<1x512xf32> to vector<2x512xf32>
    %262 = arith.mulf %259, %261 : vector<2x512xf32>
    %cst_122 = arith.constant dense<0.000000e+00> : vector<2x512xf32>
    %263 = tpu.matmul %256, %262, %cst_122 {dimension_numbers = #tpu.dot_dimension_numbers<[1], [0], [0], [1], [0, 0, 1, 1], [], []>} : vector<2x2xf32>, vector<2x512xf32>, vector<2x512xf32> -> vector<2x512xf32>
    %264 = arith.addf %254, %263 : vector<2x512xf32>
    %c13 = arith.constant 13 : index
    %c0_123 = arith.constant 0 : index
    %c0_124 = arith.constant 0 : index
    %265 = vector.load %arg5[%c13, %c0_123, %c0_124] : memref<27x2x2xf32, #tpu.memory_space<vmem>>, vector<1x2x2xf32>
    %266 = vector.shape_cast %265 : vector<1x2x2xf32> to vector<2x2xf32>
    %cst_125 = arith.constant dense<0.000000e+00> : vector<2x512xf32>
    %267 = tpu.matmul %266, %223, %cst_125 {dimension_numbers = #tpu.dot_dimension_numbers<[1], [0], [0], [1], [0, 0, 1, 1], [], []>} : vector<2x2xf32>, vector<2x512xf32>, vector<2x512xf32> -> vector<2x512xf32>
    %268 = arith.addf %264, %267 : vector<2x512xf32>
    %c14 = arith.constant 14 : index
    %c0_126 = arith.constant 0 : index
    %c0_127 = arith.constant 0 : index
    %269 = vector.load %arg5[%c14, %c0_126, %c0_127] : memref<27x2x2xf32, #tpu.memory_space<vmem>>, vector<1x2x2xf32>
    %270 = vector.shape_cast %269 : vector<1x2x2xf32> to vector<2x2xf32>
    %271 = vector.extract_strided_slice %223 {offsets = [0, 1], sizes = [2, 511], strides = [1, 1]} : vector<2x512xf32> to vector<2x511xf32>
    %cst_128 = arith.constant 0.000000e+00 : f32
    %272 = vector.broadcast %cst_128 : f32 to vector<2x1xf32>
    %273 = tpu.concatenate %271, %272 in 1 : vector<2x511xf32>, vector<2x1xf32> -> vector<2x512xf32>
    %274 = vector.extract_strided_slice %0 {offsets = [5, 0], sizes = [1, 512], strides = [1, 1]} : vector<9x512xf32> to vector<1x512xf32>
    %275 = vector.broadcast %274 : vector<1x512xf32> to vector<2x512xf32>
    %276 = arith.mulf %273, %275 : vector<2x512xf32>
    %cst_129 = arith.constant dense<0.000000e+00> : vector<2x512xf32>
    %277 = tpu.matmul %270, %276, %cst_129 {dimension_numbers = #tpu.dot_dimension_numbers<[1], [0], [0], [1], [0, 0, 1, 1], [], []>} : vector<2x2xf32>, vector<2x512xf32>, vector<2x512xf32> -> vector<2x512xf32>
    %278 = arith.addf %268, %277 : vector<2x512xf32>
    %c15 = arith.constant 15 : index
    %c0_130 = arith.constant 0 : index
    %c0_131 = arith.constant 0 : index
    %279 = vector.load %arg5[%c15, %c0_130, %c0_131] : memref<27x2x2xf32, #tpu.memory_space<vmem>>, vector<1x2x2xf32>
    %280 = vector.shape_cast %279 : vector<1x2x2xf32> to vector<2x2xf32>
    %281 = vector.extract_strided_slice %223 {offsets = [0, 15], sizes = [2, 497], strides = [1, 1]} : vector<2x512xf32> to vector<2x497xf32>
    %cst_132 = arith.constant 0.000000e+00 : f32
    %282 = vector.broadcast %cst_132 : f32 to vector<2x15xf32>
    %283 = tpu.concatenate %281, %282 in 1 : vector<2x497xf32>, vector<2x15xf32> -> vector<2x512xf32>
    %284 = vector.extract_strided_slice %0 {offsets = [6, 0], sizes = [1, 512], strides = [1, 1]} : vector<9x512xf32> to vector<1x512xf32>
    %285 = vector.broadcast %284 : vector<1x512xf32> to vector<2x512xf32>
    %286 = arith.mulf %283, %285 : vector<2x512xf32>
    %cst_133 = arith.constant dense<0.000000e+00> : vector<2x512xf32>
    %287 = tpu.matmul %280, %286, %cst_133 {dimension_numbers = #tpu.dot_dimension_numbers<[1], [0], [0], [1], [0, 0, 1, 1], [], []>} : vector<2x2xf32>, vector<2x512xf32>, vector<2x512xf32> -> vector<2x512xf32>
    %288 = arith.addf %278, %287 : vector<2x512xf32>
    %c16 = arith.constant 16 : index
    %c0_134 = arith.constant 0 : index
    %c0_135 = arith.constant 0 : index
    %289 = vector.load %arg5[%c16, %c0_134, %c0_135] : memref<27x2x2xf32, #tpu.memory_space<vmem>>, vector<1x2x2xf32>
    %290 = vector.shape_cast %289 : vector<1x2x2xf32> to vector<2x2xf32>
    %291 = vector.extract_strided_slice %223 {offsets = [0, 16], sizes = [2, 496], strides = [1, 1]} : vector<2x512xf32> to vector<2x496xf32>
    %cst_136 = arith.constant 0.000000e+00 : f32
    %292 = vector.broadcast %cst_136 : f32 to vector<2x16xf32>
    %293 = tpu.concatenate %291, %292 in 1 : vector<2x496xf32>, vector<2x16xf32> -> vector<2x512xf32>
    %294 = vector.extract_strided_slice %0 {offsets = [7, 0], sizes = [1, 512], strides = [1, 1]} : vector<9x512xf32> to vector<1x512xf32>
    %295 = vector.broadcast %294 : vector<1x512xf32> to vector<2x512xf32>
    %296 = arith.mulf %293, %295 : vector<2x512xf32>
    %cst_137 = arith.constant dense<0.000000e+00> : vector<2x512xf32>
    %297 = tpu.matmul %290, %296, %cst_137 {dimension_numbers = #tpu.dot_dimension_numbers<[1], [0], [0], [1], [0, 0, 1, 1], [], []>} : vector<2x2xf32>, vector<2x512xf32>, vector<2x512xf32> -> vector<2x512xf32>
    %298 = arith.addf %288, %297 : vector<2x512xf32>
    %c17 = arith.constant 17 : index
    %c0_138 = arith.constant 0 : index
    %c0_139 = arith.constant 0 : index
    %299 = vector.load %arg5[%c17, %c0_138, %c0_139] : memref<27x2x2xf32, #tpu.memory_space<vmem>>, vector<1x2x2xf32>
    %300 = vector.shape_cast %299 : vector<1x2x2xf32> to vector<2x2xf32>
    %301 = vector.extract_strided_slice %223 {offsets = [0, 17], sizes = [2, 495], strides = [1, 1]} : vector<2x512xf32> to vector<2x495xf32>
    %cst_140 = arith.constant 0.000000e+00 : f32
    %302 = vector.broadcast %cst_140 : f32 to vector<2x17xf32>
    %303 = tpu.concatenate %301, %302 in 1 : vector<2x495xf32>, vector<2x17xf32> -> vector<2x512xf32>
    %304 = vector.extract_strided_slice %0 {offsets = [8, 0], sizes = [1, 512], strides = [1, 1]} : vector<9x512xf32> to vector<1x512xf32>
    %305 = vector.broadcast %304 : vector<1x512xf32> to vector<2x512xf32>
    %306 = arith.mulf %303, %305 : vector<2x512xf32>
    %cst_141 = arith.constant dense<0.000000e+00> : vector<2x512xf32>
    %307 = tpu.matmul %300, %306, %cst_141 {dimension_numbers = #tpu.dot_dimension_numbers<[1], [0], [0], [1], [0, 0, 1, 1], [], []>} : vector<2x2xf32>, vector<2x512xf32>, vector<2x512xf32> -> vector<2x512xf32>
    %308 = arith.addf %298, %307 : vector<2x512xf32>
    %c1_142 = arith.constant 1 : index
    %c0_143 = arith.constant 0 : index
    %c0_144 = arith.constant 0 : index
    %309 = vector.load %arg6[%c1_142, %c0_143, %c0_144] : memref<3x2x1xf32, #tpu.memory_space<vmem>>, vector<1x2x1xf32>
    %310 = vector.shape_cast %309 : vector<1x2x1xf32> to vector<2x1xf32>
    %c1_145 = arith.constant 1 : index
    %c0_146 = arith.constant 0 : index
    %c0_147 = arith.constant 0 : index
    %311 = vector.load %arg7[%c1_145, %c0_146, %c0_147] : memref<3x2x1xf32, #tpu.memory_space<vmem>>, vector<1x2x1xf32>
    %312 = vector.shape_cast %311 : vector<1x2x1xf32> to vector<2x1xf32>
    %cst_148 = arith.constant dense<0.000000e+00> : vector<2xf32>
    %313 = vector.multi_reduction <add>, %308, %cst_148 [1] : vector<2x512xf32> to vector<2xf32>
    %314 = vector.shape_cast %313 : vector<2xf32> to vector<2x1xf32>
    %cst_149 = arith.constant 5.120000e+02 : f32
    %315 = vector.broadcast %cst_149 : f32 to vector<2x1xf32>
    %316 = arith.divf %314, %315 : vector<2x1xf32>
    %317 = vector.broadcast %316 : vector<2x1xf32> to vector<2x512xf32>
    %318 = arith.subf %308, %317 : vector<2x512xf32>
    %319 = arith.mulf %318, %318 : vector<2x512xf32>
    %cst_150 = arith.constant dense<0.000000e+00> : vector<2xf32>
    %320 = vector.multi_reduction <add>, %319, %cst_150 [1] : vector<2x512xf32> to vector<2xf32>
    %321 = vector.shape_cast %320 : vector<2xf32> to vector<2x1xf32>
    %cst_151 = arith.constant 5.120000e+02 : f32
    %322 = vector.broadcast %cst_151 : f32 to vector<2x1xf32>
    %323 = arith.divf %321, %322 : vector<2x1xf32>
    %cst_152 = arith.constant 9.99999974E-6 : f32
    %324 = vector.broadcast %cst_152 : f32 to vector<2x1xf32>
    %325 = arith.addf %323, %324 : vector<2x1xf32>
    %326 = math.rsqrt %325 : vector<2x1xf32>
    %327 = vector.broadcast %326 : vector<2x1xf32> to vector<2x512xf32>
    %328 = arith.mulf %318, %327 : vector<2x512xf32>
    %329 = vector.broadcast %310 : vector<2x1xf32> to vector<2x512xf32>
    %330 = arith.mulf %328, %329 : vector<2x512xf32>
    %331 = vector.broadcast %312 : vector<2x1xf32> to vector<2x512xf32>
    %332 = arith.addf %330, %331 : vector<2x512xf32>
    %cst_153 = arith.constant 0.000000e+00 : f32
    %333 = vector.broadcast %cst_153 : f32 to vector<2x512xf32>
    %334 = arith.maximumf %332, %333 : vector<2x512xf32>
    %cst_154 = arith.constant 0.000000e+00 : f32
    %335 = vector.broadcast %cst_154 : f32 to vector<2x512xf32>
    %c18 = arith.constant 18 : index
    %c0_155 = arith.constant 0 : index
    %c0_156 = arith.constant 0 : index
    %336 = vector.load %arg5[%c18, %c0_155, %c0_156] : memref<27x2x2xf32, #tpu.memory_space<vmem>>, vector<1x2x2xf32>
    %337 = vector.shape_cast %336 : vector<1x2x2xf32> to vector<2x2xf32>
    %cst_157 = arith.constant 0.000000e+00 : f32
    %338 = vector.broadcast %cst_157 : f32 to vector<2x17xf32>
    %339 = vector.extract_strided_slice %334 {offsets = [0, 0], sizes = [2, 495], strides = [1, 1]} : vector<2x512xf32> to vector<2x495xf32>
    %340 = tpu.concatenate %338, %339 in 1 : vector<2x17xf32>, vector<2x495xf32> -> vector<2x512xf32>
    %341 = vector.extract_strided_slice %0 {offsets = [0, 0], sizes = [1, 512], strides = [1, 1]} : vector<9x512xf32> to vector<1x512xf32>
    %342 = vector.broadcast %341 : vector<1x512xf32> to vector<2x512xf32>
    %343 = arith.mulf %340, %342 : vector<2x512xf32>
    %cst_158 = arith.constant dense<0.000000e+00> : vector<2x512xf32>
    %344 = tpu.matmul %337, %343, %cst_158 {dimension_numbers = #tpu.dot_dimension_numbers<[1], [0], [0], [1], [0, 0, 1, 1], [], []>} : vector<2x2xf32>, vector<2x512xf32>, vector<2x512xf32> -> vector<2x512xf32>
    %345 = arith.addf %335, %344 : vector<2x512xf32>
    %c19 = arith.constant 19 : index
    %c0_159 = arith.constant 0 : index
    %c0_160 = arith.constant 0 : index
    %346 = vector.load %arg5[%c19, %c0_159, %c0_160] : memref<27x2x2xf32, #tpu.memory_space<vmem>>, vector<1x2x2xf32>
    %347 = vector.shape_cast %346 : vector<1x2x2xf32> to vector<2x2xf32>
    %cst_161 = arith.constant 0.000000e+00 : f32
    %348 = vector.broadcast %cst_161 : f32 to vector<2x16xf32>
    %349 = vector.extract_strided_slice %334 {offsets = [0, 0], sizes = [2, 496], strides = [1, 1]} : vector<2x512xf32> to vector<2x496xf32>
    %350 = tpu.concatenate %348, %349 in 1 : vector<2x16xf32>, vector<2x496xf32> -> vector<2x512xf32>
    %351 = vector.extract_strided_slice %0 {offsets = [1, 0], sizes = [1, 512], strides = [1, 1]} : vector<9x512xf32> to vector<1x512xf32>
    %352 = vector.broadcast %351 : vector<1x512xf32> to vector<2x512xf32>
    %353 = arith.mulf %350, %352 : vector<2x512xf32>
    %cst_162 = arith.constant dense<0.000000e+00> : vector<2x512xf32>
    %354 = tpu.matmul %347, %353, %cst_162 {dimension_numbers = #tpu.dot_dimension_numbers<[1], [0], [0], [1], [0, 0, 1, 1], [], []>} : vector<2x2xf32>, vector<2x512xf32>, vector<2x512xf32> -> vector<2x512xf32>
    %355 = arith.addf %345, %354 : vector<2x512xf32>
    %c20 = arith.constant 20 : index
    %c0_163 = arith.constant 0 : index
    %c0_164 = arith.constant 0 : index
    %356 = vector.load %arg5[%c20, %c0_163, %c0_164] : memref<27x2x2xf32, #tpu.memory_space<vmem>>, vector<1x2x2xf32>
    %357 = vector.shape_cast %356 : vector<1x2x2xf32> to vector<2x2xf32>
    %cst_165 = arith.constant 0.000000e+00 : f32
    %358 = vector.broadcast %cst_165 : f32 to vector<2x15xf32>
    %359 = vector.extract_strided_slice %334 {offsets = [0, 0], sizes = [2, 497], strides = [1, 1]} : vector<2x512xf32> to vector<2x497xf32>
    %360 = tpu.concatenate %358, %359 in 1 : vector<2x15xf32>, vector<2x497xf32> -> vector<2x512xf32>
    %361 = vector.extract_strided_slice %0 {offsets = [2, 0], sizes = [1, 512], strides = [1, 1]} : vector<9x512xf32> to vector<1x512xf32>
    %362 = vector.broadcast %361 : vector<1x512xf32> to vector<2x512xf32>
    %363 = arith.mulf %360, %362 : vector<2x512xf32>
    %cst_166 = arith.constant dense<0.000000e+00> : vector<2x512xf32>
    %364 = tpu.matmul %357, %363, %cst_166 {dimension_numbers = #tpu.dot_dimension_numbers<[1], [0], [0], [1], [0, 0, 1, 1], [], []>} : vector<2x2xf32>, vector<2x512xf32>, vector<2x512xf32> -> vector<2x512xf32>
    %365 = arith.addf %355, %364 : vector<2x512xf32>
    %c21 = arith.constant 21 : index
    %c0_167 = arith.constant 0 : index
    %c0_168 = arith.constant 0 : index
    %366 = vector.load %arg5[%c21, %c0_167, %c0_168] : memref<27x2x2xf32, #tpu.memory_space<vmem>>, vector<1x2x2xf32>
    %367 = vector.shape_cast %366 : vector<1x2x2xf32> to vector<2x2xf32>
    %cst_169 = arith.constant 0.000000e+00 : f32
    %368 = vector.broadcast %cst_169 : f32 to vector<2x1xf32>
    %369 = vector.extract_strided_slice %334 {offsets = [0, 0], sizes = [2, 511], strides = [1, 1]} : vector<2x512xf32> to vector<2x511xf32>
    %370 = tpu.concatenate %368, %369 in 1 : vector<2x1xf32>, vector<2x511xf32> -> vector<2x512xf32>
    %371 = vector.extract_strided_slice %0 {offsets = [3, 0], sizes = [1, 512], strides = [1, 1]} : vector<9x512xf32> to vector<1x512xf32>
    %372 = vector.broadcast %371 : vector<1x512xf32> to vector<2x512xf32>
    %373 = arith.mulf %370, %372 : vector<2x512xf32>
    %cst_170 = arith.constant dense<0.000000e+00> : vector<2x512xf32>
    %374 = tpu.matmul %367, %373, %cst_170 {dimension_numbers = #tpu.dot_dimension_numbers<[1], [0], [0], [1], [0, 0, 1, 1], [], []>} : vector<2x2xf32>, vector<2x512xf32>, vector<2x512xf32> -> vector<2x512xf32>
    %375 = arith.addf %365, %374 : vector<2x512xf32>
    %c22 = arith.constant 22 : index
    %c0_171 = arith.constant 0 : index
    %c0_172 = arith.constant 0 : index
    %376 = vector.load %arg5[%c22, %c0_171, %c0_172] : memref<27x2x2xf32, #tpu.memory_space<vmem>>, vector<1x2x2xf32>
    %377 = vector.shape_cast %376 : vector<1x2x2xf32> to vector<2x2xf32>
    %cst_173 = arith.constant dense<0.000000e+00> : vector<2x512xf32>
    %378 = tpu.matmul %377, %334, %cst_173 {dimension_numbers = #tpu.dot_dimension_numbers<[1], [0], [0], [1], [0, 0, 1, 1], [], []>} : vector<2x2xf32>, vector<2x512xf32>, vector<2x512xf32> -> vector<2x512xf32>
    %379 = arith.addf %375, %378 : vector<2x512xf32>
    %c23 = arith.constant 23 : index
    %c0_174 = arith.constant 0 : index
    %c0_175 = arith.constant 0 : index
    %380 = vector.load %arg5[%c23, %c0_174, %c0_175] : memref<27x2x2xf32, #tpu.memory_space<vmem>>, vector<1x2x2xf32>
    %381 = vector.shape_cast %380 : vector<1x2x2xf32> to vector<2x2xf32>
    %382 = vector.extract_strided_slice %334 {offsets = [0, 1], sizes = [2, 511], strides = [1, 1]} : vector<2x512xf32> to vector<2x511xf32>
    %cst_176 = arith.constant 0.000000e+00 : f32
    %383 = vector.broadcast %cst_176 : f32 to vector<2x1xf32>
    %384 = tpu.concatenate %382, %383 in 1 : vector<2x511xf32>, vector<2x1xf32> -> vector<2x512xf32>
    %385 = vector.extract_strided_slice %0 {offsets = [5, 0], sizes = [1, 512], strides = [1, 1]} : vector<9x512xf32> to vector<1x512xf32>
    %386 = vector.broadcast %385 : vector<1x512xf32> to vector<2x512xf32>
    %387 = arith.mulf %384, %386 : vector<2x512xf32>
    %cst_177 = arith.constant dense<0.000000e+00> : vector<2x512xf32>
    %388 = tpu.matmul %381, %387, %cst_177 {dimension_numbers = #tpu.dot_dimension_numbers<[1], [0], [0], [1], [0, 0, 1, 1], [], []>} : vector<2x2xf32>, vector<2x512xf32>, vector<2x512xf32> -> vector<2x512xf32>
    %389 = arith.addf %379, %388 : vector<2x512xf32>
    %c24 = arith.constant 24 : index
    %c0_178 = arith.constant 0 : index
    %c0_179 = arith.constant 0 : index
    %390 = vector.load %arg5[%c24, %c0_178, %c0_179] : memref<27x2x2xf32, #tpu.memory_space<vmem>>, vector<1x2x2xf32>
    %391 = vector.shape_cast %390 : vector<1x2x2xf32> to vector<2x2xf32>
    %392 = vector.extract_strided_slice %334 {offsets = [0, 15], sizes = [2, 497], strides = [1, 1]} : vector<2x512xf32> to vector<2x497xf32>
    %cst_180 = arith.constant 0.000000e+00 : f32
    %393 = vector.broadcast %cst_180 : f32 to vector<2x15xf32>
    %394 = tpu.concatenate %392, %393 in 1 : vector<2x497xf32>, vector<2x15xf32> -> vector<2x512xf32>
    %395 = vector.extract_strided_slice %0 {offsets = [6, 0], sizes = [1, 512], strides = [1, 1]} : vector<9x512xf32> to vector<1x512xf32>
    %396 = vector.broadcast %395 : vector<1x512xf32> to vector<2x512xf32>
    %397 = arith.mulf %394, %396 : vector<2x512xf32>
    %cst_181 = arith.constant dense<0.000000e+00> : vector<2x512xf32>
    %398 = tpu.matmul %391, %397, %cst_181 {dimension_numbers = #tpu.dot_dimension_numbers<[1], [0], [0], [1], [0, 0, 1, 1], [], []>} : vector<2x2xf32>, vector<2x512xf32>, vector<2x512xf32> -> vector<2x512xf32>
    %399 = arith.addf %389, %398 : vector<2x512xf32>
    %c25 = arith.constant 25 : index
    %c0_182 = arith.constant 0 : index
    %c0_183 = arith.constant 0 : index
    %400 = vector.load %arg5[%c25, %c0_182, %c0_183] : memref<27x2x2xf32, #tpu.memory_space<vmem>>, vector<1x2x2xf32>
    %401 = vector.shape_cast %400 : vector<1x2x2xf32> to vector<2x2xf32>
    %402 = vector.extract_strided_slice %334 {offsets = [0, 16], sizes = [2, 496], strides = [1, 1]} : vector<2x512xf32> to vector<2x496xf32>
    %cst_184 = arith.constant 0.000000e+00 : f32
    %403 = vector.broadcast %cst_184 : f32 to vector<2x16xf32>
    %404 = tpu.concatenate %402, %403 in 1 : vector<2x496xf32>, vector<2x16xf32> -> vector<2x512xf32>
    %405 = vector.extract_strided_slice %0 {offsets = [7, 0], sizes = [1, 512], strides = [1, 1]} : vector<9x512xf32> to vector<1x512xf32>
    %406 = vector.broadcast %405 : vector<1x512xf32> to vector<2x512xf32>
    %407 = arith.mulf %404, %406 : vector<2x512xf32>
    %cst_185 = arith.constant dense<0.000000e+00> : vector<2x512xf32>
    %408 = tpu.matmul %401, %407, %cst_185 {dimension_numbers = #tpu.dot_dimension_numbers<[1], [0], [0], [1], [0, 0, 1, 1], [], []>} : vector<2x2xf32>, vector<2x512xf32>, vector<2x512xf32> -> vector<2x512xf32>
    %409 = arith.addf %399, %408 : vector<2x512xf32>
    %c26 = arith.constant 26 : index
    %c0_186 = arith.constant 0 : index
    %c0_187 = arith.constant 0 : index
    %410 = vector.load %arg5[%c26, %c0_186, %c0_187] : memref<27x2x2xf32, #tpu.memory_space<vmem>>, vector<1x2x2xf32>
    %411 = vector.shape_cast %410 : vector<1x2x2xf32> to vector<2x2xf32>
    %412 = vector.extract_strided_slice %334 {offsets = [0, 17], sizes = [2, 495], strides = [1, 1]} : vector<2x512xf32> to vector<2x495xf32>
    %cst_188 = arith.constant 0.000000e+00 : f32
    %413 = vector.broadcast %cst_188 : f32 to vector<2x17xf32>
    %414 = tpu.concatenate %412, %413 in 1 : vector<2x495xf32>, vector<2x17xf32> -> vector<2x512xf32>
    %415 = vector.extract_strided_slice %0 {offsets = [8, 0], sizes = [1, 512], strides = [1, 1]} : vector<9x512xf32> to vector<1x512xf32>
    %416 = vector.broadcast %415 : vector<1x512xf32> to vector<2x512xf32>
    %417 = arith.mulf %414, %416 : vector<2x512xf32>
    %cst_189 = arith.constant dense<0.000000e+00> : vector<2x512xf32>
    %418 = tpu.matmul %411, %417, %cst_189 {dimension_numbers = #tpu.dot_dimension_numbers<[1], [0], [0], [1], [0, 0, 1, 1], [], []>} : vector<2x2xf32>, vector<2x512xf32>, vector<2x512xf32> -> vector<2x512xf32>
    %419 = arith.addf %409, %418 : vector<2x512xf32>
    %c2_190 = arith.constant 2 : index
    %c0_191 = arith.constant 0 : index
    %c0_192 = arith.constant 0 : index
    %420 = vector.load %arg6[%c2_190, %c0_191, %c0_192] : memref<3x2x1xf32, #tpu.memory_space<vmem>>, vector<1x2x1xf32>
    %421 = vector.shape_cast %420 : vector<1x2x1xf32> to vector<2x1xf32>
    %c2_193 = arith.constant 2 : index
    %c0_194 = arith.constant 0 : index
    %c0_195 = arith.constant 0 : index
    %422 = vector.load %arg7[%c2_193, %c0_194, %c0_195] : memref<3x2x1xf32, #tpu.memory_space<vmem>>, vector<1x2x1xf32>
    %423 = vector.shape_cast %422 : vector<1x2x1xf32> to vector<2x1xf32>
    %cst_196 = arith.constant dense<0.000000e+00> : vector<2xf32>
    %424 = vector.multi_reduction <add>, %419, %cst_196 [1] : vector<2x512xf32> to vector<2xf32>
    %425 = vector.shape_cast %424 : vector<2xf32> to vector<2x1xf32>
    %cst_197 = arith.constant 5.120000e+02 : f32
    %426 = vector.broadcast %cst_197 : f32 to vector<2x1xf32>
    %427 = arith.divf %425, %426 : vector<2x1xf32>
    %428 = vector.broadcast %427 : vector<2x1xf32> to vector<2x512xf32>
    %429 = arith.subf %419, %428 : vector<2x512xf32>
    %430 = arith.mulf %429, %429 : vector<2x512xf32>
    %cst_198 = arith.constant dense<0.000000e+00> : vector<2xf32>
    %431 = vector.multi_reduction <add>, %430, %cst_198 [1] : vector<2x512xf32> to vector<2xf32>
    %432 = vector.shape_cast %431 : vector<2xf32> to vector<2x1xf32>
    %cst_199 = arith.constant 5.120000e+02 : f32
    %433 = vector.broadcast %cst_199 : f32 to vector<2x1xf32>
    %434 = arith.divf %432, %433 : vector<2x1xf32>
    %cst_200 = arith.constant 9.99999974E-6 : f32
    %435 = vector.broadcast %cst_200 : f32 to vector<2x1xf32>
    %436 = arith.addf %434, %435 : vector<2x1xf32>
    %437 = math.rsqrt %436 : vector<2x1xf32>
    %438 = vector.broadcast %437 : vector<2x1xf32> to vector<2x512xf32>
    %439 = arith.mulf %429, %438 : vector<2x512xf32>
    %440 = vector.broadcast %421 : vector<2x1xf32> to vector<2x512xf32>
    %441 = arith.mulf %439, %440 : vector<2x512xf32>
    %442 = vector.broadcast %423 : vector<2x1xf32> to vector<2x512xf32>
    %443 = arith.addf %441, %442 : vector<2x512xf32>
    %cst_201 = arith.constant 0.000000e+00 : f32
    %444 = vector.broadcast %cst_201 : f32 to vector<2x512xf32>
    %445 = arith.maximumf %443, %444 : vector<2x512xf32>
    %c0_202 = arith.constant 0 : index
    %c0_203 = arith.constant 0 : index
    %446 = vector.load %arg8[%c0_202, %c0_203] : memref<8x1xf32, #tpu.memory_space<vmem>>, vector<8x1xf32>
    %c0_204 = arith.constant 0 : index
    %c0_205 = arith.constant 0 : index
    %447 = vector.load %arg9[%c0_204, %c0_205] : memref<8x1xf32, #tpu.memory_space<vmem>>, vector<8x1xf32>
    %448 = vector.extract_strided_slice %110 {offsets = [0, 0], sizes = [4, 512], strides = [1, 1]} : vector<8x512xf32> to vector<4x512xf32>
    %449 = vector.extract_strided_slice %446 {offsets = [0, 0], sizes = [4, 1], strides = [1, 1]} : vector<8x1xf32> to vector<4x1xf32>
    %450 = vector.extract_strided_slice %447 {offsets = [0, 0], sizes = [4, 1], strides = [1, 1]} : vector<8x1xf32> to vector<4x1xf32>
    %cst_206 = arith.constant dense<0.000000e+00> : vector<4xf32>
    %451 = vector.multi_reduction <add>, %448, %cst_206 [1] : vector<4x512xf32> to vector<4xf32>
    %452 = vector.shape_cast %451 : vector<4xf32> to vector<4x1xf32>
    %cst_207 = arith.constant 5.120000e+02 : f32
    %453 = vector.broadcast %cst_207 : f32 to vector<4x1xf32>
    %454 = arith.divf %452, %453 : vector<4x1xf32>
    %455 = vector.broadcast %454 : vector<4x1xf32> to vector<4x512xf32>
    %456 = arith.subf %448, %455 : vector<4x512xf32>
    %457 = arith.mulf %456, %456 : vector<4x512xf32>
    %cst_208 = arith.constant dense<0.000000e+00> : vector<4xf32>
    %458 = vector.multi_reduction <add>, %457, %cst_208 [1] : vector<4x512xf32> to vector<4xf32>
    %459 = vector.shape_cast %458 : vector<4xf32> to vector<4x1xf32>
    %cst_209 = arith.constant 5.120000e+02 : f32
    %460 = vector.broadcast %cst_209 : f32 to vector<4x1xf32>
    %461 = arith.divf %459, %460 : vector<4x1xf32>
    %cst_210 = arith.constant 9.99999974E-6 : f32
    %462 = vector.broadcast %cst_210 : f32 to vector<4x1xf32>
    %463 = arith.addf %461, %462 : vector<4x1xf32>
    %464 = math.rsqrt %463 : vector<4x1xf32>
    %465 = vector.broadcast %464 : vector<4x1xf32> to vector<4x512xf32>
    %466 = arith.mulf %456, %465 : vector<4x512xf32>
    %467 = vector.broadcast %449 : vector<4x1xf32> to vector<4x512xf32>
    %468 = arith.mulf %466, %467 : vector<4x512xf32>
    %469 = vector.broadcast %450 : vector<4x1xf32> to vector<4x512xf32>
    %470 = arith.addf %468, %469 : vector<4x512xf32>
    %cst_211 = arith.constant 0.000000e+00 : f32
    %471 = vector.broadcast %cst_211 : f32 to vector<4x512xf32>
    %472 = arith.maximumf %470, %471 : vector<4x512xf32>
    %c0_212 = arith.constant 0 : index
    %c0_213 = arith.constant 0 : index
    %473 = vector.load %arg10[%c0_212, %c0_213] : memref<8x512xf32, #tpu.memory_space<vmem>>, vector<4x512xf32>
    tpu.vector_store %arg10[%c0_212, %c0_213], %472 {strides = array<i32>} : memref<8x512xf32, #tpu.memory_space<vmem>>, vector<4x512xf32>,
    %474 = vector.extract_strided_slice %446 {offsets = [4, 0], sizes = [2, 1], strides = [1, 1]} : vector<8x1xf32> to vector<2x1xf32>
    %475 = vector.extract_strided_slice %447 {offsets = [4, 0], sizes = [2, 1], strides = [1, 1]} : vector<8x1xf32> to vector<2x1xf32>
    %cst_214 = arith.constant dense<0.000000e+00> : vector<2xf32>
    %476 = vector.multi_reduction <add>, %222, %cst_214 [1] : vector<2x512xf32> to vector<2xf32>
    %477 = vector.shape_cast %476 : vector<2xf32> to vector<2x1xf32>
    %cst_215 = arith.constant 5.120000e+02 : f32
    %478 = vector.broadcast %cst_215 : f32 to vector<2x1xf32>
    %479 = arith.divf %477, %478 : vector<2x1xf32>
    %480 = vector.broadcast %479 : vector<2x1xf32> to vector<2x512xf32>
    %481 = arith.subf %222, %480 : vector<2x512xf32>
    %482 = arith.mulf %481, %481 : vector<2x512xf32>
    %cst_216 = arith.constant dense<0.000000e+00> : vector<2xf32>
    %483 = vector.multi_reduction <add>, %482, %cst_216 [1] : vector<2x512xf32> to vector<2xf32>
    %484 = vector.shape_cast %483 : vector<2xf32> to vector<2x1xf32>
    %cst_217 = arith.constant 5.120000e+02 : f32
    %485 = vector.broadcast %cst_217 : f32 to vector<2x1xf32>
    %486 = arith.divf %484, %485 : vector<2x1xf32>
    %cst_218 = arith.constant 9.99999974E-6 : f32
    %487 = vector.broadcast %cst_218 : f32 to vector<2x1xf32>
    %488 = arith.addf %486, %487 : vector<2x1xf32>
    %489 = math.rsqrt %488 : vector<2x1xf32>
    %490 = vector.broadcast %489 : vector<2x1xf32> to vector<2x512xf32>
    %491 = arith.mulf %481, %490 : vector<2x512xf32>
    %492 = vector.broadcast %474 : vector<2x1xf32> to vector<2x512xf32>
    %493 = arith.mulf %491, %492 : vector<2x512xf32>
    %494 = vector.broadcast %475 : vector<2x1xf32> to vector<2x512xf32>
    %495 = arith.addf %493, %494 : vector<2x512xf32>
    %cst_219 = arith.constant 0.000000e+00 : f32
    %496 = vector.broadcast %cst_219 : f32 to vector<2x512xf32>
    %497 = arith.maximumf %495, %496 : vector<2x512xf32>
    %c4_220 = arith.constant 4 : index
    %c0_221 = arith.constant 0 : index
    %498 = vector.load %arg10[%c4_220, %c0_221] : memref<8x512xf32, #tpu.memory_space<vmem>>, vector<2x512xf32>
    tpu.vector_store %arg10[%c4_220, %c0_221], %497 {strides = array<i32>} : memref<8x512xf32, #tpu.memory_space<vmem>>, vector<2x512xf32>,
    %499 = vector.extract_strided_slice %446 {offsets = [6, 0], sizes = [2, 1], strides = [1, 1]} : vector<8x1xf32> to vector<2x1xf32>
    %500 = vector.extract_strided_slice %447 {offsets = [6, 0], sizes = [2, 1], strides = [1, 1]} : vector<8x1xf32> to vector<2x1xf32>
    %cst_222 = arith.constant dense<0.000000e+00> : vector<2xf32>
    %501 = vector.multi_reduction <add>, %445, %cst_222 [1] : vector<2x512xf32> to vector<2xf32>
    %502 = vector.shape_cast %501 : vector<2xf32> to vector<2x1xf32>
    %cst_223 = arith.constant 5.120000e+02 : f32
    %503 = vector.broadcast %cst_223 : f32 to vector<2x1xf32>
    %504 = arith.divf %502, %503 : vector<2x1xf32>
    %505 = vector.broadcast %504 : vector<2x1xf32> to vector<2x512xf32>
    %506 = arith.subf %445, %505 : vector<2x512xf32>
    %507 = arith.mulf %506, %506 : vector<2x512xf32>
    %cst_224 = arith.constant dense<0.000000e+00> : vector<2xf32>
    %508 = vector.multi_reduction <add>, %507, %cst_224 [1] : vector<2x512xf32> to vector<2xf32>
    %509 = vector.shape_cast %508 : vector<2xf32> to vector<2x1xf32>
    %cst_225 = arith.constant 5.120000e+02 : f32
    %510 = vector.broadcast %cst_225 : f32 to vector<2x1xf32>
    %511 = arith.divf %509, %510 : vector<2x1xf32>
    %cst_226 = arith.constant 9.99999974E-6 : f32
    %512 = vector.broadcast %cst_226 : f32 to vector<2x1xf32>
    %513 = arith.addf %511, %512 : vector<2x1xf32>
    %514 = math.rsqrt %513 : vector<2x1xf32>
    %515 = vector.broadcast %514 : vector<2x1xf32> to vector<2x512xf32>
    %516 = arith.mulf %506, %515 : vector<2x512xf32>
    %517 = vector.broadcast %499 : vector<2x1xf32> to vector<2x512xf32>
    %518 = arith.mulf %516, %517 : vector<2x512xf32>
    %519 = vector.broadcast %500 : vector<2x1xf32> to vector<2x512xf32>
    %520 = arith.addf %518, %519 : vector<2x512xf32>
    %cst_227 = arith.constant 0.000000e+00 : f32
    %521 = vector.broadcast %cst_227 : f32 to vector<2x512xf32>
    %522 = arith.maximumf %520, %521 : vector<2x512xf32>
    %c6_228 = arith.constant 6 : index
    %c0_229 = arith.constant 0 : index
    %523 = vector.load %arg10[%c6_228, %c0_229] : memref<8x512xf32, #tpu.memory_space<vmem>>, vector<2x512xf32>
    tpu.vector_store %arg10[%c6_228, %c0_229], %522 {strides = array<i32>} : memref<8x512xf32, #tpu.memory_space<vmem>>, vector<2x512xf32>,
    return
  }
}

</mosaic_0001>

<bundles_post_ra>
// kernel: basic_block_forward.1
= control target key start
LH: loop header
LB: loop body
LE: loop exit
PB: predicated region body
PF: predicated region fallthrough
CT: control target
= control target key end

     0   :  { %s5191_s17 = smov 17   ;;  %s5193_s18 = smov 15   ;;  %vm63_vm0 = vcmask 138240   ;;  %vm97_vm1 = vcmask 130048   ;;  %vm323_vm2 = vcmask 121856   ;;  %vm118_vm3 = vcmask 1043456   ;;  %s6663_s0 = inlined_call_operand.vmem [shape: f32[4,512], index: 0, kind: input, shape index: {}]   ;;  %s6664_s1 = inlined_call_operand.vmem [shape: f32[9,512], index: 1, kind: input, shape index: {}]   ;;  %s6665_s2 = inlined_call_operand.vmem [shape: f32[9,8,4], index: 2, kind: input, shape index: {}]   ;;  %s6666_s3 = inlined_call_operand.vmem [shape: f32[8,1], index: 3, kind: input, shape index: {}]   ;;  %s6667_s4 = inlined_call_operand.vmem [shape: f32[8,1], index: 4, kind: input, shape index: {}]   ;;  %s6668_s5 = inlined_call_operand.vmem [shape: f32[27,2,2], index: 5, kind: input, shape index: {}]   ;;  %s6669_s6 = inlined_call_operand.vmem [shape: f32[3,2,1], index: 6, kind: input, shape index: {}]   ;;  %s6670_s7 = inlined_call_operand.vmem [shape: f32[3,2,1], index: 7, kind: input, shape index: {}]   ;;  %s6671_s9 = inlined_call_operand.vmem [shape: f32[8,1], index: 9, kind: input, shape index: {}]   ;;  %s6672_s8 = inlined_call_operand.vmem [shape: f32[8,1], index: 8, kind: input, shape index: {}]   ;;  %s6673_s10 = inlined_call_operand.vmem [shape: f32[8,512], index: 10, kind: output, shape index: {}]  }
   0x1   :  { %v5259_v0 = vld [vmem:[%s6663_s0] sm:$0xff]  ;;  %v5264_v1 = vld [vmem:[%s6663_s0 + $0x8] sm:$0xff]  ;;  %s5192_s0 = smov 16   ;;  %s5194_s19 = smov 1   ;;  %v5329_v45 = vld [vmem:[%s6664_s1 + $0x18] sm:$0xff]  ;;  %vm114_vm4 = vcmask 31744  }
   0x2   :  { %48 = vst [vmem:[#allocation1] ss:$2 sm:$0xff] %v5259_v0  ;;  %s5195_s20 = smov 127   ;;  %s5196_s21 = smov 113   ;;  %v5334_v46 = vld [vmem:[%s6664_s1] sm:$0xff]  ;;  %v5339_v47 = vld [vmem:[%s6664_s1 + $0x8] sm:$0xff] }
   0x3   :  { %50 = vst [vmem:[#allocation1 + $0x10] ss:$2 sm:$0xff] %v5264_v1  ;;  %s5197_s22 = smov 112   ;;  %s5198_s23 = smov 111   ;;  %v5344_v48 = vld [vmem:[%s6664_s1 + $0x10] sm:$0xff]  ;;  %v5350_v50 = vperm.slane %v5329_v45, 1 }
   0x4   :  { %v5347_v49 = vperm.slane %v5344_v48, 1  ;;  %v5355_v52 = vperm.slane %v5334_v46, 0  ;;  %v5358_v53 = vperm.slane %v5339_v47, 0  ;;  %v5361_v54 = vperm.slane %v5344_v48, 0 }
   0x5   :  { %v5364_v56 = vperm.slane %v5334_v46, 1  ;;  %v5367_v57 = vperm.slane %v5339_v47, 1  ;;  %v5372_v60 = vperm.slane %v5334_v46, 2  ;;  %v5375_v61 = vperm.slane %v5339_v47, 2 }
   0x6   :  { %vm456_vm5 = vcmask 7168   ;;  %vm693_vm6 = vcmask 1039360   ;;  %vm826_vm7 = vcmask 924672   ;;  %vm1092_vm8 = vcmask 908288  }
   0x7   :  { %vm959_vm9 = vcmask 916480   ;;  %vm1329_vm14 = vcmask 1041408   ;;  %vm1325_vm15 = vcmask 15360  }
   0x9   :  { %v51_v2 = vld.sshfl [vmem:[#allocation1] sm:$0xff pattern:$0x75316420]  ;;  %v52_v3 = vld.sshfl [vmem:[#allocation1 + $0x8] sm:$0xff pattern:$0x75316420] }
   0xa   :  { %55 = vrot.lane.b32.xlu1 %v51_v2, %s5191_s17  ;;  %82 = vst [vmem:[#allocation1] ss:$2 sm:$0xff] %v5259_v0  ;;  %v53_v4 = vld.sshfl [vmem:[#allocation1 + $0x10] sm:$0xff pattern:$0x75316420]  ;;  %57 = vrot.lane.b32.xlu2 %v52_v3, %s5191_s17  ;;  %v4828_v2 = vld [vmem:[%s6665_s2 + $0x8] sm:$0xff] }
   0xb   :  { %v54_v5 = vld.sshfl [vmem:[#allocation1 + $0x18] sm:$0xff pattern:$0x75316420] }
   0xc   :  { %84 = vst [vmem:[#allocation1 + $0x10] ss:$2 sm:$0xff] %v5264_v1 }
  0x11   :  { %v86_v6 = vld.sshfl [vmem:[#allocation1 + $0x8] sm:$0xff pattern:$0x75316420]  ;;  %v85_v7 = vld.sshfl [vmem:[#allocation1] sm:$0xff pattern:$0x75316420] }
  0x12   :  { %91 = vrot.lane.b32.xlu0 %v86_v6, %s5192_s0  ;;  %308 = vst [vmem:[#allocation1] ss:$2 sm:$0xff] %v5259_v0  ;;  %59 = vrot.lane.b32.xlu2 %v53_v4, %s5191_s17 }
  0x13   :  { %v88_v8 = vld.sshfl [vmem:[#allocation1 + $0x18] sm:$0xff pattern:$0x75316420]  ;;  %v87_v9 = vld.sshfl [vmem:[#allocation1 + $0x10] sm:$0xff pattern:$0x75316420] }
  0x14   :  { %95 = vrot.lane.b32.xlu1 %v88_v8, %s5192_s0  ;;  %310 = vst [vmem:[#allocation1 + $0x10] ss:$2 sm:$0xff] %v5264_v1 }
  0x19   :  { %v311_v10 = vld.sshfl [vmem:[#allocation1] sm:$0xff pattern:$0x75316420]  ;;  %v312_v11 = vld.sshfl [vmem:[#allocation1 + $0x8] sm:$0xff pattern:$0x75316420] }
  0x1a   :  { %93 = vrot.lane.b32.xlu0 %v87_v9, %s5192_s0  ;;  %441 = vst [vmem:[#allocation1] ss:$2 sm:$0xff] %v5259_v0  ;;  %317 = vrot.lane.b32.xlu2 %v312_v11, %s5193_s18 }
  0x1b   :  { %v314_v12 = vld.sshfl [vmem:[#allocation1 + $0x18] sm:$0xff pattern:$0x75316420]  ;;  %v313_v13 = vld.sshfl [vmem:[#allocation1 + $0x10] sm:$0xff pattern:$0x75316420] }
  0x1c   :  { %89 = vrot.lane.b32.xlu1 %v85_v7, %s5192_s0  ;;  %443 = vst [vmem:[#allocation1 + $0x10] ss:$2 sm:$0xff] %v5264_v1 }
  0x21   :  { %v445_v14 = vld.sshfl [vmem:[#allocation1 + $0x8] sm:$0xff pattern:$0x75316420]  ;;  %v444_v15 = vld.sshfl [vmem:[#allocation1] sm:$0xff pattern:$0x75316420] }
  0x22   :  { %61 = vrot.lane.b32.xlu0 %v54_v5, %s5191_s17  ;;  %574 = vst [vmem:[#allocation1] ss:$2 sm:$0xff] %v5259_v0  ;;  %315 = vrot.lane.b32.xlu2 %v311_v10, %s5193_s18 }
  0x23   :  { %v446_v16 = vld.sshfl [vmem:[#allocation1 + $0x10] sm:$0xff pattern:$0x75316420]  ;;  %v447_v17 = vld.sshfl [vmem:[#allocation1 + $0x18] sm:$0xff pattern:$0x75316420] }
  0x24   :  { %321 = vrot.lane.b32.xlu1 %v314_v12, %s5193_s18  ;;  %576 = vst [vmem:[#allocation1 + $0x10] ss:$2 sm:$0xff] %v5264_v1 }
  0x29   :  { %v5287_v18 = vld.sshfl [vmem:[#allocation1] sm:$0xff pattern:$0x75316420]  ;;  %v5289_v19 = vld.sshfl [vmem:[#allocation1 + $0x8] sm:$0xff pattern:$0x75316420] }
  0x2a   :  { %319 = vrot.lane.b32.xlu0 %v313_v13, %s5193_s18  ;;  %678 = vst [vmem:[#allocation1] ss:$2 sm:$0xff] %v5259_v0  ;;  %454 = vrot.lane.b32.xlu2 %v447_v17, %s5194_s19 }
  0x2b   :  { %v5294_v20 = vld.sshfl [vmem:[#allocation1 + $0x10] sm:$0xff pattern:$0x75316420]  ;;  %v5296_v21 = vld.sshfl [vmem:[#allocation1 + $0x18] sm:$0xff pattern:$0x75316420] }
  0x2c   :  { %452 = vrot.lane.b32.xlu1 %v446_v16, %s5194_s19  ;;  %680 = vst [vmem:[#allocation1 + $0x10] ss:$2 sm:$0xff] %v5264_v1 }
  0x31   :  { %v682_v22 = vld.sshfl [vmem:[#allocation1 + $0x8] sm:$0xff pattern:$0x75316420]  ;;  %v681_v23 = vld.sshfl [vmem:[#allocation1] sm:$0xff pattern:$0x75316420] }
  0x32   :  { %450 = vrot.lane.b32.xlu0 %v445_v14, %s5194_s19  ;;  %811 = vst [vmem:[#allocation1] ss:$2 sm:$0xff] %v5259_v0  ;;  %v5402_v14 = vperm.slane %v5329_v45, 0 }
  0x33   :  { %v683_v24 = vld.sshfl [vmem:[#allocation1 + $0x10] sm:$0xff pattern:$0x75316420]  ;;  %v684_v25 = vld.sshfl [vmem:[#allocation1 + $0x18] sm:$0xff pattern:$0x75316420] }
  0x34   :  { %689 = vrot.lane.b32.xlu1 %v683_v24, %s5195_s20  ;;  %813 = vst [vmem:[#allocation1 + $0x10] ss:$2 sm:$0xff] %v5264_v1  ;;  %691 = vrot.lane.b32.xlu2 %v684_v25, %s5195_s20 }
  0x39   :  { %v814_v26 = vld.sshfl [vmem:[#allocation1] sm:$0xff pattern:$0x75316420]  ;;  %v815_v27 = vld.sshfl [vmem:[#allocation1 + $0x8] sm:$0xff pattern:$0x75316420] }
  0x3a   :  { %448 = vrot.lane.b32.xlu0 %v444_v15, %s5194_s19  ;;  %944 = vst [vmem:[#allocation1] ss:$2 sm:$0xff] %v5259_v0 }
  0x3b   :  { %v816_v28 = vld.sshfl [vmem:[#allocation1 + $0x10] sm:$0xff pattern:$0x75316420]  ;;  %v817_v29 = vld.sshfl [vmem:[#allocation1 + $0x18] sm:$0xff pattern:$0x75316420] }
  0x3c   :  { %687 = vrot.lane.b32.xlu1 %v682_v22, %s5195_s20  ;;  %946 = vst [vmem:[#allocation1 + $0x10] ss:$2 sm:$0xff] %v5264_v1  ;;  %822 = vrot.lane.b32.xlu2 %v816_v28, %s5196_s21  ;;  %v5425_v28 = vperm.slane %v5329_v45, 2 }
  0x41   :  { %v948_v30 = vld.sshfl [vmem:[#allocation1 + $0x8] sm:$0xff pattern:$0x75316420]  ;;  %v947_v31 = vld.sshfl [vmem:[#allocation1] sm:$0xff pattern:$0x75316420] }
  0x42   :  { %685 = vrot.lane.b32.xlu0 %v681_v23, %s5195_s20  ;;  %1077 = vst [vmem:[#allocation1] ss:$2 sm:$0xff] %v5259_v0 }
  0x43   :  { %v950_v32 = vld.sshfl [vmem:[#allocation1 + $0x18] sm:$0xff pattern:$0x75316420]  ;;  %v949_v33 = vld.sshfl [vmem:[#allocation1 + $0x10] sm:$0xff pattern:$0x75316420] }
  0x44   :  { %818 = vrot.lane.b32.xlu1 %v814_v26, %s5196_s21  ;;  %1079 = vst [vmem:[#allocation1 + $0x10] ss:$2 sm:$0xff] %v5264_v1  ;;  %820 = vrot.lane.b32.xlu2 %v815_v27, %s5196_s21  ;;  %v45_v26 = vld [vmem:[%s6665_s2] sm:$0xff]  ;;  %v5422_v27 = vperm.slane %v5344_v48, 2 }
  0x49   :  { %v1081_v36 = vld.sshfl [vmem:[#allocation1 + $0x8] sm:$0xff pattern:$0x75316420]  ;;  %v1080_v37 = vld.sshfl [vmem:[#allocation1] sm:$0xff pattern:$0x75316420] }
  0x4a   :  { %824 = vrot.lane.b32.xlu0 %v817_v29, %s5196_s21 }
  0x4b   :  { %v1082_v34 = vld.sshfl [vmem:[#allocation1 + $0x10] sm:$0xff pattern:$0x75316420]  ;;  %v1083_v35 = vld.sshfl [vmem:[#allocation1 + $0x18] sm:$0xff pattern:$0x75316420] }
  0x4c   :  { %957 = vrot.lane.b32.xlu1 %v950_v32, %s5197_s22  ;;  %951 = vrot.lane.b32.xlu2 %v947_v31, %s5197_s22 }
  0x52   :  { %955 = vrot.lane.b32.xlu0 %v949_v33, %s5197_s22 }
  0x54   :  { %1088 = vrot.lane.b32.xlu1 %v1082_v34, %s5198_s23  ;;  %1090 = vrot.lane.b32.xlu2 %v1083_v35, %s5198_s23 }
  0x5a   :  { %953 = vrot.lane.b32.xlu0 %v948_v30, %s5197_s22  ;;  %v5430_v30 = vperm.slane %v5329_v45, 3 }
  0x5c   :  { %1086 = vrot.lane.b32.xlu1 %v1081_v36, %s5198_s23  ;;  %6716 = vst [vmem:[#allocation2_spill] sm:$0xff] %v5430_v30  ;;  %v4845_v36 = vld [vmem:[%s6665_s2 + $0x10] sm:$0xff] }
  0x62   :  { %1084 = vrot.lane.b32.xlu0 %v1080_v37, %s5198_s23 }
  0x64   :  { %v58_v38 = vpop.permute.xlu2 %57 }
  0x6c   :  { %v60_v39 = vpop.permute.xlu2 %59 }
  0x6d   :  { %v65_v8 = vsel %vm63_vm0, %v58_v38, %v60_v39 }
  0x6e   :  { %v78_v16 = vmul.f32 %v5361_v54, %v65_v8 }
  0x74   :  { %v5324_v40 = vpop.permute.xlu2 %317 }
  0x7c   :  { %v56_v41 = vpop.permute.xlu1 %55  ;;  %v316_v42 = vpop.permute.xlu2 %315 }
  0x7d   :  { %v71_v62 = vsel %vm63_vm0, 0.0, %v56_v41  ;;  %v324_v3 = vsel %vm323_vm2, %v316_v42, %v5324_v40  ;;  %v64_v4 = vsel %vm63_vm0, %v56_v41, %v58_v38  ;;  %v331_v7 = vsel %vm323_vm2, 0.0, %v316_v42 }
  0x7e   :  { %v337_v11 = vmul.f32 %v5375_v61, %v324_v3  ;;  %v76_v12 = vmul.f32 %v5355_v52, %v71_v62  ;;  %v77_v13 = vmul.f32 %v5358_v53, %v64_v4  ;;  %v336_v15 = vmul.f32 %v5372_v60, %v331_v7  ;;  %v4854_v62 = vld [vmem:[%s6665_s2 + $0x18] sm:$0xff] }
  0x7f   :  { %v5454_v41 = vperm.slane %v5329_v45, 5 }
  0x81   :  { %6718 = vst [vmem:[#allocation4_spill] sm:$0xff] %v5454_v41 }
  0x84   :  { %v92_v43 = vpop.permute.xlu0 %91  ;;  %v5352_v51 = vpop.permute.xlu2 %454 }
  0x86   :  { %v96_v44 = vpop.permute.xlu1 %95 }
  0x8c   :  { %v94_v55 = vpop.permute.xlu0 %93 }
  0x8d   :  { %v99_v58 = vsel %vm97_vm1, %v92_v43, %v94_v55  ;;  %v100_v59 = vsel %vm97_vm1, %v94_v55, %v96_v44  ;;  %v5460_v44 = vperm.slane %v5344_v48, 5 }
  0x8e   :  { %v90_v63 = vpop.permute.xlu1 %89  ;;  %v112_v0 = vmul.f32 %v5347_v49, %v99_v58  ;;  %v113_v1 = vmul.f32 %v5350_v50, %v100_v59  ;;  %v692_v22 = vpop.permute.xlu2 %691 }
  0x8f   :  { %v98_v5 = vsel %vm97_vm1, %v90_v63, %v92_v43  ;;  %v105_v6 = vsel %vm97_vm1, 0.0, %v90_v63  ;;  %v701_v42 = vsel %vm693_vm6, %v692_v22, 0.0  ;;  %6719 = vst [vmem:[#allocation5_spill] sm:$0xff] %v5460_v44 }
  0x90   :  { %v110_v9 = vmul.f32 %v5364_v56, %v105_v6  ;;  %v111_v10 = vmul.f32 %v5367_v57, %v98_v5  ;;  %4833 = vmatpush.msk.msra.mxu2 %vm118_vm3, %v112_v0  ;;  %4835 = vmatpush.msk.msra.mxu3 %vm118_vm3, %v113_v1  ;;  %v709_v59 = vmul.f32 %v5454_v41, %v701_v42  ;;  %v5488_v6 = vperm.slane %v5339_v47, 5 }
  0x91   :  { %4834 = vmatmul.msk.f32.vlgmr.msra.gmra.mxu2 %vm114_vm4, %v4828_v2  ;;  %4836 = vmatmul.msk.f32.vlgmr.msra.gmra.mxu3 %vm114_vm4, %v4828_v2 }
  0x92   :  { %4829 = vmatpush.msk.msra.mxu0 %vm118_vm3, %v110_v9  ;;  %4831 = vmatpush.msk.msra.mxu1 %vm118_vm3, %v111_v10  ;;  %6722 = vst [vmem:[#allocation8_spill] sm:$0xff] %v5488_v6 }
  0x93   :  { %4830 = vmatmul.msk.f32.vlgmr.msra.gmra.mxu0 %vm114_vm4, %v4828_v2  ;;  %4832 = vmatmul.msk.f32.vlgmr.msra.gmra.mxu1 %vm114_vm4, %v4828_v2  ;;  %v5479_v2 = vperm.slane %v5339_v47, 3 }
  0x94   :  { %4837 = vmatpush.msk.msrb.mxu0 %vm118_vm3, %v76_v12  ;;  %4839 = vmatpush.msk.msrb.mxu1 %vm118_vm3, %v77_v13  ;;  %v62_v17 = vpop.permute.xlu0 %61  ;;  %v5507_v13 = vperm.slane %v5334_v46, 5 }
  0x95   :  { %4841 = vmatpush.msk.msrb.mxu2 %vm118_vm3, %v78_v16  ;;  %v66_v23 = vsel %vm63_vm0, %v60_v39, %v62_v17  ;;  %6721 = vst [vmem:[#allocation7_spill] sm:$0xff] %v5479_v2 }
  0x96   :  { %4848 = vmatpush.msk.msra.mxu1 %vm118_vm3, %v337_v11  ;;  %v79_v24 = vmul.f32 %v5402_v14, %v66_v23  ;;  %v322_v25 = vpop.permute.xlu1 %321  ;;  %4846 = vmatpush.msk.msra.mxu0 %vm118_vm3, %v336_v15  ;;  %v5440_v37 = vpop.permute.xlu2 %822  ;;  %6723 = vst [vmem:[#allocation9_spill] sm:$0xff] %v5507_v13  ;;  %v5510_v15 = vperm.slane %v5339_v47, 6 }
  0x98   :  { %4843 = vmatpush.msk.msrb.mxu3 %vm118_vm3, %v79_v24  ;;  %6724 = vst [vmem:[#allocation10_spill] sm:$0xff] %v5510_v15 }
  0x99   :  { %4842 = vmatmul.msk.f32.vlgmr.msrb.gmra.mxu2 %vm114_vm4, %v45_v26  ;;  %4844 = vmatmul.msk.f32.vlgmr.msrb.gmra.mxu3 %vm114_vm4, %v45_v26 }
  0x9b   :  { %4838 = vmatmul.msk.f32.vlgmr.msrb.gmra.mxu0 %vm114_vm4, %v45_v26  ;;  %4840 = vmatmul.msk.f32.vlgmr.msrb.gmra.mxu1 %vm114_vm4, %v45_v26 }
  0x9c   :  { %v320_v29 = vpop.permute.xlu0 %319 }
  0x9d   :  { %v325_v31 = vsel %vm323_vm2, %v5324_v40, %v320_v29  ;;  %v326_v32 = vsel %vm323_vm2, %v320_v29, %v322_v25  ;;  %v5450_v40 = vperm.slane %v5344_v48, 3  ;;  %v4872_v29 = vld [vmem:[%s6665_s2 + $0x28] sm:$0xff] }
  0x9e   :  { %v338_v33 = vmul.f32 %v5422_v27, %v325_v31  ;;  %v339_v34 = vmul.f32 %v5425_v28, %v326_v32  ;;  %v453_v35 = vpop.permute.xlu1 %452  ;;  %v821_v1 = vpop.permute.xlu2 %820  ;;  %v5537_v32 = vperm.slane %v5329_v45, 6 }
  0x9f   :  { %v459_v38 = vsel %vm456_vm5, %v453_v35, %v5352_v51  ;;  %6717 = vst [vmem:[#allocation3_spill] sm:$0xff] %v5450_v40  ;;  %v828_v16 = vsel %vm826_vm7, %v821_v1, %v5440_v37 }
  0xa0   :  { %4850 = vmatpush.msk.msra.mxu2 %vm118_vm3, %v338_v33  ;;  %4852 = vmatpush.msk.msra.mxu3 %vm118_vm3, %v339_v34  ;;  %v472_v39 = vmul.f32 %v5430_v30, %v459_v38  ;;  %v840_v25 = vmul.f32 %v5510_v15, %v828_v16  ;;  %6727 = vst [vmem:[#allocation13_spill] sm:$0xff] %v5537_v32 }
  0xa1   :  { %4851 = vmatmul.msk.f32.vlgmr.msra.gmra.mxu2 %vm114_vm4, %v4845_v36  ;;  %4853 = vmatmul.msk.f32.vlgmr.msra.gmra.mxu3 %vm114_vm4, %v4845_v36 }
  0xa2   :  { %4861 = vmatpush.msk.msrb.mxu3 %vm118_vm3, %v472_v39 }
  0xa3   :  { %4847 = vmatmul.msk.f32.vlgmr.msra.gmra.mxu0 %vm114_vm4, %v4845_v36  ;;  %4849 = vmatmul.msk.f32.vlgmr.msra.gmra.mxu1 %vm114_vm4, %v4845_v36  ;;  %v5548_v36 = vld [vmem:[%s6664_s1 + $0x38] ss:$0 sm:$0xff] }
  0xa4   :  { %v451_v43 = vpop.permute.xlu0 %450  ;;  %4870 = vmatpush.msk.msra.mxu3 %vm118_vm3, %v5296_v21  ;;  %v5476_v21 = vperm.slane %v5334_v46, 3  ;;  %6729 = vst [vmem:[#allocation15_spill] sm:$0xff] %v5548_v36 }
  0xa5   :  { %v458_v51 = vsel %vm456_vm5, %v451_v43, %v453_v35  ;;  %v5543_v35 = vperm.slane %v5329_v45, 7 }
  0xa6   :  { %v690_v55 = vpop.permute.xlu1 %689  ;;  %v471_v58 = vmul.f32 %v5450_v40, %v458_v51  ;;  %6720 = vst [vmem:[#allocation6_spill] sm:$0xff] %v5476_v21  ;;  %v5498_v11 = vpop.permute.xlu2 %951 }
  0xa7   :  { %v696_v63 = vsel %vm693_vm6, %v690_v55, %v692_v22  ;;  %6728 = vst [vmem:[#allocation14_spill] sm:$0xff] %v5543_v35 }
  0xa8   :  { %v708_v0 = vmul.f32 %v5460_v44, %v696_v63  ;;  %4859 = vmatpush.msk.msrb.mxu2 %vm118_vm3, %v471_v58  ;;  %v4881_v58 = vld [vmem:[%s6665_s2 + $0x30] sm:$0xff] }
  0xa9   :  { %4860 = vmatmul.msk.f32.vlgmr.msrb.gmra.mxu2 %vm114_vm4, %v4854_v62  ;;  %4862 = vmatmul.msk.f32.vlgmr.msrb.gmra.mxu3 %vm114_vm4, %v4854_v62 }
  0xaa   :  { %4868 = vmatpush.msk.msra.mxu2 %vm118_vm3, %v5294_v20  ;;  %4879 = vmatpush.msk.msrb.mxu3 %vm118_vm3, %v709_v59  ;;  %v4863_v20 = vld [vmem:[%s6665_s2 + $0x20] sm:$0xff] }
  0xac   :  { %4877 = vmatpush.msk.msrb.mxu2 %vm118_vm3, %v708_v0  ;;  %v449_v3 = vpop.permute.xlu0 %448  ;;  %v5575_v0 = vld [vmem:[%s6664_s1 + $0x30] ss:$0 sm:$0xff] }
  0xad   :  { %v457_v4 = vsel %vm456_vm5, %v449_v3, %v451_v43  ;;  %v464_v5 = vsel %vm456_vm5, 0.0, %v449_v3  ;;  %6731 = vst [vmem:[#allocation17_spill] sm:$0xff] %v5575_v0 }
  0xae   :  { %v469_v7 = vmul.f32 %v5476_v21, %v464_v5  ;;  %v470_v8 = vmul.f32 %v5479_v2, %v457_v4  ;;  %v688_v9 = vpop.permute.xlu1 %687  ;;  %v1091_v33 = vpop.permute.xlu2 %1090 }
  0xaf   :  { %v695_v10 = vsel %vm693_vm6, %v688_v9, %v690_v55  ;;  %v1100_v42 = vsel %vm1092_vm8, %v1091_v33, 0.0 }
  0xb0   :  { %4855 = vmatpush.msk.msrb.mxu0 %vm118_vm3, %v469_v7  ;;  %4857 = vmatpush.msk.msrb.mxu1 %vm118_vm3, %v470_v8  ;;  %v707_v12 = vmul.f32 %v5488_v6, %v695_v10  ;;  %v5590_v8 = vperm.slane %v5334_v46, 7 }
  0xb1   :  { %4856 = vmatmul.msk.f32.vlgmr.msrb.gmra.mxu0 %vm114_vm4, %v4854_v62  ;;  %4858 = vmatmul.msk.f32.vlgmr.msrb.gmra.mxu1 %vm114_vm4, %v4854_v62  ;;  %v5568_v62 = vperm.slane %v5344_v48, 7 }
  0xb2   :  { %4866 = vmatpush.msk.msra.mxu1 %vm118_vm3, %v5289_v19  ;;  %4869 = vmatmul.msk.f32.vlgmr.msra.gmra.mxu2 %vm114_vm4, %v4863_v20  ;;  %v5519_v19 = vperm.slane %v5334_v46, 6  ;;  %6732 = vst [vmem:[#allocation18_spill] sm:$0xff] %v5590_v8 }
  0xb3   :  { %4871 = vmatmul.msk.f32.vlgmr.msra.gmra.mxu3 %vm114_vm4, %v4863_v20  ;;  %4864 = vmatpush.msk.msra.mxu0 %vm118_vm3, %v5287_v18  ;;  %v5534_v18 = vperm.slane %v5344_v48, 6  ;;  %6730 = vst [vmem:[#allocation16_spill] sm:$0xff] %v5568_v62  ;;  %v4890_v48 = vld [vmem:[%s6665_s2 + $0x38] sm:$0xff] }
  0xb4   :  { %4875 = vmatpush.msk.msrb.mxu1 %vm118_vm3, %v707_v12  ;;  %v686_v17 = vpop.permute.xlu0 %685  ;;  %6725 = vst [vmem:[#allocation11_spill] sm:$0xff] %v5519_v19 }
  0xb5   :  { %v694_v22 = vsel %vm693_vm6, %v686_v17, %v688_v9  ;;  %6726 = vst [vmem:[#allocation12_spill] sm:$0xff] %v5534_v18  ;;  %v5593_v9 = vperm.slane %v5339_v47, 7 }
  0xb6   :  { %v706_v23 = vmul.f32 %v5507_v13, %v694_v22  ;;  %v819_v24 = vpop.permute.xlu1 %818 }
  0xb7   :  { %v827_v26 = vsel %vm826_vm7, %v819_v24, %v821_v1  ;;  %6733 = vst [vmem:[#allocation19_spill] sm:$0xff] %v5593_v9 }
  0xb8   :  { %v839_v31 = vmul.f32 %v5519_v19, %v827_v26  ;;  %4873 = vmatpush.msk.msrb.mxu0 %vm118_vm3, %v706_v23  ;;  %v4899_v23 = vld [vmem:[%s6665_s2 + $0x40] sm:$0xff] }
  0xb9   :  { %4865 = vmatmul.msk.f32.vlgmr.msra.gmra.mxu0 %vm114_vm4, %v4863_v20  ;;  %4867 = vmatmul.msk.f32.vlgmr.msra.gmra.mxu1 %vm114_vm4, %v4863_v20  ;;  %v5600_v20 = vld [vmem:[%s6664_s1 + $0x28] ss:$0 sm:$0xff] }
  0xba   :  { %4878 = vmatmul.msk.f32.vlgmr.msrb.gmra.mxu2 %vm114_vm4, %v4872_v29  ;;  %4884 = vmatpush.msk.msra.mxu1 %vm118_vm3, %v840_v25  ;;  %6734 = vst [vmem:[#allocation20_spill] sm:$0xff] %v5600_v20 }
  0xbb   :  { %4880 = vmatmul.msk.f32.vlgmr.msrb.gmra.mxu3 %vm114_vm4, %v4872_v29  ;;  %4882 = vmatpush.msk.msra.mxu0 %vm118_vm3, %v839_v31 }
  0xbc   :  { %v825_v34 = vpop.permute.xlu0 %824 }
  0xbd   :  { %v829_v38 = vsel %vm826_vm7, %v5440_v37, %v825_v34  ;;  %v834_v39 = vsel %vm826_vm7, %v825_v34, 0.0  ;;  %v1108_v37 = vmul.f32 %v5548_v36, %v1100_v42 }
  0xbe   :  { %v841_v43 = vmul.f32 %v5534_v18, %v829_v38  ;;  %v842_v51 = vmul.f32 %v5537_v32, %v834_v39  ;;  %v958_v55 = vpop.permute.xlu1 %957 }
  0xbf   :  { %v967_v45 = vsel %vm959_vm9, %v958_v55, 0.0 }
  0xc0   :  { %v975_v59 = vmul.f32 %v5543_v35, %v967_v45  ;;  %4886 = vmatpush.msk.msra.mxu2 %vm118_vm3, %v841_v43  ;;  %4888 = vmatpush.msk.msra.mxu3 %vm118_vm3, %v842_v51 }
  0xc1   :  { %4874 = vmatmul.msk.f32.vlgmr.msrb.gmra.mxu0 %vm114_vm4, %v4872_v29  ;;  %4876 = vmatmul.msk.f32.vlgmr.msrb.gmra.mxu1 %vm114_vm4, %v4872_v29 }
  0xc2   :  { %4887 = vmatmul.msk.f32.vlgmr.msra.gmra.mxu2 %vm114_vm4, %v4881_v58  ;;  %4897 = vmatpush.msk.msrb.mxu3 %vm118_vm3, %v975_v59 }
  0xc3   :  { %4889 = vmatmul.msk.f32.vlgmr.msra.gmra.mxu3 %vm114_vm4, %v4881_v58 }
  0xc4   :  { %v956_v63 = vpop.permute.xlu0 %955  ;;  %4906 = vmatpush.msk.msra.mxu3 %vm118_vm3, %v1108_v37 }
  0xc5   :  { %v962_v1 = vsel %vm959_vm9, %v956_v63, %v958_v55 }
  0xc6   :  { %v974_v3 = vmul.f32 %v5568_v62, %v962_v1  ;;  %v1089_v4 = vpop.permute.xlu1 %1088 }
  0xc7   :  { %v1095_v5 = vsel %vm1092_vm8, %v1089_v4, %v1091_v33 }
  0xc8   :  { %4895 = vmatpush.msk.msrb.mxu2 %vm118_vm3, %v974_v3  ;;  %v1107_v7 = vmul.f32 %v5575_v0, %v1095_v5 }
  0xc9   :  { %4883 = vmatmul.msk.f32.vlgmr.msra.gmra.mxu0 %vm114_vm4, %v4881_v58  ;;  %4885 = vmatmul.msk.f32.vlgmr.msra.gmra.mxu1 %vm114_vm4, %v4881_v58 }
  0xca   :  { %4896 = vmatmul.msk.f32.vlgmr.msrb.gmra.mxu2 %vm114_vm4, %v4890_v48 }
  0xcb   :  { %4898 = vmatmul.msk.f32.vlgmr.msrb.gmra.mxu3 %vm114_vm4, %v4890_v48  ;;  %4904 = vmatpush.msk.msra.mxu2 %vm118_vm3, %v1107_v7 }
  0xcc   :  { %v954_v10 = vpop.permute.xlu0 %953 }
  0xcd   :  { %v960_v12 = vsel %vm959_vm9, %v5498_v11, %v954_v10  ;;  %v961_v16 = vsel %vm959_vm9, %v954_v10, %v956_v63  ;;  %v5621_v11 = vld [vmem:[%s6664_s1 + $0x20] ss:$0 sm:$0xff] }
  0xce   :  { %v972_v46 = vmul.f32 %v5590_v8, %v960_v12  ;;  %v973_v47 = vmul.f32 %v5593_v9, %v961_v16  ;;  %v1087_v17 = vpop.permute.xlu1 %1086  ;;  %6735 = vst [vmem:[#allocation21_spill] sm:$0xff] %v5621_v11 }
  0xcf   :  { %v1094_v22 = vsel %vm1092_vm8, %v1087_v17, %v1089_v4 }
  0xd0   :  { %v1106_v24 = vmul.f32 %v5600_v20, %v1094_v22  ;;  %4891 = vmatpush.msk.msrb.mxu0 %vm118_vm3, %v972_v46  ;;  %4893 = vmatpush.msk.msrb.mxu1 %vm118_vm3, %v973_v47 }
  0xd1   :  { %4892 = vmatmul.msk.f32.vlgmr.msrb.gmra.mxu0 %vm114_vm4, %v4890_v48  ;;  %4894 = vmatmul.msk.f32.vlgmr.msrb.gmra.mxu1 %vm114_vm4, %v4890_v48 }
  0xd2   :  { %4902 = vmatpush.msk.msra.mxu1 %vm118_vm3, %v1106_v24  ;;  %4905 = vmatmul.msk.f32.vlgmr.msra.gmra.mxu2 %vm114_vm4, %v4899_v23 }
  0xd3   :  { %4907 = vmatmul.msk.f32.vlgmr.msra.gmra.mxu3 %vm114_vm4, %v4899_v23 }
  0xd4   :  { %v1085_v25 = vpop.permute.xlu0 %1084 }
  0xd5   :  { %v1093_v26 = vsel %vm1092_vm8, %v1085_v25, %v1087_v17 }
  0xd6   :  { %v1105_v29 = vmul.f32 %v5621_v11, %v1093_v26 }
  0xd8   :  { %4900 = vmatpush.msk.msra.mxu0 %vm118_vm3, %v1105_v29 }
  0xd9   :  { %4901 = vmatmul.msk.f32.vlgmr.msra.gmra.mxu0 %vm114_vm4, %v4899_v23  ;;  %4903 = vmatmul.msk.f32.vlgmr.msra.gmra.mxu1 %vm114_vm4, %v4899_v23 }
 0x110   :  { %v148_v31 = vpop.f32.mrf.mxu0  ;;  %v168_v33 = vpop.f32.mrf.mxu1 }
 0x114   :  { %v188_v34 = vpop.f32.mrf.mxu2  ;;  %v208_v38 = vpop.f32.mrf.mxu3 }
 0x118   :  { %v243_v39 = vpop.f32.mrf.mxu0  ;;  %v263_v42 = vpop.f32.mrf.mxu1 }
 0x119   :  { %v244_v24 = vadd.f32 %v243_v39, %v148_v31  ;;  %v264_v25 = vadd.f32 %v263_v42, %v168_v33 }
 0x11c   :  { %v283_v43 = vpop.f32.mrf.mxu2  ;;  %v303_v51 = vpop.f32.mrf.mxu3 }
 0x11d   :  { %v284_v29 = vadd.f32 %v283_v43, %v188_v34  ;;  %v304_v35 = vadd.f32 %v303_v51, %v208_v38 }
 0x120   :  { %v372_v58 = vpop.f32.mrf.mxu0  ;;  %v392_v59 = vpop.f32.mrf.mxu1 }
 0x121   :  { %v435_v26 = vadd.f32 %v372_v58, %v244_v24  ;;  %v436_v20 = vadd.f32 %v392_v59, %v264_v25 }
 0x124   :  { %v412_v55 = vpop.f32.mrf.mxu2  ;;  %v432_v45 = vpop.f32.mrf.mxu3 }
 0x125   :  { %v437_v62 = vadd.f32 %v412_v55, %v284_v29  ;;  %v438_v6 = vadd.f32 %v432_v45, %v304_v35 }
 0x12c   :  { %v545_v37 = vpop.f32.mrf.mxu2  ;;  %v565_v63 = vpop.f32.mrf.mxu3 }
 0x12d   :  { %v570_v13 = vadd.f32 %v545_v37, %v437_v62  ;;  %v571_v30 = vadd.f32 %v565_v63, %v438_v6  ;;  %v5200_v37 = vmov 0  }
 0x12e   :  { %v505_v1 = vpop.f32.mrf.mxu0  ;;  %v525_v3 = vpop.f32.mrf.mxu1  ;;  %5164 = vset.pattern.permute.xlu1 %v5200_v37  ;;  %5165 = vset.pattern.permute.xlu2 %v5200_v37 }
 0x12f   :  { %v568_v11 = vadd.f32 %v505_v1, %v435_v26  ;;  %v569_v36 = vadd.f32 %v525_v3, %v436_v20  ;;  %5166 = vset.pattern.permute.xlu0 %v5200_v37 }
 0x135   :  { %v649_v4 = vpop.f32.mrf.mxu2 }
 0x136   :  { %v669_v48 = vpop.f32.mrf.mxu3  ;;  %v609_v5 = vpop.f32.mrf.mxu0  ;;  %v674_v40 = vadd.f32 %v649_v4, %v570_v13 }
 0x137   :  { %v629_v7 = vpop.f32.mrf.mxu1  ;;  %v672_v8 = vadd.f32 %v609_v5, %v568_v11  ;;  %v675_v39 = vadd.f32 %v669_v48, %v571_v30 }
 0x138   :  { %v673_v32 = vadd.f32 %v629_v7, %v569_v36 }
 0x13d   :  { %v782_v10 = vpop.f32.mrf.mxu2 }
 0x13e   :  { %v802_v12 = vpop.f32.mrf.mxu3  ;;  %v742_v16 = vpop.f32.mrf.mxu0  ;;  %v807_v34 = vadd.f32 %v782_v10, %v674_v40  ;;  %v5199_v40 = vmov 512.0  }
 0x13f   :  { %v762_v46 = vpop.f32.mrf.mxu1  ;;  %v805_v18 = vadd.f32 %v742_v16, %v672_v8  ;;  %v808_v58 = vadd.f32 %v802_v12, %v675_v39  ;;  %5171 = vrcp.f32 %v5199_v40 }
 0x140   :  { %v806_v31 = vadd.f32 %v762_v46, %v673_v32 }
 0x145   :  { %v915_v47 = vpop.f32.mrf.mxu2 }
 0x146   :  { %v935_v17 = vpop.f32.mrf.mxu3  ;;  %v875_v22 = vpop.f32.mrf.mxu0  ;;  %v940_v38 = vadd.f32 %v915_v47, %v807_v34 }
 0x147   :  { %v895_v23 = vpop.f32.mrf.mxu1  ;;  %v938_v33 = vadd.f32 %v875_v22, %v805_v18  ;;  %v941_v1 = vadd.f32 %v935_v17, %v808_v58 }
 0x148   :  { %v939_v42 = vadd.f32 %v895_v23, %v806_v31 }
 0x14d   :  { %v1048_v0 = vpop.f32.mrf.mxu2 }
 0x14e   :  { %v1008_v19 = vpop.f32.mrf.mxu0  ;;  %v1068_v9 = vpop.f32.mrf.mxu3  ;;  %v1073_v35 = vadd.f32 %v1048_v0, %v940_v38 }
 0x14f   :  { %v1028_v15 = vpop.f32.mrf.mxu1  ;;  %v1071_v43 = vadd.f32 %v1008_v19, %v938_v33  ;;  %v1074_v8 = vadd.f32 %v1068_v9, %v941_v1  ;;  %v5172_v19 = vpop.eup %5171  ;;  %v1209_v9 = vld [vmem:[%s6667_s4] sm:$0xff] }
 0x150   :  { %v1072_v51 = vadd.f32 %v1028_v15, %v939_v42  ;;  %v1208_v15 = vld [vmem:[%s6666_s3] sm:$0xff]  ;;  %v1216_v45 = vmul.f32 512.0, %v5172_v19  ;;  %vm1220_vm10 = vweird.f32 %v5172_v19 }
 0x151   :  { %1254 = vperm.xlu1 %5164, %v1208_v15  }
 0x152   :  { %v1217_v0 = vsub.f32 1.0, %v1216_v45 }
 0x154   :  { %v1218_v63 = vmul.f32 %v5172_v19, %v1217_v0 }
 0x155   :  { %v1181_v55 = vpop.f32.mrf.mxu2 }
 0x156   :  { %v1141_v20 = vpop.f32.mrf.mxu0  ;;  %v1201_v36 = vpop.f32.mrf.mxu3  ;;  %v1206_v6 = vadd.f32 %v1181_v55, %v1073_v35  ;;  %v1219_v3 = vadd.f32 %v5172_v19, %v1218_v63 }
 0x157   :  { %v1204_v11 = vadd.f32 %v1141_v20, %v1071_v43  ;;  %v1161_v59 = vpop.f32.mrf.mxu1  ;;  %v1207_v32 = vadd.f32 %v1201_v36, %v1074_v8 }
 0x158   :  { %v1205_v62 = vadd.f32 %v1161_v59, %v1072_v51  ;;  %v5635_v4 = vsel %vm1220_vm10, %v5172_v19, %v1219_v3 }
 0x159   :  { %1263 = vperm.xlu1 %5164, %v1209_v9  }
 0x15a   :  { %v1210_v13 = vadd.f32 %v1205_v62, %v1204_v11 }
 0x15c   :  { %v1211_v18 = vadd.f32 %v1210_v13, %v1206_v6 }
 0x15e   :  { %v1212_v30 = vadd.f32 %v1211_v18, %v1207_v32 }
 0x160   :  { %1213 = vadd.xlane.f32.xlu2 %v1212_v30 }
 0x1c3   :  { %v1255_v43 = vpop.permute.xlu1 %1254 }
 0x1cb   :  { %v1264_v8 = vpop.permute.xlu1 %1263 }
 0x1d3   :  { %v1214_v48 = vpop.xlane.xlu2 %1213 }
 0x1d4   :  { %v1222_v5 = vmul.f32 %v5635_v4, %v1214_v48 }
 0x1d6   :  { %v1223_v7 = vsub.f32 %v1204_v11, %v1222_v5  ;;  %v1224_v10 = vsub.f32 %v1205_v62, %v1222_v5  ;;  %v1225_v12 = vsub.f32 %v1206_v6, %v1222_v5  ;;  %v1226_v16 = vsub.f32 %v1207_v32, %v1222_v5 }
 0x1d8   :  { %v1227_v46 = vmul.f32 %v1223_v7, %v1223_v7  ;;  %v1228_v47 = vmul.f32 %v1224_v10, %v1224_v10  ;;  %v1229_v17 = vmul.f32 %v1225_v12, %v1225_v12  ;;  %v1230_v23 = vmul.f32 %v1226_v16, %v1226_v16 }
 0x1da   :  { %v1231_v22 = vadd.f32 %v1228_v47, %v1227_v46 }
 0x1dc   :  { %v1232_v24 = vadd.f32 %v1231_v22, %v1229_v17  ;;  %v4908_v17 = vld [vmem:[%s6668_s5 + $0x2] sm:$0x3] }
 0x1de   :  { %v1233_v25 = vadd.f32 %v1232_v24, %v1230_v23 }
 0x1e0   :  { %1234 = vadd.xlane.f32.xlu0 %v1233_v25 }
 0x253   :  { %v1235_v26 = vpop.xlane.xlu0 %1234 }
 0x254   :  { %v1236_v29 = vmul.f32 %v1235_v26, %v5635_v4 }
 0x256   :  { %v1237_v31 = vadd.f32 1e-05, %v1236_v29 }
 0x258   :  { %5173 = vrsqrt.f32 %v1237_v31  ;;  %vm1244_vm12 = vweird.f32 %v1237_v31 }
 0x25e   :  { %v5174_v33 = vpop.eup %5173 }
 0x25f   :  { %v1239_v39 = vmul.f32 %v5174_v33, %v1237_v31  ;;  %vm1245_vm11 = vweird.f32 %v5174_v33 }
 0x260   :  { %vm1246_vm13 = vmor %vm1244_vm12, %vm1245_vm11 }
 0x261   :  { %v1240_v34 = vmul.f32 %v5174_v33, %v1239_v39 }
 0x263   :  { %v1241_v42 = vmul.f32 0.5, %v1240_v34 }
 0x265   :  { %v1242_v58 = vsub.f32 1.5, %v1241_v42 }
 0x267   :  { %v1243_v38 = vmul.f32 %v5174_v33, %v1242_v58 }
 0x269   :  { %v1247_v51 = vsel %vm1246_vm13, %v5174_v33, %v1243_v38 }
 0x26a   :  { %v1248_v20 = vmul.f32 %v1247_v51, %v1223_v7  ;;  %v1249_v55 = vmul.f32 %v1247_v51, %v1224_v10  ;;  %v1250_v11 = vmul.f32 %v1247_v51, %v1225_v12  ;;  %v1251_v59 = vmul.f32 %v1247_v51, %v1226_v16 }
 0x26c   :  { %v1257_v1 = vmul.f32 %v1255_v43, %v1248_v20  ;;  %v1258_v35 = vmul.f32 %v1255_v43, %v1249_v55  ;;  %v1259_v62 = vmul.f32 %v1255_v43, %v1250_v11  ;;  %v1260_v36 = vmul.f32 %v1255_v43, %v1251_v59 }
 0x26e   :  { %v1266_v6 = vadd.f32 %v1264_v8, %v1257_v1  ;;  %v1268_v13 = vadd.f32 %v1264_v8, %v1259_v62  ;;  %v1269_v32 = vadd.f32 %v1264_v8, %v1260_v36  ;;  %v1267_v18 = vadd.f32 %v1264_v8, %v1258_v35  ;;  %v1274_v62 = vld [vmem:[%s6668_s5] sm:$0x3] }
 0x270   :  { %v5639_v30 = vmax.f32 %v1266_v6, 0.0  ;;  %v5641_v40 = vmax.f32 %v1268_v13, 0.0  ;;  %v5643_v19 = vmax.f32 %v1269_v32, 0.0  ;;  %v5651_v15 = vmax.f32 %v1267_v18, 0.0  ;;  %v4925_v13 = vld [vmem:[%s6668_s5 + $0x4] sm:$0x3] }
 0x272   :  { %6736 = vst [vmem:[#allocation22_spill] sm:$0xff] %v5639_v30  ;;  %1864 = vrot.lane.b32.xlu2 %v5643_v19, %s5195_s20  ;;  %1862 = vrot.lane.b32.xlu1 %v5641_v40, %s5195_s20  ;;  %v5654_v45 = vrot.slane %v5651_v15, 4  ;;  %v5657_v37 = vrot.slane %v5639_v30, 4  ;;  %v5660_v0 = vrot.slane %v5641_v40, 4  ;;  %v5675_v9 = vrot.slane %v5643_v19, 4 }
 0x273   :  { %6737 = vst [vmem:[#allocation23_spill] sm:$0xff] %v5641_v40  ;;  %1858 = vrot.lane.b32.xlu0 %v5639_v30, %s5195_s20  ;;  %v5714_v63 = vrot.slane %v5651_v15, 6  ;;  %v5717_v3 = vrot.slane %v5641_v40, 6  ;;  %v5726_v48 = vrot.slane %v5639_v30, 6  ;;  %v5735_v5 = vrot.slane %v5643_v19, 6 }
 0x274   :  { %6738 = vst [vmem:[#allocation24_spill] sm:$0xff] %v5643_v19 }
 0x275   :  { %6739 = vst [vmem:[#allocation25_spill] sm:$0xff] %v5651_v15 }
 0x27a   :  { %1307 = vrot.lane.b32.xlu1 %v5654_v45, %s5192_s0  ;;  %1305 = vrot.lane.b32.xlu2 %v5657_v37, %s5192_s0 }
 0x27b   :  { %1287 = vrot.lane.b32.xlu0 %v5660_v0, %s5191_s17 }
 0x282   :  { %1309 = vrot.lane.b32.xlu1 %v5660_v0, %s5192_s0  ;;  %1521 = vrot.lane.b32.xlu2 %v5654_v45, %s5193_s18 }
 0x283   :  { %1523 = vrot.lane.b32.xlu0 %v5660_v0, %s5193_s18 }
 0x28a   :  { %1311 = vrot.lane.b32.xlu1 %v5675_v9, %s5192_s0  ;;  %1519 = vrot.lane.b32.xlu2 %v5657_v37, %s5193_s18 }
 0x28b   :  { %1642 = vrot.lane.b32.xlu0 %v5654_v45, %s5194_s19 }
 0x292   :  { %1285 = vrot.lane.b32.xlu1 %v5654_v45, %s5191_s17  ;;  %1646 = vrot.lane.b32.xlu2 %v5675_v9, %s5194_s19 }
 0x293   :  { %1640 = vrot.lane.b32.xlu0 %v5657_v37, %s5194_s19 }
 0x29a   :  { %1289 = vrot.lane.b32.xlu1 %v5675_v9, %s5191_s17  ;;  %1987 = vrot.lane.b32.xlu2 %v5641_v40, %s5196_s21 }
 0x29b   :  { %1989 = vrot.lane.b32.xlu0 %v5643_v19, %s5196_s21 }
 0x2a2   :  { %1283 = vrot.lane.b32.xlu1 %v5657_v37, %s5191_s17  ;;  %1985 = vrot.lane.b32.xlu2 %v5651_v15, %s5196_s21 }
 0x2a3   :  { %2112 = vrot.lane.b32.xlu0 %v5641_v40, %s5197_s22 }
 0x2aa   :  { %1525 = vrot.lane.b32.xlu1 %v5675_v9, %s5193_s18  ;;  %2108 = vrot.lane.b32.xlu2 %v5639_v30, %s5197_s22 }
 0x2ab   :  { %2110 = vrot.lane.b32.xlu0 %v5651_v15, %s5197_s22 }
 0x2b2   :  { %1644 = vrot.lane.b32.xlu1 %v5660_v0, %s5194_s19  ;;  %2239 = vrot.lane.b32.xlu2 %v5643_v19, %s5198_s23 }
 0x2b3   :  { %2233 = vrot.lane.b32.xlu0 %v5639_v30, %s5198_s23 }
 0x2ba   :  { %1860 = vrot.lane.b32.xlu1 %v5651_v15, %s5195_s20  ;;  %2453 = vrot.lane.b32.xlu2 %v5714_v63, %s5192_s0 }
 0x2bb   :  { %2455 = vrot.lane.b32.xlu0 %v5717_v3, %s5192_s0 }
 0x2c2   :  { %1983 = vrot.lane.b32.xlu1 %v5639_v30, %s5196_s21  ;;  %2451 = vrot.lane.b32.xlu2 %v5726_v48, %s5192_s0 }
 0x2c3   :  { %2431 = vrot.lane.b32.xlu0 %v5714_v63, %s5191_s17 }
 0x2ca   :  { %2114 = vrot.lane.b32.xlu1 %v5643_v19, %s5197_s22  ;;  %2435 = vrot.lane.b32.xlu2 %v5735_v5, %s5191_s17  ;;  %v4970_v19 = vld [vmem:[%s6668_s5 + $0xe] sm:$0x3] }
 0x2cb   :  { %2429 = vrot.lane.b32.xlu0 %v5726_v48, %s5191_s17 }
 0x2cc   :  { %v5743_v7 = vpop.permute.xlu2 %1864 }
 0x2d2   :  { %2237 = vrot.lane.b32.xlu1 %v5641_v40, %s5198_s23  ;;  %2667 = vrot.lane.b32.xlu2 %v5717_v3, %s5193_s18 }
 0x2d3   :  { %2669 = vrot.lane.b32.xlu0 %v5735_v5, %s5193_s18 }
 0x2d4   :  { %v1306_v10 = vpop.permute.xlu2 %1305 }
 0x2d5   :  { %v1320_v12 = vsel %vm97_vm1, 0.0, %v1306_v10 }
 0x2d6   :  { %v1321_v16 = vmul.f32 %v1320_v12, %v5364_v56 }
 0x2d8   :  { %4909 = vmatpush.msk.msrb.mxu0 %vm1329_vm14, %v1321_v16 }
 0x2d9   :  { %4910 = vmatmul.msk.f32.vlgmr.msrb.gmra.mxu0 %vm1325_vm15, %v4908_v17 }
 0x2da   :  { %2235 = vrot.lane.b32.xlu1 %v5651_v15, %s5198_s23  ;;  %2786 = vrot.lane.b32.xlu2 %v5714_v63, %s5194_s19  ;;  %v6754_v15 = vld [vmem:[#allocation21_spill] sm:$0xff] }
 0x2db   :  { %2788 = vrot.lane.b32.xlu0 %v5717_v3, %s5194_s19 }
 0x2dc   :  { %v1522_v26 = vpop.permute.xlu2 %1521 }
 0x2e2   :  { %2457 = vrot.lane.b32.xlu1 %v5735_v5, %s5192_s0  ;;  %2784 = vrot.lane.b32.xlu2 %v5726_v48, %s5194_s19 }
 0x2e4   :  { %v5764_v46 = vpop.permute.xlu1 %1862  ;;  %v1520_v34 = vpop.permute.xlu2 %1519 }
 0x2e5   :  { %v5766_v47 = vpop.permute.xlu0 %1858  ;;  %v1527_v12 = vsel %vm323_vm2, %v1520_v34, %v1522_v26  ;;  %v1534_v16 = vsel %vm323_vm2, 0.0, %v1520_v34 }
 0x2ea   :  { %2433 = vrot.lane.b32.xlu1 %v5717_v3, %s5191_s17 }
 0x2ec   :  { %v1308_v22 = vpop.permute.xlu1 %1307  ;;  %v1647_v11 = vpop.permute.xlu2 %1646 }
 0x2ed   :  { %v1313_v23 = vsel %vm97_vm1, %v1306_v10, %v1308_v22  ;;  %v1288_v24 = vpop.permute.xlu0 %1287 }
 0x2ee   :  { %v1322_v25 = vmul.f32 %v1313_v23, %v5367_v57 }
 0x2f0   :  { %4911 = vmatpush.msk.msrb.mxu1 %vm1329_vm14, %v1322_v25 }
 0x2f1   :  { %4912 = vmatmul.msk.f32.vlgmr.msrb.gmra.mxu1 %vm1325_vm15, %v4908_v17 }
 0x2f2   :  { %2665 = vrot.lane.b32.xlu1 %v5714_v63, %s5193_s18 }
 0x2f4   :  { %v1310_v29 = vpop.permute.xlu1 %1309  ;;  %v1988_v32 = vpop.permute.xlu2 %1987 }
 0x2f5   :  { %v1314_v31 = vsel %vm97_vm1, %v1308_v22, %v1310_v29  ;;  %v1524_v33 = vpop.permute.xlu0 %1523 }
 0x2f6   :  { %v1323_v39 = vmul.f32 %v1314_v31, %v5347_v49  ;;  %v1528_v51 = vsel %vm323_vm2, %v1522_v26, %v1524_v33  ;;  %v1535_v31 = vmul.f32 %v1534_v16, %v5372_v60 }
 0x2f7   :  { %v1537_v1 = vmul.f32 %v1528_v51, %v5422_v27 }
 0x2f8   :  { %4913 = vmatpush.msk.msrb.mxu2 %vm1329_vm14, %v1323_v39  ;;  %v1536_v39 = vmul.f32 %v1527_v12, %v5375_v61 }
 0x2f9   :  { %4914 = vmatmul.msk.f32.vlgmr.msrb.gmra.mxu2 %vm1325_vm15, %v4908_v17 }
 0x2fa   :  { %2663 = vrot.lane.b32.xlu1 %v5726_v48, %s5193_s18 }
 0x2fc   :  { %v1312_v42 = vpop.permute.xlu1 %1311 }
 0x2fd   :  { %v1315_v43 = vsel %vm97_vm1, %v1310_v29, %v1312_v42  ;;  %v5787_v58 = vpop.permute.xlu0 %1642  ;;  %v5829_v42 = vpop.permute.xlu2 %1985 }
 0x2fe   :  { %v1324_v38 = vmul.f32 %v1315_v43, %v5350_v50 }
 0x300   :  { %4915 = vmatpush.msk.msrb.mxu3 %vm1329_vm14, %v1324_v38 }
 0x301   :  { %4916 = vmatmul.msk.f32.vlgmr.msrb.gmra.mxu3 %vm1325_vm15, %v4908_v17 }
 0x302   :  { %2790 = vrot.lane.b32.xlu1 %v5735_v5, %s5194_s19 }
 0x304   :  { %v1286_v20 = vpop.permute.xlu1 %1285 }
 0x305   :  { %v1292_v55 = vsel %vm63_vm0, %v1286_v20, %v1288_v24  ;;  %v1641_v35 = vpop.permute.xlu0 %1640 }
 0x306   :  { %v1301_v59 = vmul.f32 %v1292_v55, %v5361_v54  ;;  %v1648_v23 = vsel %vm456_vm5, %v1641_v35, %v5787_v58  ;;  %v1873_v55 = vsel %vm693_vm6, %v5743_v7, 0.0 }
 0x307   :  { %v1657_v34 = vmul.f32 %v1648_v23, %v5479_v2  ;;  %v6742_v23 = vld [vmem:[#allocation12_spill] sm:$0xff] }
 0x308   :  { %4921 = vmatpush.msk.msra.mxu2 %vm1329_vm14, %v1301_v59  ;;  %v2109_v59 = vpop.permute.xlu2 %2108 }
 0x309   :  { %4922 = vmatmul.msk.f32.vlgmr.msra.gmra.mxu2 %vm1325_vm15, %v1274_v62 }
 0x30a   :  { %4930 = vmatpush.msk.msrb.mxu2 %vm1329_vm14, %v1537_v1 }
 0x30c   :  { %v1290_v36 = vpop.permute.xlu1 %1289 }
 0x30d   :  { %v1293_v8 = vsel %vm63_vm0, %v1288_v24, %v1290_v36  ;;  %v1990_v18 = vpop.permute.xlu0 %1989  ;;  %v1655_v24 = vsel %vm456_vm5, 0.0, %v1641_v35 }
 0x30e   :  { %v1302_v6 = vmul.f32 %v1293_v8, %v5402_v14  ;;  %v1656_v26 = vmul.f32 %v1655_v24, %v5476_v21  ;;  %v1993_v12 = vsel %vm826_vm7, %v1988_v32, %v1990_v18  ;;  %v1998_v16 = vsel %vm826_vm7, %v1990_v18, 0.0  ;;  %v6743_v24 = vld [vmem:[#allocation13_spill] sm:$0xff] }
 0x30f   :  { %v5885_v18 = vmul.f32 %v1993_v12, %v6742_v23 }
 0x310   :  { %4923 = vmatpush.msk.msra.mxu3 %vm1329_vm14, %v1302_v6  ;;  %v6740_v6 = vld [vmem:[#allocation3_spill] sm:$0xff] }
 0x311   :  { %4924 = vmatmul.msk.f32.vlgmr.msra.gmra.mxu3 %vm1325_vm15, %v1274_v62  ;;  %4931 = vmatmul.msk.f32.vlgmr.msrb.gmra.mxu2 %vm1325_vm15, %v4925_v13 }
 0x314   :  { %v1284_v10 = vpop.permute.xlu1 %1283 }
 0x315   :  { %v1291_v17 = vsel %vm63_vm0, %v1284_v10, %v1286_v20  ;;  %v1298_v22 = vsel %vm63_vm0, 0.0, %v1284_v10  ;;  %v5833_v43 = vpop.permute.xlu0 %2112 }
 0x316   :  { %v1299_v25 = vmul.f32 %v1298_v22, %v5355_v52  ;;  %v1300_v29 = vmul.f32 %v1291_v17, %v5358_v53  ;;  %v1992_v17 = vsel %vm826_vm7, %v5829_v42, %v1988_v32 }
 0x318   :  { %4917 = vmatpush.msk.msra.mxu0 %vm1329_vm14, %v1299_v25  ;;  %4919 = vmatpush.msk.msra.mxu1 %vm1329_vm14, %v1300_v29  ;;  %v5888_v25 = vmul.f32 %v1998_v16, %v6743_v24  ;;  %v2240_v29 = vpop.permute.xlu2 %2239  ;;  %v4952_v16 = vld [vmem:[%s6668_s5 + $0xa] sm:$0x3] }
 0x319   :  { %4918 = vmatmul.msk.f32.vlgmr.msra.gmra.mxu0 %vm1325_vm15, %v1274_v62  ;;  %4920 = vmatmul.msk.f32.vlgmr.msra.gmra.mxu1 %vm1325_vm15, %v1274_v62 }
 0x31a   :  { %4926 = vmatpush.msk.msrb.mxu0 %vm1329_vm14, %v1535_v31  ;;  %4928 = vmatpush.msk.msrb.mxu1 %vm1329_vm14, %v1536_v39  ;;  %v6744_v31 = vld [vmem:[#allocation9_spill] sm:$0xff]  ;;  %v6745_v39 = vld [vmem:[#allocation8_spill] sm:$0xff] }
 0x31c   :  { %4935 = vmatpush.msk.msra.mxu0 %vm1329_vm14, %v1656_v26  ;;  %4937 = vmatpush.msk.msra.mxu1 %vm1329_vm14, %v1657_v34  ;;  %v1526_v38 = vpop.permute.xlu1 %1525  ;;  %v4943_v34 = vld [vmem:[%s6668_s5 + $0x8] sm:$0x3] }
 0x31d   :  { %v1529_v51 = vsel %vm323_vm2, %v1524_v33, %v1526_v38  ;;  %v1868_v33 = vsel %vm693_vm6, %v5764_v46, %v5743_v7  ;;  %v2111_v35 = vpop.permute.xlu0 %2110  ;;  %v6741_v7 = vld [vmem:[#allocation2_spill] sm:$0xff] }
 0x31e   :  { %v1538_v20 = vmul.f32 %v1529_v51, %v5425_v28  ;;  %v5859_v8 = vmul.f32 %v1868_v33, %v5460_v44  ;;  %v6746_v38 = vld [vmem:[#allocation10_spill] sm:$0xff]  ;;  %v2010_v33 = vrot.slane %v5888_v25, 4 }
 0x31f   :  { %v5904_v51 = vmul.f32 %v1992_v17, %v6746_v38 }
 0x320   :  { %4932 = vmatpush.msk.msrb.mxu3 %vm1329_vm14, %v1538_v20  ;;  %v2454_v17 = vpop.permute.xlu2 %2453 }
 0x321   :  { %4927 = vmatmul.msk.f32.vlgmr.msrb.gmra.mxu0 %vm1325_vm15, %v4925_v13  ;;  %4929 = vmatmul.msk.f32.vlgmr.msrb.gmra.mxu1 %vm1325_vm15, %v4925_v13 }
 0x322   :  { %4933 = vmatmul.msk.f32.vlgmr.msrb.gmra.mxu3 %vm1325_vm15, %v4925_v13  ;;  %4944 = vmatpush.msk.msrb.mxu0 %vm1329_vm14, %v5657_v37  ;;  %v5856_v37 = vmul.f32 %v1873_v55, %v5454_v41  ;;  %v2009_v55 = vrot.slane %v5885_v18, 4 }
 0x323   :  { %4946 = vmatpush.msk.msrb.mxu1 %vm1329_vm14, %v5654_v45  ;;  %v4934_v45 = vld [vmem:[%s6668_s5 + $0x6] sm:$0x3] }
 0x324   :  { %v1645_v1 = vpop.permute.xlu1 %1644 }
 0x325   :  { %v1649_v62 = vsel %vm456_vm5, %v5787_v58, %v1645_v1  ;;  %v1650_v36 = vsel %vm456_vm5, %v1645_v1, %v1647_v11  ;;  %v1885_v58 = vrot.slane %v5856_v37, 4  ;;  %v1884_v11 = vrot.slane %v5859_v8, 4  ;;  %v5906_v20 = vpop.permute.xlu0 %2233 }
 0x326   :  { %v1658_v13 = vmul.f32 %v1649_v62, %v6740_v6  ;;  %v1659_v10 = vmul.f32 %v1650_v36, %v6741_v7  ;;  %v2117_v1 = vsel %vm959_vm9, %v2111_v35, %v5833_v43  ;;  %v2008_v62 = vrot.slane %v5904_v51, 4 }
 0x327   :  { %v2116_v36 = vsel %vm959_vm9, %v2109_v59, %v2111_v35  ;;  %v6749_v59 = vld [vmem:[#allocation11_spill] sm:$0xff] }
 0x328   :  { %4939 = vmatpush.msk.msra.mxu2 %vm1329_vm14, %v1658_v13  ;;  %4941 = vmatpush.msk.msra.mxu3 %vm1329_vm14, %v1659_v10  ;;  %v6747_v10 = vld [vmem:[#allocation19_spill] sm:$0xff] }
 0x329   :  { %4936 = vmatmul.msk.f32.vlgmr.msra.gmra.mxu0 %vm1325_vm15, %v4934_v45  ;;  %4938 = vmatmul.msk.f32.vlgmr.msra.gmra.mxu1 %vm1325_vm15, %v4934_v45 }
 0x32a   :  { %4940 = vmatmul.msk.f32.vlgmr.msra.gmra.mxu2 %vm1325_vm15, %v4934_v45  ;;  %4942 = vmatmul.msk.f32.vlgmr.msra.gmra.mxu3 %vm1325_vm15, %v4934_v45  ;;  %v5925_v45 = vmul.f32 %v2117_v1, %v6747_v10 }
 0x32b   :  { %4948 = vmatpush.msk.msrb.mxu2 %vm1329_vm14, %v5660_v0  ;;  %4950 = vmatpush.msk.msrb.mxu3 %vm1329_vm14, %v5675_v9 }
 0x32c   :  { %v1861_v22 = vpop.permute.xlu1 %1860 }
 0x32d   :  { %4957 = vmatpush.msk.msra.mxu2 %vm1329_vm14, %v1884_v11  ;;  %4959 = vmatpush.msk.msra.mxu3 %vm1329_vm14, %v1885_v58  ;;  %v1866_v0 = vsel %vm693_vm6, %v5766_v47, %v1861_v22  ;;  %v1867_v9 = vsel %vm693_vm6, %v1861_v22, %v5764_v46  ;;  %v6748_v11 = vld [vmem:[#allocation18_spill] sm:$0xff] }
 0x32e   :  { %v5895_v32 = vmul.f32 %v1866_v0, %v6744_v31  ;;  %v5898_v26 = vmul.f32 %v1867_v9, %v6745_v39  ;;  %v5931_v12 = vmul.f32 %v2116_v36, %v6748_v11  ;;  %v2133_v0 = vrot.slane %v5925_v45, 4  ;;  %v5941_v9 = vpop.permute.xlu0 %2455 }
 0x330   :  { %v1882_v47 = vrot.slane %v5895_v32, 4  ;;  %v1883_v46 = vrot.slane %v5898_v26, 4 }
 0x331   :  { %4945 = vmatmul.msk.f32.vlgmr.msrb.gmra.mxu0 %vm1325_vm15, %v4943_v34  ;;  %4947 = vmatmul.msk.f32.vlgmr.msrb.gmra.mxu1 %vm1325_vm15, %v4943_v34 }
 0x332   :  { %4949 = vmatmul.msk.f32.vlgmr.msrb.gmra.mxu2 %vm1325_vm15, %v4943_v34  ;;  %4951 = vmatmul.msk.f32.vlgmr.msrb.gmra.mxu3 %vm1325_vm15, %v4943_v34  ;;  %v2248_v34 = vsel %vm1092_vm8, %v2240_v29, 0.0 }
 0x333   :  { %4966 = vmatpush.msk.msrb.mxu2 %vm1329_vm14, %v2009_v55  ;;  %4968 = vmatpush.msk.msrb.mxu3 %vm1329_vm14, %v2010_v33  ;;  %v6750_v33 = vld [vmem:[#allocation15_spill] sm:$0xff] }
 0x334   :  { %4953 = vmatpush.msk.msra.mxu0 %vm1329_vm14, %v1882_v47  ;;  %4955 = vmatpush.msk.msra.mxu1 %vm1329_vm14, %v1883_v46  ;;  %v1984_v13 = vpop.permute.xlu1 %1983  ;;  %v5956_v1 = vmul.f32 %v6750_v33, %v2248_v34 }
 0x335   :  { %v1991_v58 = vsel %vm826_vm7, %v1984_v13, %v5829_v42  ;;  %v2132_v42 = vrot.slane %v5931_v12, 4  ;;  %v6752_v13 = vld [vmem:[#allocation14_spill] sm:$0xff] }
 0x336   :  { %4964 = vmatpush.msk.msrb.mxu1 %vm1329_vm14, %v2008_v62  ;;  %v5934_v35 = vmul.f32 %v1991_v58, %v6749_v59  ;;  %v6751_v62 = vld [vmem:[#allocation16_spill] sm:$0xff]  ;;  %v2432_v34 = vpop.permute.xlu0 %2431 }
 0x338   :  { %v2007_v22 = vrot.slane %v5934_v35, 4 }
 0x339   :  { %4954 = vmatmul.msk.f32.vlgmr.msra.gmra.mxu0 %vm1325_vm15, %v4952_v16  ;;  %4956 = vmatmul.msk.f32.vlgmr.msra.gmra.mxu1 %vm1325_vm15, %v4952_v16 }
 0x33a   :  { %4958 = vmatmul.msk.f32.vlgmr.msra.gmra.mxu2 %vm1325_vm15, %v4952_v16  ;;  %4960 = vmatmul.msk.f32.vlgmr.msra.gmra.mxu3 %vm1325_vm15, %v4952_v16  ;;  %v4961_v16 = vld [vmem:[%s6668_s5 + $0xc] sm:$0x3] }
 0x33b   :  { %4973 = vmatpush.msk.msra.mxu1 %vm1329_vm14, %v2133_v0  ;;  %4962 = vmatpush.msk.msrb.mxu0 %vm1329_vm14, %v2007_v22 }
 0x33c   :  { %v2115_v47 = vpop.permute.xlu1 %2114 }
 0x33d   :  { %4971 = vmatpush.msk.msra.mxu0 %vm1329_vm14, %v2132_v42  ;;  %v2118_v46 = vsel %vm959_vm9, %v5833_v43, %v2115_v47  ;;  %v2123_v55 = vsel %vm959_vm9, %v2115_v47, 0.0  ;;  %v2260_v43 = vrot.slane %v5956_v1, 4  ;;  %v2452_v42 = vpop.permute.xlu2 %2451 }
 0x33e   :  { %v5959_v36 = vmul.f32 %v2118_v46, %v6751_v62  ;;  %v5962_v58 = vmul.f32 %v2123_v55, %v6752_v13  ;;  %v6753_v55 = vld [vmem:[#allocation17_spill] sm:$0xff] }
 0x340   :  { %v2134_v22 = vrot.slane %v5959_v36, 4  ;;  %v2135_v0 = vrot.slane %v5962_v58, 4 }
 0x341   :  { %4963 = vmatmul.msk.f32.vlgmr.msrb.gmra.mxu0 %vm1325_vm15, %v4961_v16  ;;  %4965 = vmatmul.msk.f32.vlgmr.msrb.gmra.mxu1 %vm1325_vm15, %v4961_v16 }
 0x342   :  { %4967 = vmatmul.msk.f32.vlgmr.msrb.gmra.mxu2 %vm1325_vm15, %v4961_v16  ;;  %4969 = vmatmul.msk.f32.vlgmr.msrb.gmra.mxu3 %vm1325_vm15, %v4961_v16  ;;  %v2460_v16 = vsel %vm97_vm1, %v2454_v17, %v5941_v9 }
 0x343   :  { %4975 = vmatpush.msk.msra.mxu2 %vm1329_vm14, %v2134_v22  ;;  %4977 = vmatpush.msk.msra.mxu3 %vm1329_vm14, %v2135_v0  ;;  %v2469_v22 = vmul.f32 %v2460_v16, %v5347_v49  ;;  %v6755_v16 = vld [vmem:[#allocation20_spill] sm:$0xff] }
 0x344   :  { %v2238_v47 = vpop.permute.xlu1 %2237 }
 0x345   :  { %4986 = vmatpush.msk.msrb.mxu3 %vm1329_vm14, %v2260_v43  ;;  %v2243_v46 = vsel %vm1092_vm8, %v2238_v47, %v2240_v29  ;;  %v2436_v29 = vpop.permute.xlu2 %2435  ;;  %v2430_v43 = vpop.permute.xlu0 %2429 }
 0x346   :  { %v5979_v33 = vmul.f32 %v6753_v55, %v2243_v46 }
 0x348   :  { %v2259_v40 = vrot.slane %v5979_v33, 4 }
 0x349   :  { %4972 = vmatmul.msk.f32.vlgmr.msra.gmra.mxu0 %vm1325_vm15, %v4970_v19  ;;  %4974 = vmatmul.msk.f32.vlgmr.msra.gmra.mxu1 %vm1325_vm15, %v4970_v19 }
 0x34a   :  { %4976 = vmatmul.msk.f32.vlgmr.msra.gmra.mxu2 %vm1325_vm15, %v4970_v19  ;;  %4978 = vmatmul.msk.f32.vlgmr.msra.gmra.mxu3 %vm1325_vm15, %v4970_v19  ;;  %v2459_v19 = vsel %vm97_vm1, %v2452_v42, %v2454_v17 }
 0x34b   :  { %4984 = vmatpush.msk.msrb.mxu2 %vm1329_vm14, %v2259_v40  ;;  %v4979_v40 = vld [vmem:[%s6668_s5 + $0x10] sm:$0x3] }
 0x34c   :  { %v2236_v0 = vpop.permute.xlu1 %2235 }
 0x34d   :  { %4994 = vmatpush.msk.msra.mxu2 %vm1329_vm14, %v2469_v22  ;;  %v2241_v46 = vsel %vm1092_vm8, %v5906_v20, %v2236_v0  ;;  %v2242_v55 = vsel %vm1092_vm8, %v2236_v0, %v2238_v47  ;;  %v2466_v22 = vsel %vm97_vm1, 0.0, %v2452_v42  ;;  %v2437_v47 = vsel %vm63_vm0, %v2430_v43, %v2432_v34 }
 0x34e   :  { %v5998_v30 = vmul.f32 %v6754_v15, %v2241_v46  ;;  %v6001_v10 = vmul.f32 %v6755_v16, %v2242_v55  ;;  %v2444_v15 = vsel %vm63_vm0, 0.0, %v2430_v43  ;;  %v2467_v0 = vmul.f32 %v2466_v22, %v5364_v56  ;;  %v2668_v16 = vpop.permute.xlu2 %2667 }
 0x34f   :  { %v2468_v46 = vmul.f32 %v2459_v19, %v5367_v57  ;;  %v2445_v17 = vmul.f32 %v2444_v15, %v5355_v52  ;;  %v2446_v42 = vmul.f32 %v2437_v47, %v5358_v53  ;;  %v2670_v19 = vpop.permute.xlu0 %2669 }
 0x350   :  { %v2257_v11 = vrot.slane %v5998_v30, 4  ;;  %v2258_v20 = vrot.slane %v6001_v10, 4 }
 0x352   :  { %4985 = vmatmul.msk.f32.vlgmr.msrb.gmra.mxu2 %vm1325_vm15, %v4979_v40  ;;  %4987 = vmatmul.msk.f32.vlgmr.msrb.gmra.mxu3 %vm1325_vm15, %v4979_v40 }
 0x353   :  { %4980 = vmatpush.msk.msrb.mxu0 %vm1329_vm14, %v2257_v11  ;;  %4982 = vmatpush.msk.msrb.mxu1 %vm1329_vm14, %v2258_v20 }
 0x354   :  { %4981 = vmatmul.msk.f32.vlgmr.msrb.gmra.mxu0 %vm1325_vm15, %v4979_v40  ;;  %4983 = vmatmul.msk.f32.vlgmr.msrb.gmra.mxu1 %vm1325_vm15, %v4979_v40  ;;  %v2458_v43 = vpop.permute.xlu1 %2457  ;;  %v4989_v40 = vld [vmem:[%s6668_s5 + $0x14] sm:$0x3] }
 0x355   :  { %4990 = vmatpush.msk.msra.mxu0 %vm1329_vm14, %v2467_v0  ;;  %4992 = vmatpush.msk.msra.mxu1 %vm1329_vm14, %v2468_v46  ;;  %v2461_v55 = vsel %vm97_vm1, %v5941_v9, %v2458_v43  ;;  %v2673_v9 = vsel %vm323_vm2, %v2668_v16, %v2670_v19 }
 0x356   :  { %v2470_v11 = vmul.f32 %v2461_v55, %v5350_v50  ;;  %v2682_v46 = vmul.f32 %v2673_v9, %v5425_v28 }
 0x357   :  { %4998 = vmatpush.msk.msrb.mxu0 %vm1329_vm14, %v2445_v17  ;;  %5000 = vmatpush.msk.msrb.mxu1 %vm1329_vm14, %v2446_v42  ;;  %v4988_v17 = vld [vmem:[%s6668_s5 + $0x12] sm:$0x3]  ;;  %v2787_v42 = vpop.permute.xlu2 %2786  ;;  %v2789_v43 = vpop.permute.xlu0 %2788 }
 0x358   :  { %4996 = vmatpush.msk.msra.mxu3 %vm1329_vm14, %v2470_v11 }
 0x35a   :  { %4995 = vmatmul.msk.f32.vlgmr.msra.gmra.mxu2 %vm1325_vm15, %v4989_v40  ;;  %4997 = vmatmul.msk.f32.vlgmr.msra.gmra.mxu3 %vm1325_vm15, %v4989_v40 }
 0x35c   :  { %4991 = vmatmul.msk.f32.vlgmr.msra.gmra.mxu0 %vm1325_vm15, %v4989_v40  ;;  %4993 = vmatmul.msk.f32.vlgmr.msra.gmra.mxu1 %vm1325_vm15, %v4989_v40  ;;  %v2434_v22 = vpop.permute.xlu1 %2433  ;;  %v5006_v40 = vld [vmem:[%s6668_s5 + $0x16] sm:$0x3] }
 0x35d   :  { %v2438_v20 = vsel %vm63_vm0, %v2432_v34, %v2434_v22  ;;  %v2439_v47 = vsel %vm63_vm0, %v2434_v22, %v2436_v29  ;;  %v2793_v34 = vsel %vm456_vm5, %v2787_v42, %v2789_v43 }
 0x35e   :  { %v2447_v15 = vmul.f32 %v2438_v20, %v5361_v54  ;;  %v2448_v0 = vmul.f32 %v2439_v47, %v5402_v14  ;;  %v2802_v19 = vmul.f32 %v2793_v34, %v6740_v6 }
 0x35f   :  { %v2785_v9 = vpop.permute.xlu2 %2784 }
 0x360   :  { %5002 = vmatpush.msk.msrb.mxu2 %vm1329_vm14, %v2447_v15  ;;  %5004 = vmatpush.msk.msrb.mxu3 %vm1329_vm14, %v2448_v0  ;;  %v2792_v22 = vsel %vm456_vm5, %v2785_v9, %v2787_v42  ;;  %v2799_v20 = vsel %vm456_vm5, 0.0, %v2785_v9  ;;  %v3004_v42 = vrot.slane %v5859_v8, 6  ;;  %v3002_v8 = vrot.slane %v5895_v32, 6 }
 0x361   :  { %v2801_v34 = vmul.f32 %v2792_v22, %v5479_v2  ;;  %v3005_v32 = vrot.slane %v5856_v37, 6  ;;  %v3206_v37 = vrot.slane %v5959_v36, 6  ;;  %v3207_v36 = vrot.slane %v5962_v58, 6  ;;  %v5051_v58 = vld [vmem:[%s6668_s5 + $0x20] sm:$0x3] }
 0x362   :  { %5013 = vmatpush.msk.msra.mxu3 %vm1329_vm14, %v2682_v46  ;;  %5003 = vmatmul.msk.f32.vlgmr.msrb.gmra.mxu2 %vm1325_vm15, %v4988_v17  ;;  %v3305_v9 = vrot.slane %v5998_v30, 6 }
 0x363   :  { %5005 = vmatmul.msk.f32.vlgmr.msrb.gmra.mxu3 %vm1325_vm15, %v4988_v17 }
 0x364   :  { %4999 = vmatmul.msk.f32.vlgmr.msrb.gmra.mxu0 %vm1325_vm15, %v4988_v17  ;;  %5001 = vmatmul.msk.f32.vlgmr.msrb.gmra.mxu1 %vm1325_vm15, %v4988_v17  ;;  %v2666_v29 = vpop.permute.xlu1 %2665  ;;  %v2800_v17 = vmul.f32 %v2799_v20, %v5476_v21  ;;  %v3308_v20 = vrot.slane %v5956_v1, 6 }
 0x365   :  { %v2672_v55 = vsel %vm323_vm2, %v2666_v29, %v2668_v16 }
 0x366   :  { %v2681_v11 = vmul.f32 %v2672_v55, %v5422_v27 }
 0x368   :  { %5011 = vmatpush.msk.msra.mxu2 %vm1329_vm14, %v2681_v11 }
 0x36a   :  { %5020 = vmatpush.msk.msrb.mxu2 %vm1329_vm14, %v2802_v19  ;;  %v5024_v19 = vld [vmem:[%s6668_s5 + $0x1a] sm:$0x3] }
 0x36b   :  { %5012 = vmatmul.msk.f32.vlgmr.msra.gmra.mxu2 %vm1325_vm15, %v5006_v40  ;;  %5014 = vmatmul.msk.f32.vlgmr.msra.gmra.mxu3 %vm1325_vm15, %v5006_v40 }
 0x36c   :  { %5029 = vmatpush.msk.msra.mxu2 %vm1329_vm14, %v5717_v3  ;;  %v2664_v16 = vpop.permute.xlu1 %2663  ;;  %v5015_v3 = vld [vmem:[%s6668_s5 + $0x18] sm:$0x3] }
 0x36d   :  { %v2671_v47 = vsel %vm323_vm2, %v2664_v16, %v2666_v29  ;;  %v2678_v15 = vsel %vm323_vm2, 0.0, %v2664_v16 }
 0x36e   :  { %v2679_v0 = vmul.f32 %v2678_v15, %v5372_v60  ;;  %v2680_v46 = vmul.f32 %v2671_v47, %v5375_v61  ;;  %v5060_v47 = vld [vmem:[%s6668_s5 + $0x22] sm:$0x3] }
 0x370   :  { %5007 = vmatpush.msk.msra.mxu0 %vm1329_vm14, %v2679_v0  ;;  %5009 = vmatpush.msk.msra.mxu1 %vm1329_vm14, %v2680_v46 }
 0x371   :  { %5008 = vmatmul.msk.f32.vlgmr.msra.gmra.mxu0 %vm1325_vm15, %v5006_v40  ;;  %5010 = vmatmul.msk.f32.vlgmr.msra.gmra.mxu1 %vm1325_vm15, %v5006_v40  ;;  %v3307_v40 = vrot.slane %v5979_v33, 6  ;;  %v3306_v33 = vrot.slane %v6001_v10, 6 }
 0x372   :  { %5016 = vmatpush.msk.msrb.mxu0 %vm1329_vm14, %v2800_v17  ;;  %5018 = vmatpush.msk.msrb.mxu1 %vm1329_vm14, %v2801_v34 }
 0x373   :  { %5021 = vmatmul.msk.f32.vlgmr.msrb.gmra.mxu2 %vm1325_vm15, %v5015_v3 }
 0x374   :  { %5025 = vmatpush.msk.msra.mxu0 %vm1329_vm14, %v5726_v48  ;;  %5038 = vmatpush.msk.msrb.mxu2 %vm1329_vm14, %v3004_v42  ;;  %v2791_v29 = vpop.permute.xlu1 %2790  ;;  %v3105_v48 = vrot.slane %v5885_v18, 6  ;;  %v3103_v18 = vrot.slane %v5934_v35, 6  ;;  %v3205_v35 = vrot.slane %v5925_v45, 6  ;;  %v1359_v45 = vpop.f32.mrf.mxu0 }
 0x375   :  { %5027 = vmatpush.msk.msra.mxu1 %vm1329_vm14, %v5714_v63  ;;  %v2794_v55 = vsel %vm456_vm5, %v2789_v43, %v2791_v29  ;;  %v3003_v63 = vrot.slane %v5898_v26, 6  ;;  %v5033_v26 = vld [vmem:[%s6668_s5 + $0x1c] sm:$0x3]  ;;  %v3104_v43 = vrot.slane %v5904_v51, 6  ;;  %v3204_v51 = vrot.slane %v5931_v12, 6  ;;  %v1379_v12 = vpop.f32.mrf.mxu1 }
 0x376   :  { %v2803_v11 = vmul.f32 %v2794_v55, %v6741_v7 }
 0x378   :  { %5022 = vmatpush.msk.msrb.mxu3 %vm1329_vm14, %v2803_v11 }
 0x379   :  { %5017 = vmatmul.msk.f32.vlgmr.msrb.gmra.mxu0 %vm1325_vm15, %v5015_v3  ;;  %5019 = vmatmul.msk.f32.vlgmr.msrb.gmra.mxu1 %vm1325_vm15, %v5015_v3 }
 0x37a   :  { %5023 = vmatmul.msk.f32.vlgmr.msrb.gmra.mxu3 %vm1325_vm15, %v5015_v3  ;;  %5034 = vmatpush.msk.msrb.mxu0 %vm1329_vm14, %v3002_v8 }
 0x37b   :  { %5030 = vmatmul.msk.f32.vlgmr.msra.gmra.mxu2 %vm1325_vm15, %v5024_v19  ;;  %5031 = vmatpush.msk.msra.mxu3 %vm1329_vm14, %v5735_v5  ;;  %v3106_v5 = vrot.slane %v5888_v25, 6  ;;  %v5042_v25 = vld [vmem:[%s6668_s5 + $0x1e] sm:$0x3] }
 0x37c   :  { %5036 = vmatpush.msk.msrb.mxu1 %vm1329_vm14, %v3003_v63  ;;  %5047 = vmatpush.msk.msra.mxu2 %vm1329_vm14, %v3105_v48  ;;  %v1399_v16 = vpop.f32.mrf.mxu2 }
 0x37d   :  { %5040 = vmatpush.msk.msrb.mxu3 %vm1329_vm14, %v3005_v32 }
 0x381   :  { %5026 = vmatmul.msk.f32.vlgmr.msra.gmra.mxu0 %vm1325_vm15, %v5024_v19  ;;  %5028 = vmatmul.msk.f32.vlgmr.msra.gmra.mxu1 %vm1325_vm15, %v5024_v19 }
 0x382   :  { %5032 = vmatmul.msk.f32.vlgmr.msra.gmra.mxu3 %vm1325_vm15, %v5024_v19  ;;  %5043 = vmatpush.msk.msra.mxu0 %vm1329_vm14, %v3103_v18 }
 0x383   :  { %5039 = vmatmul.msk.f32.vlgmr.msrb.gmra.mxu2 %vm1325_vm15, %v5033_v26  ;;  %5045 = vmatpush.msk.msra.mxu1 %vm1329_vm14, %v3104_v43 }
 0x384   :  { %5049 = vmatpush.msk.msra.mxu3 %vm1329_vm14, %v3106_v5  ;;  %5056 = vmatpush.msk.msrb.mxu2 %vm1329_vm14, %v3206_v37  ;;  %v1419_v22 = vpop.f32.mrf.mxu3 }
 0x389   :  { %5035 = vmatmul.msk.f32.vlgmr.msrb.gmra.mxu0 %vm1325_vm15, %v5033_v26  ;;  %5037 = vmatmul.msk.f32.vlgmr.msrb.gmra.mxu1 %vm1325_vm15, %v5033_v26 }
 0x38a   :  { %5041 = vmatmul.msk.f32.vlgmr.msrb.gmra.mxu3 %vm1325_vm15, %v5033_v26  ;;  %5052 = vmatpush.msk.msrb.mxu0 %vm1329_vm14, %v3204_v51 }
 0x38b   :  { %5048 = vmatmul.msk.f32.vlgmr.msra.gmra.mxu2 %vm1325_vm15, %v5042_v25  ;;  %5054 = vmatpush.msk.msrb.mxu1 %vm1329_vm14, %v3205_v35 }
 0x38c   :  { %5058 = vmatpush.msk.msrb.mxu3 %vm1329_vm14, %v3207_v36  ;;  %5065 = vmatpush.msk.msra.mxu2 %vm1329_vm14, %v3307_v40  ;;  %v1494_v1 = vpop.f32.mrf.mxu2 }
 0x38d   :  { %v1495_v18 = vadd.f32 %v1494_v1, %v1399_v16 }
 0x391   :  { %5044 = vmatmul.msk.f32.vlgmr.msra.gmra.mxu0 %vm1325_vm15, %v5042_v25  ;;  %5046 = vmatmul.msk.f32.vlgmr.msra.gmra.mxu1 %vm1325_vm15, %v5042_v25 }
 0x392   :  { %5050 = vmatmul.msk.f32.vlgmr.msra.gmra.mxu3 %vm1325_vm15, %v5042_v25  ;;  %5061 = vmatpush.msk.msra.mxu0 %vm1329_vm14, %v3305_v9 }
 0x393   :  { %5057 = vmatmul.msk.f32.vlgmr.msrb.gmra.mxu2 %vm1325_vm15, %v5051_v58  ;;  %5063 = vmatpush.msk.msra.mxu1 %vm1329_vm14, %v3306_v33 }
 0x394   :  { %5067 = vmatpush.msk.msra.mxu3 %vm1329_vm14, %v3308_v20  ;;  %v1514_v15 = vpop.f32.mrf.mxu3  ;;  %v1611_v17 = vpop.f32.mrf.mxu2 }
 0x395   :  { %v1515_v51 = vadd.f32 %v1514_v15, %v1419_v22  ;;  %v1636_v25 = vadd.f32 %v1611_v17, %v1495_v18 }
 0x396   :  { %v1454_v30 = vpop.f32.mrf.mxu0  ;;  %v1474_v10 = vpop.f32.mrf.mxu1 }
 0x397   :  { %v1455_v29 = vadd.f32 %v1454_v30, %v1359_v45  ;;  %v1475_v55 = vadd.f32 %v1474_v10, %v1379_v12 }
 0x399   :  { %5053 = vmatmul.msk.f32.vlgmr.msrb.gmra.mxu0 %vm1325_vm15, %v5051_v58  ;;  %5055 = vmatmul.msk.f32.vlgmr.msrb.gmra.mxu1 %vm1325_vm15, %v5051_v58 }
 0x39a   :  { %5059 = vmatmul.msk.f32.vlgmr.msrb.gmra.mxu3 %vm1325_vm15, %v5051_v58 }
 0x39b   :  { %5066 = vmatmul.msk.f32.vlgmr.msra.gmra.mxu2 %vm1325_vm15, %v5060_v47 }
 0x39e   :  { %v1571_v0 = vpop.f32.mrf.mxu0  ;;  %v1591_v46 = vpop.f32.mrf.mxu1 }
 0x39f   :  { %v1634_v11 = vadd.f32 %v1571_v0, %v1455_v29  ;;  %v1635_v8 = vadd.f32 %v1591_v46, %v1475_v55 }
 0x3a1   :  { %5062 = vmatmul.msk.f32.vlgmr.msra.gmra.mxu0 %vm1325_vm15, %v5060_v47  ;;  %5064 = vmatmul.msk.f32.vlgmr.msra.gmra.mxu1 %vm1325_vm15, %v5060_v47 }
 0x3a2   :  { %5068 = vmatmul.msk.f32.vlgmr.msra.gmra.mxu3 %vm1325_vm15, %v5060_v47 }
 0x3a5   :  { %v1631_v34 = vpop.f32.mrf.mxu3 }
 0x3a6   :  { %v1692_v3 = vpop.f32.mrf.mxu0  ;;  %v1712_v42 = vpop.f32.mrf.mxu1  ;;  %v1637_v35 = vadd.f32 %v1631_v34, %v1515_v51 }
 0x3a7   :  { %v1755_v19 = vadd.f32 %v1692_v3, %v1634_v11  ;;  %v1756_v48 = vadd.f32 %v1712_v42, %v1635_v8 }
 0x3ad   :  { %v1732_v63 = vpop.f32.mrf.mxu2  ;;  %v1752_v32 = vpop.f32.mrf.mxu3 }
 0x3ae   :  { %v1789_v26 = vpop.f32.mrf.mxu0  ;;  %v1809_v43 = vpop.f32.mrf.mxu1  ;;  %v1757_v36 = vadd.f32 %v1732_v63, %v1636_v25  ;;  %v1758_v40 = vadd.f32 %v1752_v32, %v1637_v35 }
 0x3af   :  { %v1852_v5 = vadd.f32 %v1789_v26, %v1755_v19  ;;  %v1853_v37 = vadd.f32 %v1809_v43, %v1756_v48 }
 0x3b5   :  { %v1829_v9 = vpop.f32.mrf.mxu2  ;;  %v1849_v58 = vpop.f32.mrf.mxu3 }
 0x3b6   :  { %v1854_v45 = vadd.f32 %v1829_v9, %v1757_v36  ;;  %v1855_v12 = vadd.f32 %v1849_v58, %v1758_v40  ;;  %v1914_v33 = vpop.f32.mrf.mxu0  ;;  %v1934_v20 = vpop.f32.mrf.mxu1 }
 0x3b7   :  { %v1977_v30 = vadd.f32 %v1914_v33, %v1852_v5  ;;  %v1978_v10 = vadd.f32 %v1934_v20, %v1853_v37 }
 0x3bd   :  { %v1954_v47 = vpop.f32.mrf.mxu2  ;;  %v1974_v0 = vpop.f32.mrf.mxu3 }
 0x3be   :  { %v1979_v16 = vadd.f32 %v1954_v47, %v1854_v45  ;;  %v1980_v1 = vadd.f32 %v1974_v0, %v1855_v12  ;;  %v2039_v46 = vpop.f32.mrf.mxu0  ;;  %v2059_v3 = vpop.f32.mrf.mxu1 }
 0x3bf   :  { %v2102_v42 = vadd.f32 %v2039_v46, %v1977_v30  ;;  %v2103_v22 = vadd.f32 %v2059_v3, %v1978_v10 }
 0x3c5   :  { %v2079_v15 = vpop.f32.mrf.mxu2  ;;  %v2099_v17 = vpop.f32.mrf.mxu3 }
 0x3c6   :  { %v2104_v34 = vadd.f32 %v2079_v15, %v1979_v16  ;;  %v2105_v29 = vadd.f32 %v2099_v17, %v1980_v1  ;;  %v2164_v55 = vpop.f32.mrf.mxu0  ;;  %v2184_v11 = vpop.f32.mrf.mxu1 }
 0x3c7   :  { %v2227_v8 = vadd.f32 %v2164_v55, %v2102_v42  ;;  %v2228_v19 = vadd.f32 %v2184_v11, %v2103_v22 }
 0x3cd   :  { %v2204_v48 = vpop.f32.mrf.mxu2  ;;  %v2224_v63 = vpop.f32.mrf.mxu3 }
 0x3ce   :  { %v2229_v32 = vadd.f32 %v2204_v48, %v2104_v34  ;;  %v2230_v18 = vadd.f32 %v2224_v63, %v2105_v29 }
 0x3d1   :  { %v2289_v26 = vpop.f32.mrf.mxu0  ;;  %v2309_v43 = vpop.f32.mrf.mxu1 }
 0x3d2   :  { %v6163_v5 = vadd.f32 %v2289_v26, %v2227_v8  ;;  %v6165_v37 = vadd.f32 %v2309_v43, %v2228_v19 }
 0x3d5   :  { %v2329_v51 = vpop.f32.mrf.mxu2  ;;  %v2349_v25 = vpop.f32.mrf.mxu3 }
 0x3d6   :  { %v6167_v35 = vadd.f32 %v2329_v51, %v2229_v32  ;;  %v6169_v36 = vadd.f32 %v2349_v25, %v2230_v18 }
 0x3d9   :  { %v2503_v40 = vpop.f32.mrf.mxu0  ;;  %v2523_v9 = vpop.f32.mrf.mxu1 }
 0x3dd   :  { %v2543_v58 = vpop.f32.mrf.mxu2  ;;  %v2563_v45 = vpop.f32.mrf.mxu3 }
 0x3e1   :  { %v2598_v33 = vpop.f32.mrf.mxu0  ;;  %v2618_v20 = vpop.f32.mrf.mxu1 }
 0x3e2   :  { %v2599_v32 = vadd.f32 %v2598_v33, %v2503_v40  ;;  %v2619_v18 = vadd.f32 %v2618_v20, %v2523_v9 }
 0x3e5   :  { %v2638_v12 = vpop.f32.mrf.mxu2 }
 0x3e6   :  { %v2658_v30 = vpop.f32.mrf.mxu3  ;;  %v2639_v43 = vadd.f32 %v2638_v12, %v2543_v58 }
 0x3e7   :  { %v2659_v39 = vadd.f32 %v2658_v30, %v2563_v45 }
 0x3ee   :  { %v2755_v10 = vpop.f32.mrf.mxu2  ;;  %v2715_v47 = vpop.f32.mrf.mxu0 }
 0x3ef   :  { %v2735_v0 = vpop.f32.mrf.mxu1  ;;  %v2775_v16 = vpop.f32.mrf.mxu3  ;;  %v2778_v26 = vadd.f32 %v2715_v47, %v2599_v32  ;;  %v2780_v13 = vadd.f32 %v2755_v10, %v2639_v43 }
 0x3f0   :  { %v2779_v51 = vadd.f32 %v2735_v0, %v2619_v18  ;;  %v2781_v41 = vadd.f32 %v2775_v16, %v2659_v39 }
 0x3f6   :  { %v2876_v1 = vpop.f32.mrf.mxu2  ;;  %v2836_v46 = vpop.f32.mrf.mxu0 }
 0x3f7   :  { %v2856_v3 = vpop.f32.mrf.mxu1  ;;  %v2899_v25 = vadd.f32 %v2836_v46, %v2778_v26  ;;  %v2901_v2 = vadd.f32 %v2876_v1, %v2780_v13 }
 0x3f8   :  { %v2900_v24 = vadd.f32 %v2856_v3, %v2779_v51 }
 0x3fd   :  { %v2896_v42 = vpop.f32.mrf.mxu3 }
 0x3fe   :  { %v2973_v22 = vpop.f32.mrf.mxu2  ;;  %v2933_v15 = vpop.f32.mrf.mxu0  ;;  %v2902_v9 = vadd.f32 %v2896_v42, %v2781_v41 }
 0x3ff   :  { %v2953_v17 = vpop.f32.mrf.mxu1  ;;  %v2996_v59 = vadd.f32 %v2933_v15, %v2899_v25  ;;  %v2998_v6 = vadd.f32 %v2973_v22, %v2901_v2 }
 0x400   :  { %v2997_v21 = vadd.f32 %v2953_v17, %v2900_v24 }
 0x405   :  { %v2993_v34 = vpop.f32.mrf.mxu3 }
 0x406   :  { %v3074_v29 = vpop.f32.mrf.mxu2  ;;  %v3034_v55 = vpop.f32.mrf.mxu0  ;;  %v2999_v47 = vadd.f32 %v2993_v34, %v2902_v9 }
 0x407   :  { %v3054_v11 = vpop.f32.mrf.mxu1  ;;  %v3097_v44 = vadd.f32 %v3034_v55, %v2996_v59  ;;  %v3099_v33 = vadd.f32 %v3074_v29, %v2998_v6 }
 0x408   :  { %v3098_v7 = vadd.f32 %v3054_v11, %v2997_v21 }
 0x40d   :  { %v3094_v8 = vpop.f32.mrf.mxu3 }
 0x40e   :  { %v3175_v19 = vpop.f32.mrf.mxu2  ;;  %v3135_v48 = vpop.f32.mrf.mxu0  ;;  %v3100_v45 = vadd.f32 %v3094_v8, %v2999_v47 }
 0x40f   :  { %v3155_v63 = vpop.f32.mrf.mxu1  ;;  %v3198_v40 = vadd.f32 %v3135_v48, %v3097_v44  ;;  %v3200_v10 = vadd.f32 %v3175_v19, %v3099_v33 }
 0x410   :  { %v3199_v58 = vadd.f32 %v3155_v63, %v3098_v7 }
 0x415   :  { %v3195_v62 = vpop.f32.mrf.mxu3 }
 0x416   :  { %v3276_v23 = vpop.f32.mrf.mxu2  ;;  %v3236_v38 = vpop.f32.mrf.mxu0  ;;  %v3201_v2 = vadd.f32 %v3195_v62, %v3100_v45  ;;  %v5070_v62 = vld [vmem:[%s6670_s7 + $0x2] sm:$0x3] }
 0x417   :  { %v3256_v31 = vpop.f32.mrf.mxu1  ;;  %v3299_v12 = vadd.f32 %v3236_v38, %v3198_v40  ;;  %v3301_v13 = vadd.f32 %v3276_v23, %v3200_v10  ;;  %v5069_v23 = vld [vmem:[%s6669_s6 + $0x2] sm:$0x3] }
 0x418   :  { %v3300_v0 = vadd.f32 %v3256_v31, %v3199_v58  ;;  %3453 = vperm.xlu2 %5165, %v5069_v23  }
 0x41d   :  { %v3296_v20 = vpop.f32.mrf.mxu3 }
 0x41e   :  { %v3337_v46 = vpop.f32.mrf.mxu0  ;;  %v3377_v3 = vpop.f32.mrf.mxu2  ;;  %v3302_v6 = vadd.f32 %v3296_v20, %v3201_v2 }
 0x41f   :  { %v3400_v15 = vadd.f32 %v3337_v46, %v3299_v12  ;;  %v3357_v32 = vpop.f32.mrf.mxu1  ;;  %v3402_v21 = vadd.f32 %v3377_v3, %v3301_v13 }
 0x420   :  { %v3401_v24 = vadd.f32 %v3357_v32, %v3300_v0  ;;  %3462 = vperm.xlu2 %5165, %v5070_v62   ;;  %v2358_v62 = vsel %vm1329_vm14, %v6163_v5, 0.0 }
 0x421   :  { %v3408_v39 = vsel %vm1329_vm14, %v3400_v15, 0.0  ;;  %v3411_v38 = vsel %vm1329_vm14, %v3402_v21, 0.0 }
 0x422   :  { %v3409_v41 = vsel %vm1329_vm14, %v3401_v24, 0.0 }
 0x423   :  { %v3410_v44 = vadd.f32 %v3409_v41, %v3408_v39 }
 0x425   :  { %v3397_v7 = vpop.f32.mrf.mxu3  ;;  %v3412_v31 = vadd.f32 %v3411_v38, %v3410_v44 }
 0x426   :  { %v3403_v59 = vadd.f32 %v3397_v7, %v3302_v6 }
 0x428   :  { %v3413_v30 = vsel %vm1329_vm14, %v3403_v59, 0.0 }
 0x429   :  { %v3414_v16 = vadd.f32 %v3413_v30, %v3412_v31 }
 0x42b   :  { %3415 = vadd.xlane.f32.xlu0 %v3414_v16 }
 0x472   :  { %v3454_v10 = vpop.permute.xlu2 %3453 }
 0x49e   :  { %v3416_v1 = vpop.xlane.xlu0 %3415 }
 0x49f   :  { %v3417_v42 = vmul.f32 %v3416_v1, %v5635_v4  ;;  %v2359_v1 = vsel %vm1329_vm14, %v6165_v37, 0.0 }
 0x4a1   :  { %v3418_v22 = vsub.f32 %v3400_v15, %v3417_v42  ;;  %v3419_v17 = vsub.f32 %v3401_v24, %v3417_v42  ;;  %v3420_v34 = vsub.f32 %v3402_v21, %v3417_v42  ;;  %v3421_v29 = vsub.f32 %v3403_v59, %v3417_v42  ;;  %v3463_v21 = vpop.permute.xlu2 %3462 }
 0x4a2   :  { %v2361_v42 = vsel %vm1329_vm14, %v6167_v35, 0.0 }
 0x4a3   :  { %v3422_v55 = vmul.f32 %v3418_v22, %v3418_v22  ;;  %v3423_v11 = vmul.f32 %v3419_v17, %v3419_v17  ;;  %v3424_v8 = vmul.f32 %v3420_v34, %v3420_v34  ;;  %v3425_v19 = vmul.f32 %v3421_v29, %v3421_v29 }
 0x4a5   :  { %v3426_v48 = vsel %vm1329_vm14, %v3422_v55, 0.0  ;;  %v3427_v63 = vsel %vm1329_vm14, %v3423_v11, 0.0  ;;  %v3429_v26 = vsel %vm1329_vm14, %v3424_v8, 0.0  ;;  %v3431_v51 = vsel %vm1329_vm14, %v3425_v19, 0.0  ;;  %v5072_v55 = vld [vmem:[%s6668_s5 + $0x26] sm:$0x3] }
 0x4a6   :  { %v3428_v18 = vadd.f32 %v3427_v63, %v3426_v48  ;;  %v2363_v8 = vsel %vm1329_vm14, %v6169_v36, 0.0 }
 0x4a8   :  { %v3430_v43 = vadd.f32 %v3429_v26, %v3428_v18 }
 0x4aa   :  { %v3432_v25 = vadd.f32 %v3431_v51, %v3430_v43 }
 0x4ac   :  { %3433 = vadd.xlane.f32.xlu1 %v3432_v25 }
 0x51f   :  { %v3434_v40 = vpop.xlane.xlu1 %3433 }
 0x520   :  { %v3435_v9 = vmul.f32 %v3434_v40, %v5635_v4 }
 0x522   :  { %v3436_v33 = vadd.f32 1e-05, %v3435_v9 }
 0x524   :  { %5175 = vrsqrt.f32 %v3436_v33  ;;  %vm3443_vm10 = vweird.f32 %v3436_v33 }
 0x52a   :  { %v5176_v58 = vpop.eup %5175 }
 0x52b   :  { %v3438_v12 = vmul.f32 %v5176_v58, %v3436_v33  ;;  %vm3444_vm4 = vweird.f32 %v5176_v58 }
 0x52c   :  { %vm3445_vm11 = vmor %vm3443_vm10, %vm3444_vm4 }
 0x52d   :  { %v3439_v20 = vmul.f32 %v5176_v58, %v3438_v12 }
 0x52f   :  { %v3440_v47 = vmul.f32 0.5, %v3439_v20 }
 0x531   :  { %v3441_v0 = vsub.f32 1.5, %v3440_v47 }
 0x533   :  { %v3442_v46 = vmul.f32 %v5176_v58, %v3441_v0 }
 0x535   :  { %v3446_v3 = vsel %vm3445_vm11, %v5176_v58, %v3442_v46 }
 0x536   :  { %v3447_v15 = vmul.f32 %v3446_v3, %v3418_v22  ;;  %v3448_v32 = vmul.f32 %v3446_v3, %v3419_v17  ;;  %v3449_v45 = vmul.f32 %v3446_v3, %v3420_v34  ;;  %v3450_v13 = vmul.f32 %v3446_v3, %v3421_v29 }
 0x537   :  { %v2360_v17 = vadd.f32 %v2359_v1, %v2358_v62  ;;  %v6757_v62 = vld [vmem:[#allocation3_spill] sm:$0xff] }
 0x538   :  { %v3456_v24 = vmul.f32 %v3454_v10, %v3447_v15  ;;  %v3457_v39 = vmul.f32 %v3454_v10, %v3448_v32  ;;  %v3458_v2 = vmul.f32 %v3454_v10, %v3449_v45  ;;  %v3459_v7 = vmul.f32 %v3454_v10, %v3450_v13 }
 0x539   :  { %v2362_v11 = vadd.f32 %v2361_v42, %v2360_v17  ;;  %v5098_v17 = vld [vmem:[%s6668_s5 + $0x2a] sm:$0x3] }
 0x53a   :  { %v3465_v41 = vadd.f32 %v3463_v21, %v3456_v24  ;;  %v3466_v44 = vadd.f32 %v3463_v21, %v3457_v39  ;;  %v3467_v6 = vadd.f32 %v3463_v21, %v3458_v2  ;;  %v3468_v30 = vadd.f32 %v3463_v21, %v3459_v7 }
 0x53b   :  { %v2364_v19 = vadd.f32 %v2363_v8, %v2362_v11 }
 0x53c   :  { %v6187_v38 = vmax.f32 %v3465_v41, 0.0  ;;  %v6189_v59 = vmax.f32 %v3466_v44, 0.0  ;;  %v6191_v31 = vmax.f32 %v3467_v6, 0.0  ;;  %v6199_v16 = vmax.f32 %v3468_v30, 0.0  ;;  %v5089_v44 = vld [vmem:[%s6668_s5 + $0x28] sm:$0x3] }
 0x53d   :  { %v6756_v6 = vld [vmem:[#allocation2_spill] sm:$0xff] }
 0x53e   :  { %3483 = vrot.lane.b32.xlu1 %v6191_v31, %s5191_s17  ;;  %3503 = vrot.lane.b32.xlu2 %v6189_v59, %s5192_s0 }
 0x53f   :  { %3501 = vrot.lane.b32.xlu0 %v6187_v38, %s5192_s0 }
 0x546   :  { %3719 = vrot.lane.b32.xlu1 %v6199_v16, %s5193_s18  ;;  %3505 = vrot.lane.b32.xlu2 %v6191_v31, %s5192_s0 }
 0x547   :  { %3715 = vrot.lane.b32.xlu0 %v6189_v59, %s5193_s18 }
 0x54e   :  { %3838 = vrot.lane.b32.xlu1 %v6191_v31, %s5194_s19  ;;  %3507 = vrot.lane.b32.xlu2 %v6199_v16, %s5192_s0 }
 0x54f   :  { %3713 = vrot.lane.b32.xlu0 %v6187_v38, %s5193_s18 }
 0x556   :  { %4056 = vrot.lane.b32.xlu1 %v6191_v31, %s5195_s20  ;;  %3481 = vrot.lane.b32.xlu2 %v6189_v59, %s5191_s17 }
 0x557   :  { %3840 = vrot.lane.b32.xlu0 %v6199_v16, %s5194_s19 }
 0x55e   :  { %4054 = vrot.lane.b32.xlu1 %v6189_v59, %s5195_s20  ;;  %3485 = vrot.lane.b32.xlu2 %v6199_v16, %s5191_s17 }
 0x55f   :  { %4058 = vrot.lane.b32.xlu0 %v6199_v16, %s5195_s20 }
 0x566   :  { %4173 = vrot.lane.b32.xlu1 %v6187_v38, %s5196_s21  ;;  %3479 = vrot.lane.b32.xlu2 %v6187_v38, %s5191_s17 }
 0x567   :  { %4177 = vrot.lane.b32.xlu0 %v6191_v31, %s5196_s21 }
 0x56e   :  { %4300 = vrot.lane.b32.xlu1 %v6199_v16, %s5197_s22  ;;  %3717 = vrot.lane.b32.xlu2 %v6191_v31, %s5193_s18 }
 0x56f   :  { %4175 = vrot.lane.b32.xlu0 %v6189_v59, %s5196_s21 }
 0x576   :  { %4419 = vrot.lane.b32.xlu1 %v6191_v31, %s5198_s23  ;;  %3836 = vrot.lane.b32.xlu2 %v6189_v59, %s5194_s19 }
 0x577   :  { %4294 = vrot.lane.b32.xlu0 %v6187_v38, %s5197_s22 }
 0x57e   :  { %4417 = vrot.lane.b32.xlu1 %v6189_v59, %s5198_s23  ;;  %3834 = vrot.lane.b32.xlu2 %v6187_v38, %s5194_s19 }
 0x57f   :  { %4421 = vrot.lane.b32.xlu0 %v6199_v16, %s5198_s23 }
 0x586   :  { %4052 = vrot.lane.b32.xlu2 %v6187_v38, %s5195_s20 }
 0x58e   :  { %4179 = vrot.lane.b32.xlu2 %v6199_v16, %s5196_s21 }
 0x596   :  { %4298 = vrot.lane.b32.xlu2 %v6191_v31, %s5197_s22 }
 0x598   :  { %v3504_v23 = vpop.permute.xlu2 %3503 }
 0x59e   :  { %4296 = vrot.lane.b32.xlu2 %v6189_v59, %s5197_s22 }
 0x5a0   :  { %v3506_v22 = vpop.permute.xlu2 %3505 }
 0x5a1   :  { %v3510_v34 = vsel %vm97_vm1, %v3504_v23, %v3506_v22 }
 0x5a2   :  { %v3519_v29 = vmul.f32 %v3510_v34, %v5347_v49  ;;  %v6758_v34 = vld [vmem:[#allocation4_spill] sm:$0xff] }
 0x5a4   :  { %5077 = vmatpush.msk.msrb.mxu2 %vm1329_vm14, %v3519_v29 }
 0x5a5   :  { %5078 = vmatmul.msk.f32.vlgmr.msrb.gmra.mxu2 %vm1325_vm15, %v5072_v55 }
 0x5a6   :  { %4415 = vrot.lane.b32.xlu2 %v6187_v38, %s5198_s23 }
 0x5a8   :  { %v3508_v48 = vpop.permute.xlu2 %3507 }
 0x5a9   :  { %v3511_v63 = vsel %vm97_vm1, %v3506_v22, %v3508_v48  ;;  %2365 = vadd.xlane.f32.xlu0 %v2364_v19 }
 0x5aa   :  { %v3520_v49 = vmul.f32 %v3511_v63, %v5350_v50  ;;  %v5071_v50 = vld [vmem:[%s6668_s5 + $0x24] sm:$0x3] }
 0x5ac   :  { %5079 = vmatpush.msk.msrb.mxu3 %vm1329_vm14, %v3520_v49  ;;  %v6760_v49 = vld [vmem:[#allocation6_spill] sm:$0xff] }
 0x5ad   :  { %5080 = vmatmul.msk.f32.vlgmr.msrb.gmra.mxu3 %vm1325_vm15, %v5072_v55 }
 0x5b0   :  { %v3484_v18 = vpop.permute.xlu1 %3483  ;;  %v3482_v26 = vpop.permute.xlu2 %3481 }
 0x5b1   :  { %v3488_v43 = vsel %vm63_vm0, %v3482_v26, %v3484_v18  ;;  %v3502_v51 = vpop.permute.xlu0 %3501 }
 0x5b2   :  { %v3497_v25 = vmul.f32 %v3488_v43, %v5361_v54  ;;  %v3509_v40 = vsel %vm97_vm1, %v3502_v51, %v3504_v23  ;;  %v3516_v9 = vsel %vm97_vm1, 0.0, %v3502_v51 }
 0x5b3   :  { %v3517_v33 = vmul.f32 %v3516_v9, %v5364_v56  ;;  %v3518_v58 = vmul.f32 %v3509_v40, %v5367_v57 }
 0x5b4   :  { %5085 = vmatpush.msk.msra.mxu2 %vm1329_vm14, %v3497_v25  ;;  %v6762_v25 = vld [vmem:[#allocation8_spill] sm:$0xff] }
 0x5b5   :  { %5073 = vmatpush.msk.msrb.mxu0 %vm1329_vm14, %v3517_v33  ;;  %5075 = vmatpush.msk.msrb.mxu1 %vm1329_vm14, %v3518_v58 }
 0x5b6   :  { %5074 = vmatmul.msk.f32.vlgmr.msrb.gmra.mxu0 %vm1325_vm15, %v5072_v55  ;;  %5076 = vmatmul.msk.f32.vlgmr.msrb.gmra.mxu1 %vm1325_vm15, %v5072_v55 }
 0x5b7   :  { %5086 = vmatmul.msk.f32.vlgmr.msra.gmra.mxu2 %vm1325_vm15, %v5071_v50 }
 0x5b8   :  { %v3720_v54 = vpop.permute.xlu1 %3719  ;;  %v3486_v56 = vpop.permute.xlu2 %3485 }
 0x5b9   :  { %v3489_v57 = vsel %vm63_vm0, %v3484_v18, %v3486_v56  ;;  %v3716_v12 = vpop.permute.xlu0 %3715 }
 0x5ba   :  { %v3498_v20 = vmul.f32 %v3489_v57, %v5402_v14 }
 0x5bc   :  { %5087 = vmatpush.msk.msra.mxu3 %vm1329_vm14, %v3498_v20 }
 0x5bd   :  { %5088 = vmatmul.msk.f32.vlgmr.msra.gmra.mxu3 %vm1325_vm15, %v5071_v50 }
 0x5c0   :  { %v3839_v47 = vpop.permute.xlu1 %3838  ;;  %v3480_v10 = vpop.permute.xlu2 %3479 }
 0x5c1   :  { %v3487_v0 = vsel %vm63_vm0, %v3480_v10, %v3482_v26  ;;  %v3494_v46 = vsel %vm63_vm0, 0.0, %v3480_v10  ;;  %v3714_v3 = vpop.permute.xlu0 %3713  ;;  %v6761_v26 = vld [vmem:[#allocation7_spill] sm:$0xff]  ;;  %v5116_v10 = vld [vmem:[%s6668_s5 + $0x2e] sm:$0x3] }
 0x5c2   :  { %v3495_v15 = vmul.f32 %v3494_v46, %v5355_v52  ;;  %v3496_v32 = vmul.f32 %v3487_v0, %v5358_v53  ;;  %v3721_v45 = vsel %vm323_vm2, %v3714_v3, %v3716_v12  ;;  %v3728_v13 = vsel %vm323_vm2, 0.0, %v3714_v3 }
 0x5c3   :  { %v3729_v14 = vmul.f32 %v3728_v13, %v5372_v60  ;;  %v3730_v24 = vmul.f32 %v3721_v45, %v5375_v61  ;;  %v6766_v45 = vld [vmem:[#allocation12_spill] sm:$0xff] }
 0x5c4   :  { %5081 = vmatpush.msk.msra.mxu0 %vm1329_vm14, %v3495_v15  ;;  %5083 = vmatpush.msk.msra.mxu1 %vm1329_vm14, %v3496_v32 }
 0x5c5   :  { %5082 = vmatmul.msk.f32.vlgmr.msra.gmra.mxu0 %vm1325_vm15, %v5071_v50  ;;  %5084 = vmatmul.msk.f32.vlgmr.msra.gmra.mxu1 %vm1325_vm15, %v5071_v50 }
 0x5c6   :  { %5090 = vmatpush.msk.msrb.mxu0 %vm1329_vm14, %v3729_v14  ;;  %5092 = vmatpush.msk.msrb.mxu1 %vm1329_vm14, %v3730_v24  ;;  %v6767_v14 = vld [vmem:[#allocation13_spill] sm:$0xff] }
 0x5c8   :  { %v4057_v52 = vpop.permute.xlu1 %4056  ;;  %v3718_v53 = vpop.permute.xlu2 %3717 }
 0x5c9   :  { %v3722_v39 = vsel %vm323_vm2, %v3716_v12, %v3718_v53  ;;  %v3723_v60 = vsel %vm323_vm2, %v3718_v53, %v3720_v54  ;;  %v3841_v2 = vpop.permute.xlu0 %3840  ;;  %v6763_v54 = vld [vmem:[#allocation9_spill] sm:$0xff]  ;;  %v6764_v12 = vld [vmem:[#allocation11_spill] sm:$0xff]  ;;  %v6768_v53 = vld [vmem:[#allocation14_spill] sm:$0xff] }
 0x5ca   :  { %v3731_v61 = vmul.f32 %v3722_v39, %v5422_v27  ;;  %v3732_v21 = vmul.f32 %v3723_v60, %v5425_v28  ;;  %v3844_v41 = vsel %vm456_vm5, %v3839_v47, %v3841_v2  ;;  %v5125_v60 = vld [vmem:[%s6668_s5 + $0x30] sm:$0x3] }
 0x5cb   :  { %v3853_v7 = vmul.f32 %v3844_v41, %v6756_v6  ;;  %v6769_v41 = vld [vmem:[#allocation16_spill] sm:$0xff] }
 0x5cc   :  { %5094 = vmatpush.msk.msrb.mxu2 %vm1329_vm14, %v3731_v61  ;;  %5096 = vmatpush.msk.msrb.mxu3 %vm1329_vm14, %v3732_v21 }
 0x5cd   :  { %5095 = vmatmul.msk.f32.vlgmr.msrb.gmra.mxu2 %vm1325_vm15, %v5089_v44  ;;  %5097 = vmatmul.msk.f32.vlgmr.msrb.gmra.mxu3 %vm1325_vm15, %v5089_v44 }
 0x5ce   :  { %5105 = vmatpush.msk.msra.mxu3 %vm1329_vm14, %v3853_v7  ;;  %5091 = vmatmul.msk.f32.vlgmr.msrb.gmra.mxu0 %vm1325_vm15, %v5089_v44 }
 0x5cf   :  { %5093 = vmatmul.msk.f32.vlgmr.msrb.gmra.mxu1 %vm1325_vm15, %v5089_v44 }
 0x5d0   :  { %5114 = vmatpush.msk.msrb.mxu3 %vm1329_vm14, %v6199_v16  ;;  %v4055_v27 = vpop.permute.xlu1 %4054  ;;  %v3837_v28 = vpop.permute.xlu2 %3836  ;;  %v6759_v16 = vld [vmem:[#allocation5_spill] sm:$0xff] }
 0x5d1   :  { %v3843_v30 = vsel %vm456_vm5, %v3837_v28, %v3839_v47  ;;  %v4059_v23 = vpop.permute.xlu0 %4058  ;;  %v4061_v51 = vsel %vm693_vm6, %v4055_v27, %v4057_v52 }
 0x5d2   :  { %v3852_v1 = vmul.f32 %v3843_v30, %v6757_v62  ;;  %v4062_v42 = vsel %vm693_vm6, %v4057_v52, %v4059_v23  ;;  %v4067_v22 = vsel %vm693_vm6, %v4059_v23, 0.0  ;;  %v4069_v40 = vmul.f32 %v4061_v51, %v6762_v25  ;;  %v5188_v30 = vld [vmem:[%s6664_s1 + $0x38] ss:$0 sm:$0xff]  ;;  %v5134_v62 = vld [vmem:[%s6668_s5 + $0x32] sm:$0x3] }
 0x5d3   :  { %v4071_v29 = vmul.f32 %v4067_v22, %v6758_v34  ;;  %v4070_v55 = vmul.f32 %v4062_v42, %v6759_v16 }
 0x5d4   :  { %5103 = vmatpush.msk.msra.mxu2 %vm1329_vm14, %v3852_v1 }
 0x5d5   :  { %5104 = vmatmul.msk.f32.vlgmr.msra.gmra.mxu2 %vm1325_vm15, %v5098_v17  ;;  %5106 = vmatmul.msk.f32.vlgmr.msra.gmra.mxu3 %vm1325_vm15, %v5098_v17 }
 0x5d6   :  { %5112 = vmatpush.msk.msrb.mxu2 %vm1329_vm14, %v6191_v31  ;;  %5123 = vmatpush.msk.msra.mxu3 %vm1329_vm14, %v4071_v29  ;;  %v5107_v31 = vld [vmem:[%s6668_s5 + $0x2c] sm:$0x3] }
 0x5d7   :  { %v6770_v29 = vld [vmem:[#allocation18_spill] sm:$0xff] }
 0x5d8   :  { %5121 = vmatpush.msk.msra.mxu2 %vm1329_vm14, %v4070_v55  ;;  %v4174_v11 = vpop.permute.xlu1 %4173  ;;  %v3835_v8 = vpop.permute.xlu2 %3834  ;;  %v6771_v55 = vld [vmem:[#allocation19_spill] sm:$0xff] }
 0x5d9   :  { %v3842_v19 = vsel %vm456_vm5, %v3835_v8, %v3837_v28  ;;  %v3849_v48 = vsel %vm456_vm5, 0.0, %v3835_v8  ;;  %v4178_v63 = vpop.permute.xlu0 %4177  ;;  %v5189_v8 = vld [vmem:[%s6664_s1 + $0x28] ss:$0 sm:$0xff] }
 0x5da   :  { %v3850_v18 = vmul.f32 %v3849_v48, %v6760_v49  ;;  %v3851_v43 = vmul.f32 %v3842_v19, %v6761_v26  ;;  %v5143_v48 = vld [vmem:[%s6668_s5 + $0x34] sm:$0x3] }
 0x5dc   :  { %5099 = vmatpush.msk.msra.mxu0 %vm1329_vm14, %v3850_v18  ;;  %5101 = vmatpush.msk.msra.mxu1 %vm1329_vm14, %v3851_v43  ;;  %v5190_v18 = vld [vmem:[%s6664_s1 + $0x20] ss:$0 sm:$0xff] }
 0x5dd   :  { %5100 = vmatmul.msk.f32.vlgmr.msra.gmra.mxu0 %vm1325_vm15, %v5098_v17  ;;  %5102 = vmatmul.msk.f32.vlgmr.msra.gmra.mxu1 %vm1325_vm15, %v5098_v17 }
 0x5de   :  { %5108 = vmatpush.msk.msrb.mxu0 %vm1329_vm14, %v6187_v38  ;;  %5110 = vmatpush.msk.msrb.mxu1 %vm1329_vm14, %v6189_v59  ;;  %v6765_v59 = vld [vmem:[#allocation10_spill] sm:$0xff] }
 0x5df   :  { %5113 = vmatmul.msk.f32.vlgmr.msrb.gmra.mxu2 %vm1325_vm15, %v5107_v31  ;;  %5115 = vmatmul.msk.f32.vlgmr.msrb.gmra.mxu3 %vm1325_vm15, %v5107_v31 }
 0x5e0   :  { %5119 = vmatpush.msk.msra.mxu1 %vm1329_vm14, %v4069_v40  ;;  %v4053_v9 = vpop.permute.xlu2 %4052  ;;  %v4301_v33 = vpop.permute.xlu1 %4300 }
 0x5e1   :  { %v4060_v58 = vsel %vm693_vm6, %v4053_v9, %v4055_v27  ;;  %v4176_v50 = vpop.permute.xlu0 %4175  ;;  %v4309_v46 = vsel %vm959_vm9, %v4301_v33, 0.0  ;;  %v5187_v27 = vld [vmem:[%s6664_s1 + $0x30] ss:$0 sm:$0xff] }
 0x5e2   :  { %v4068_v56 = vmul.f32 %v4060_v58, %v6763_v54  ;;  %v4181_v57 = vsel %vm826_vm7, %v4174_v11, %v4176_v50  ;;  %v4182_v38 = vsel %vm826_vm7, %v4176_v50, %v4178_v63  ;;  %v4313_v39 = vmul.f32 %v4309_v46, %v6768_v53 }
 0x5e3   :  { %v4189_v20 = vmul.f32 %v4181_v57, %v6764_v12  ;;  %v4190_v47 = vmul.f32 %v4182_v38, %v6765_v59 }
 0x5e4   :  { %5117 = vmatpush.msk.msra.mxu0 %vm1329_vm14, %v4068_v56 }
 0x5e5   :  { %5109 = vmatmul.msk.f32.vlgmr.msrb.gmra.mxu0 %vm1325_vm15, %v5107_v31  ;;  %5111 = vmatmul.msk.f32.vlgmr.msrb.gmra.mxu1 %vm1325_vm15, %v5107_v31 }
 0x5e6   :  { %5126 = vmatpush.msk.msrb.mxu0 %vm1329_vm14, %v4189_v20  ;;  %5128 = vmatpush.msk.msrb.mxu1 %vm1329_vm14, %v4190_v47 }
 0x5e7   :  { %5122 = vmatmul.msk.f32.vlgmr.msra.gmra.mxu2 %vm1325_vm15, %v5116_v10  ;;  %5124 = vmatmul.msk.f32.vlgmr.msra.gmra.mxu3 %vm1325_vm15, %v5116_v10 }
 0x5e8   :  { %v4180_v0 = vpop.permute.xlu2 %4179  ;;  %v4420_v52 = vpop.permute.xlu1 %4419 }
 0x5e9   :  { %v4183_v3 = vsel %vm826_vm7, %v4178_v63, %v4180_v0  ;;  %v4188_v15 = vsel %vm826_vm7, %v4180_v0, 0.0  ;;  %v4295_v32 = vpop.permute.xlu0 %4294 }
 0x5ea   :  { %v4191_v13 = vmul.f32 %v4183_v3, %v6766_v45  ;;  %v4192_v24 = vmul.f32 %v4188_v15, %v6767_v14 }
 0x5ec   :  { %5130 = vmatpush.msk.msrb.mxu2 %vm1329_vm14, %v4191_v13  ;;  %5132 = vmatpush.msk.msrb.mxu3 %vm1329_vm14, %v4192_v24 }
 0x5ed   :  { %5118 = vmatmul.msk.f32.vlgmr.msra.gmra.mxu0 %vm1325_vm15, %v5116_v10  ;;  %5120 = vmatmul.msk.f32.vlgmr.msra.gmra.mxu1 %vm1325_vm15, %v5116_v10  ;;  %v5152_v10 = vld [vmem:[%s6669_s6 + $0x4] sm:$0x3] }
 0x5ee   :  { %5141 = vmatpush.msk.msra.mxu3 %vm1329_vm14, %v4313_v39 }
 0x5ef   :  { %5131 = vmatmul.msk.f32.vlgmr.msrb.gmra.mxu2 %vm1325_vm15, %v5125_v60  ;;  %5133 = vmatmul.msk.f32.vlgmr.msrb.gmra.mxu3 %vm1325_vm15, %v5125_v60 }
 0x5f0   :  { %v4299_v2 = vpop.permute.xlu2 %4298  ;;  %v4418_v1 = vpop.permute.xlu1 %4417 }
 0x5f1   :  { %v4304_v61 = vsel %vm959_vm9, %v4299_v2, %v4301_v33  ;;  %v4422_v21 = vpop.permute.xlu0 %4421  ;;  %v4424_v42 = vsel %vm1092_vm8, %v4418_v1, %v4420_v52 }
 0x5f2   :  { %v4312_v44 = vmul.f32 %v4304_v61, %v6769_v41  ;;  %v4425_v6 = vsel %vm1092_vm8, %v4420_v52, %v4422_v21  ;;  %v4430_v7 = vsel %vm1092_vm8, %v4422_v21, 0.0  ;;  %v4432_v19 = vmul.f32 %v5189_v8, %v4424_v42 }
 0x5f3   :  { %v4433_v28 = vmul.f32 %v5187_v27, %v4425_v6  ;;  %v4434_v23 = vmul.f32 %v5188_v30, %v4430_v7 }
 0x5f4   :  { %5139 = vmatpush.msk.msra.mxu2 %vm1329_vm14, %v4312_v44 }
 0x5f5   :  { %5150 = vmatpush.msk.msrb.mxu3 %vm1329_vm14, %v4434_v23  ;;  %5127 = vmatmul.msk.f32.vlgmr.msrb.gmra.mxu0 %vm1325_vm15, %v5125_v60 }
 0x5f6   :  { %5129 = vmatmul.msk.f32.vlgmr.msrb.gmra.mxu1 %vm1325_vm15, %v5125_v60  ;;  %5148 = vmatpush.msk.msrb.mxu2 %vm1329_vm14, %v4433_v28 }
 0x5f7   :  { %5140 = vmatmul.msk.f32.vlgmr.msra.gmra.mxu2 %vm1325_vm15, %v5134_v62  ;;  %5142 = vmatmul.msk.f32.vlgmr.msra.gmra.mxu3 %vm1325_vm15, %v5134_v62 }
 0x5f8   :  { %v4297_v22 = vpop.permute.xlu2 %4296 }
 0x5f9   :  { %v4302_v17 = vsel %vm959_vm9, %v4295_v32, %v4297_v22  ;;  %v4303_v34 = vsel %vm959_vm9, %v4297_v22, %v4299_v2 }
 0x5fa   :  { %v4310_v16 = vmul.f32 %v4302_v17, %v6770_v29  ;;  %v4311_v11 = vmul.f32 %v4303_v34, %v6771_v55 }
 0x5fc   :  { %5135 = vmatpush.msk.msra.mxu0 %vm1329_vm14, %v4310_v16  ;;  %5137 = vmatpush.msk.msra.mxu1 %vm1329_vm14, %v4311_v11 }
 0x5fd   :  { %5136 = vmatmul.msk.f32.vlgmr.msra.gmra.mxu0 %vm1325_vm15, %v5134_v62 }
 0x5fe   :  { %5146 = vmatpush.msk.msrb.mxu1 %vm1329_vm14, %v4432_v19 }
 0x5ff   :  { %5138 = vmatmul.msk.f32.vlgmr.msra.gmra.mxu1 %vm1325_vm15, %v5134_v62  ;;  %5149 = vmatmul.msk.f32.vlgmr.msrb.gmra.mxu2 %vm1325_vm15, %v5143_v48 }
 0x600   :  { %5151 = vmatmul.msk.f32.vlgmr.msrb.gmra.mxu3 %vm1325_vm15, %v5143_v48  ;;  %v4416_v63 = vpop.permute.xlu2 %4415 }
 0x601   :  { %v4423_v49 = vsel %vm1092_vm8, %v4416_v63, %v4418_v1 }
 0x602   :  { %v4431_v26 = vmul.f32 %v5190_v18, %v4423_v49 }
 0x604   :  { %5144 = vmatpush.msk.msrb.mxu0 %vm1329_vm14, %v4431_v26 }
 0x605   :  { %5145 = vmatmul.msk.f32.vlgmr.msrb.gmra.mxu0 %vm1325_vm15, %v5143_v48 }
 0x607   :  { %5147 = vmatmul.msk.f32.vlgmr.msrb.gmra.mxu1 %vm1325_vm15, %v5143_v48 }
 0x61c   :  { %v2366_v43 = vpop.xlane.xlu0 %2365 }
 0x61d   :  { %v2367_v51 = vmul.f32 %v2366_v43, %v5635_v4 }
 0x61f   :  { %v6444_v31 = vsub.f32 %v6163_v5, %v2367_v51  ;;  %v6447_v25 = vsub.f32 %v6165_v37, %v2367_v51  ;;  %v6450_v40 = vsub.f32 %v6167_v35, %v2367_v51  ;;  %v6453_v9 = vsub.f32 %v6169_v36, %v2367_v51 }
 0x621   :  { %v2372_v33 = vmul.f32 %v6444_v31, %v6444_v31  ;;  %v2373_v58 = vmul.f32 %v6447_v25, %v6447_v25  ;;  %v2374_v50 = vmul.f32 %v6450_v40, %v6450_v40  ;;  %v2375_v5 = vmul.f32 %v6453_v9, %v6453_v9 }
 0x623   :  { %v2376_v37 = vsel %vm1329_vm14, %v2372_v33, 0.0  ;;  %v2377_v35 = vsel %vm1329_vm14, %v2373_v58, 0.0  ;;  %v2379_v36 = vsel %vm1329_vm14, %v2374_v50, 0.0  ;;  %v2381_v57 = vsel %vm1329_vm14, %v2375_v5, 0.0 }
 0x624   :  { %v2378_v54 = vadd.f32 %v2377_v35, %v2376_v37 }
 0x626   :  { %v2380_v56 = vadd.f32 %v2379_v36, %v2378_v54 }
 0x628   :  { %v2382_v38 = vadd.f32 %v2381_v57, %v2380_v56  ;;  %v3593_v12 = vpop.f32.mrf.mxu2 }
 0x62a   :  { %2383 = vadd.xlane.f32.xlu1 %v2382_v38 }
 0x630   :  { %v3613_v20 = vpop.f32.mrf.mxu3 }
 0x633   :  { %v3553_v59 = vpop.f32.mrf.mxu0  ;;  %v3573_v47 = vpop.f32.mrf.mxu1 }
 0x63a   :  { %v3688_v0 = vpop.f32.mrf.mxu2 }
 0x63b   :  { %v3689_v42 = vadd.f32 %v3688_v0, %v3593_v12 }
 0x640   :  { %v3708_v46 = vpop.f32.mrf.mxu3 }
 0x641   :  { %v3709_v22 = vadd.f32 %v3708_v46, %v3613_v20 }
 0x642   :  { %v3648_v3 = vpop.f32.mrf.mxu0  ;;  %v3668_v15 = vpop.f32.mrf.mxu1 }
 0x643   :  { %4583 = vperm.xlu1 %5164, %v5152_v10   ;;  %v3649_v62 = vadd.f32 %v3648_v3, %v3553_v59  ;;  %v3669_v1 = vadd.f32 %v3668_v15, %v3573_v47 }
 0x64b   :  { %v3765_v13 = vpop.f32.mrf.mxu0 }
 0x64c   :  { %v3785_v14 = vpop.f32.mrf.mxu1  ;;  %v3828_v17 = vadd.f32 %v3765_v13, %v3649_v62 }
 0x64d   :  { %v3829_v34 = vadd.f32 %v3785_v14, %v3669_v1 }
 0x650   :  { %v3805_v32 = vpop.f32.mrf.mxu2  ;;  %v3825_v45 = vpop.f32.mrf.mxu3 }
 0x651   :  { %v3830_v29 = vadd.f32 %v3805_v32, %v3689_v42  ;;  %v3831_v16 = vadd.f32 %v3825_v45, %v3709_v22 }
 0x658   :  { %v3926_v24 = vpop.f32.mrf.mxu2  ;;  %v3946_v52 = vpop.f32.mrf.mxu3 }
 0x659   :  { %v3951_v55 = vadd.f32 %v3926_v24, %v3830_v29  ;;  %v3952_v18 = vadd.f32 %v3946_v52, %v3831_v16  ;;  %v2357_v16 = vld [vmem:[%s6670_s7] sm:$0x3] }
 0x65a   :  { %v3886_v53 = vpop.f32.mrf.mxu0  ;;  %v3906_v39 = vpop.f32.mrf.mxu1 }
 0x65b   :  { %v3949_v11 = vadd.f32 %v3886_v53, %v3828_v17  ;;  %v3950_v8 = vadd.f32 %v3906_v39, %v3829_v34 }
 0x662   :  { %v4023_v60 = vpop.f32.mrf.mxu2  ;;  %v4043_v2 = vpop.f32.mrf.mxu3 }
 0x663   :  { %v3983_v61 = vpop.f32.mrf.mxu0  ;;  %v4003_v21 = vpop.f32.mrf.mxu1  ;;  %v4048_v26 = vadd.f32 %v4023_v60, %v3951_v55  ;;  %v4049_v33 = vadd.f32 %v4043_v2, %v3952_v18  ;;  %v2356_v60 = vld [vmem:[%s6669_s6] sm:$0x3]  ;;  %v5153_v2 = vld [vmem:[%s6670_s7 + $0x4] sm:$0x3]  ;;  %v6772_v55 = vld [vmem:[#allocation22_spill] sm:$0xff] }
 0x664   :  { %v4046_v43 = vadd.f32 %v3983_v61, %v3949_v11  ;;  %v4047_v51 = vadd.f32 %v4003_v21, %v3950_v8  ;;  %v4605_v11 = vsel %vm118_vm3, %v6772_v55, 0.0  ;;  %v6773_v8 = vld [vmem:[#allocation25_spill] sm:$0xff] }
 0x66a   :  { %v4144_v41 = vpop.f32.mrf.mxu2  ;;  %v4164_v44 = vpop.f32.mrf.mxu3 }
 0x66b   :  { %v4104_v6 = vpop.f32.mrf.mxu0  ;;  %v4124_v7 = vpop.f32.mrf.mxu1  ;;  %v4169_v58 = vadd.f32 %v4144_v41, %v4048_v26  ;;  %v4170_v37 = vadd.f32 %v4164_v44, %v4049_v33  ;;  %v6775_v26 = vld [vmem:[#allocation24_spill] sm:$0xff]  ;;  %v4604_v33 = vld [vmem:[%s6671_s9] sm:$0xff] }
 0x66c   :  { %v4167_v50 = vadd.f32 %v4104_v6, %v4046_v43  ;;  %v4168_v5 = vadd.f32 %v4124_v7, %v4047_v51  ;;  %v4610_v43 = vsel %vm118_vm3, %v6775_v26, 0.0 }
 0x672   :  { %v4265_v27 = vpop.f32.mrf.mxu2  ;;  %v4285_v28 = vpop.f32.mrf.mxu3 }
 0x673   :  { %v4225_v30 = vpop.f32.mrf.mxu0  ;;  %v4245_v23 = vpop.f32.mrf.mxu1  ;;  %v4290_v35 = vadd.f32 %v4265_v27, %v4169_v58  ;;  %v4291_v56 = vadd.f32 %v4285_v28, %v4170_v37 }
 0x674   :  { %v4288_v54 = vadd.f32 %v4225_v30, %v4167_v50  ;;  %v4289_v36 = vadd.f32 %v4245_v23, %v4168_v5 }
 0x67a   :  { %v4386_v19 = vpop.f32.mrf.mxu2  ;;  %v4406_v48 = vpop.f32.mrf.mxu3 }
 0x67b   :  { %v4346_v63 = vpop.f32.mrf.mxu0  ;;  %v4411_v57 = vadd.f32 %v4386_v19, %v4290_v35  ;;  %v4412_v0 = vadd.f32 %v4406_v48, %v4291_v56  ;;  %v4606_v19 = vsel %vm118_vm3, %v6773_v8, 0.0 }
 0x67c   :  { %v4366_v49 = vpop.f32.mrf.mxu1  ;;  %v4409_v38 = vadd.f32 %v4346_v63, %v4288_v54  ;;  %v4607_v48 = vadd.f32 %v4606_v19, %v4605_v11  ;;  %v6774_v63 = vld [vmem:[#allocation23_spill] sm:$0xff] }
 0x67d   :  { %v4410_v12 = vadd.f32 %v4366_v49, %v4289_v36  ;;  %v4608_v49 = vsel %vm118_vm3, %v6774_v63, 0.0 }
 0x67e   :  { %v4609_v18 = vadd.f32 %v4608_v49, %v4607_v48 }
 0x680   :  { %v4611_v51 = vadd.f32 %v4610_v43, %v4609_v18 }
 0x682   :  { %v4507_v20 = vpop.f32.mrf.mxu2 }
 0x683   :  { %v4527_v59 = vpop.f32.mrf.mxu3  ;;  %v4467_v47 = vpop.f32.mrf.mxu0  ;;  %v4532_v46 = vadd.f32 %v4507_v20, %v4411_v57 }
 0x684   :  { %v4487_v10 = vpop.f32.mrf.mxu1  ;;  %v4530_v3 = vadd.f32 %v4467_v47, %v4409_v38  ;;  %v4533_v32 = vadd.f32 %v4527_v59, %v4412_v0 }
 0x685   :  { %v4531_v15 = vadd.f32 %v4487_v10, %v4410_v12  ;;  %v4541_v24 = vsel %vm1329_vm14, %v4532_v46, 0.0 }
 0x686   :  { %v4538_v45 = vsel %vm1329_vm14, %v4530_v3, 0.0  ;;  %v4543_v53 = vsel %vm1329_vm14, %v4533_v32, 0.0 }
 0x687   :  { %v4539_v13 = vsel %vm1329_vm14, %v4531_v15, 0.0 }
 0x688   :  { %v4540_v14 = vadd.f32 %v4539_v13, %v4538_v45 }
 0x68a   :  { %v4542_v52 = vadd.f32 %v4541_v24, %v4540_v14 }
 0x68c   :  { %v4544_v39 = vadd.f32 %v4543_v53, %v4542_v52 }
 0x68e   :  { %4545 = vadd.xlane.f32.xlu2 %v4544_v39 }
 0x69d   :  { %v2384_v58 = vpop.xlane.xlu1 %2383 }
 0x69e   :  { %v2385_v50 = vmul.f32 %v2384_v58, %v5635_v4 }
 0x6a0   :  { %v2386_v5 = vadd.f32 1e-05, %v2385_v50 }
 0x6a2   :  { %5177 = vrsqrt.f32 %v2386_v5  ;;  %vm2393_vm1 = vweird.f32 %v2386_v5 }
 0x6a6   :  { %2403 = vperm.xlu2 %5165, %v2356_v60  }
 0x6a8   :  { %v5178_v37 = vpop.eup %5177 }
 0x6a9   :  { %v2388_v35 = vmul.f32 %v5178_v37, %v2386_v5  ;;  %vm2394_vm0 = vweird.f32 %v5178_v37 }
 0x6aa   :  { %vm2395_vm2 = vmor %vm2393_vm1, %vm2394_vm0 }
 0x6ab   :  { %v2389_v54 = vmul.f32 %v5178_v37, %v2388_v35 }
 0x6ad   :  { %v2390_v36 = vmul.f32 0.5, %v2389_v54 }
 0x6ae   :  { %4592 = vperm.xlu2 %5165, %v5153_v2  }
 0x6af   :  { %v2391_v12 = vsub.f32 1.5, %v2390_v36 }
 0x6b1   :  { %v2392_v20 = vmul.f32 %v5178_v37, %v2391_v12 }
 0x6b3   :  { %v2396_v47 = vsel %vm2395_vm2, %v5178_v37, %v2392_v20 }
 0x6b4   :  { %v2400_v13 = vmul.f32 %v2396_v47, %v6453_v9 }
 0x701   :  { %v4546_v61 = vpop.xlane.xlu2 %4545 }
 0x702   :  { %v4547_v21 = vmul.f32 %v4546_v61, %v5635_v4 }
 0x704   :  { %v6481_v41 = vsub.f32 %v4530_v3, %v4547_v21  ;;  %v6483_v44 = vsub.f32 %v4531_v15, %v4547_v21  ;;  %v6485_v6 = vsub.f32 %v4532_v46, %v4547_v21  ;;  %v6487_v7 = vsub.f32 %v4533_v32, %v4547_v21 }
 0x705   :  { %v2397_v3 = vmul.f32 %v2396_v47, %v6444_v31  ;;  %v2398_v15 = vmul.f32 %v2396_v47, %v6447_v25  ;;  %v2399_v32 = vmul.f32 %v2396_v47, %v6450_v40 }
 0x706   :  { %v4552_v27 = vmul.f32 %v6481_v41, %v6481_v41  ;;  %v4553_v28 = vmul.f32 %v6483_v44, %v6483_v44  ;;  %v4554_v30 = vmul.f32 %v6485_v6, %v6485_v6  ;;  %v4555_v23 = vmul.f32 %v6487_v7, %v6487_v7 }
 0x708   :  { %v4556_v62 = vsel %vm1329_vm14, %v4552_v27, 0.0  ;;  %v4557_v1 = vsel %vm1329_vm14, %v4553_v28, 0.0  ;;  %v4559_v22 = vsel %vm1329_vm14, %v4554_v30, 0.0  ;;  %v4561_v34 = vsel %vm1329_vm14, %v4555_v23, 0.0 }
 0x709   :  { %v4558_v42 = vadd.f32 %v4557_v1, %v4556_v62  ;;  %v2404_v0 = vpop.permute.xlu2 %2403  ;;  %v4584_v1 = vpop.permute.xlu1 %4583 }
 0x70a   :  { %v2406_v14 = vmul.f32 %v2404_v0, %v2397_v3  ;;  %v2407_v24 = vmul.f32 %v2404_v0, %v2398_v15  ;;  %v2408_v52 = vmul.f32 %v2404_v0, %v2399_v32  ;;  %v2409_v39 = vmul.f32 %v2404_v0, %v2400_v13 }
 0x70b   :  { %v4560_v17 = vadd.f32 %v4559_v22, %v4558_v42 }
 0x70d   :  { %v4562_v29 = vadd.f32 %v4561_v34, %v4560_v17 }
 0x70f   :  { %4563 = vadd.xlane.f32.xlu0 %v4562_v29 }
 0x711   :  { %v4593_v19 = vpop.permute.xlu2 %4592 }
 0x723   :  { %2412 = vperm.xlu0 %5166, %v2357_v16  }
 0x74d   :  { %4612 = vadd.xlane.f32.xlu0 %v4611_v51 }
 0x761   :  { %4659 = vperm.xlu0 %5166, %v4604_v33  }
 0x782   :  { %v4564_v56 = vpop.xlane.xlu0 %4563 }
 0x783   :  { %v4565_v57 = vmul.f32 %v4564_v56, %v5635_v4 }
 0x785   :  { %v4566_v38 = vadd.f32 1e-05, %v4565_v57 }
 0x787   :  { %5179 = vrsqrt.f32 %v4566_v38  ;;  %vm4573_vm6 = vweird.f32 %v4566_v38 }
 0x78d   :  { %v5180_v59 = vpop.eup %5179 }
 0x78e   :  { %v4568_v10 = vmul.f32 %v5180_v59, %v4566_v38  ;;  %vm4574_vm5 = vweird.f32 %v5180_v59 }
 0x78f   :  { %vm4575_vm7 = vmor %vm4573_vm6, %vm4574_vm5 }
 0x790   :  { %v4569_v46 = vmul.f32 %v5180_v59, %v4568_v10 }
 0x792   :  { %v4570_v45 = vmul.f32 0.5, %v4569_v46 }
 0x794   :  { %v4571_v53 = vsub.f32 1.5, %v4570_v45 }
 0x795   :  { %v2413_v60 = vpop.permute.xlu0 %2412 }
 0x796   :  { %v4572_v2 = vmul.f32 %v5180_v59, %v4571_v53  ;;  %v2415_v61 = vadd.f32 %v2413_v60, %v2406_v14  ;;  %v2416_v21 = vadd.f32 %v2413_v60, %v2407_v24  ;;  %v2417_v27 = vadd.f32 %v2413_v60, %v2408_v52 }
 0x797   :  { %v2418_v31 = vadd.f32 %v2413_v60, %v2409_v39 }
 0x798   :  { %v4576_v25 = vsel %vm4575_vm7, %v5180_v59, %v4572_v2  ;;  %v2419_v28 = vmax.f32 %v2415_v61, 0.0  ;;  %v2420_v40 = vmax.f32 %v2416_v21, 0.0  ;;  %v2421_v30 = vmax.f32 %v2417_v27, 0.0 }
 0x799   :  { %v4577_v9 = vmul.f32 %v4576_v25, %v6481_v41  ;;  %v4578_v23 = vmul.f32 %v4576_v25, %v6483_v44  ;;  %v4579_v62 = vmul.f32 %v4576_v25, %v6485_v6  ;;  %v2422_v42 = vmax.f32 %v2418_v31, 0.0 }
 0x79a   :  { %v4674_v22 = vsel %vm1329_vm14, %v2419_v28, 0.0  ;;  %v4675_v17 = vsel %vm1329_vm14, %v2420_v40, 0.0  ;;  %v4580_v34 = vmul.f32 %v4576_v25, %v6487_v7  ;;  %v4677_v48 = vsel %vm1329_vm14, %v2421_v30, 0.0 }
 0x79b   :  { %v4676_v29 = vadd.f32 %v4675_v17, %v4674_v22  ;;  %v4586_v16 = vmul.f32 %v4584_v1, %v4577_v9  ;;  %v4587_v11 = vmul.f32 %v4584_v1, %v4578_v23  ;;  %v4588_v49 = vmul.f32 %v4584_v1, %v4579_v62 }
 0x79c   :  { %v4589_v41 = vmul.f32 %v4584_v1, %v4580_v34  ;;  %v4679_v6 = vsel %vm1329_vm14, %v2422_v42, 0.0 }
 0x79d   :  { %v4678_v18 = vadd.f32 %v4677_v48, %v4676_v29  ;;  %v4595_v44 = vadd.f32 %v4593_v19, %v4586_v16  ;;  %v4596_v43 = vadd.f32 %v4593_v19, %v4587_v11  ;;  %v4597_v51 = vadd.f32 %v4593_v19, %v4588_v49 }
 0x79e   :  { %v4598_v33 = vadd.f32 %v4593_v19, %v4589_v41 }
 0x79f   :  { %v4680_v58 = vadd.f32 %v4679_v6, %v4678_v18  ;;  %v4599_v50 = vmax.f32 %v4595_v44, 0.0  ;;  %v4600_v5 = vmax.f32 %v4596_v43, 0.0  ;;  %v4601_v37 = vmax.f32 %v4597_v51, 0.0 }
 0x7a0   :  { %v4602_v7 = vmax.f32 %v4598_v33, 0.0 }
 0x7a1   :  { %4681 = vadd.xlane.f32.xlu1 %v4680_v58  ;;  %v4749_v35 = vsel %vm1329_vm14, %v4599_v50, 0.0  ;;  %v4750_v54 = vsel %vm1329_vm14, %v4600_v5, 0.0  ;;  %v4752_v56 = vsel %vm1329_vm14, %v4601_v37, 0.0  ;;  %v4603_v58 = vld [vmem:[%s6672_s8] sm:$0xff] }
 0x7a2   :  { %v4751_v36 = vadd.f32 %v4750_v54, %v4749_v35  ;;  %v4754_v38 = vsel %vm1329_vm14, %v4602_v7, 0.0 }
 0x7a4   :  { %v4753_v57 = vadd.f32 %v4752_v56, %v4751_v36 }
 0x7a6   :  { %v4755_v12 = vadd.f32 %v4754_v38, %v4753_v57 }
 0x7a8   :  { %4756 = vadd.xlane.f32.xlu2 %v4755_v12 }
 0x7c0   :  { %v4613_v20 = vpop.xlane.xlu0 %4612 }
 0x7c1   :  { %v4614_v59 = vmul.f32 %v4613_v20, %v5635_v4 }
 0x7c3   :  { %v6535_v47 = vsub.f32 %v6772_v55, %v4614_v59  ;;  %v6538_v10 = vsub.f32 %v6773_v8, %v4614_v59  ;;  %v6564_v2 = vsub.f32 %v6774_v63, %v4614_v59 }
 0x7c5   :  { %v4619_v13 = vmul.f32 %v6535_v47, %v6535_v47  ;;  %v4620_v55 = vmul.f32 %v6538_v10, %v6538_v10  ;;  %v4621_v1 = vmul.f32 %v6564_v2, %v6564_v2 }
 0x7c7   :  { %v4623_v27 = vsel %vm118_vm3, %v4619_v13, 0.0  ;;  %v4624_v31 = vsel %vm118_vm3, %v4620_v55, 0.0  ;;  %v4626_v49 = vsel %vm118_vm3, %v4621_v1, 0.0 }
 0x814   :  { %v4682_v0 = vpop.xlane.xlu1 %4681 }
 0x815   :  { %v4683_v46 = vmul.f32 %v4682_v0, %v5635_v4 }
 0x817   :  { %v6541_v3 = vsub.f32 %v2419_v28, %v4683_v46  ;;  %v6543_v15 = vsub.f32 %v2420_v40, %v4683_v46  ;;  %v6545_v32 = vsub.f32 %v2421_v30, %v4683_v46  ;;  %v6547_v45 = vsub.f32 %v2422_v42, %v4683_v46 }
 0x818   :  { %v6571_v28 = vsub.f32 %v6775_v26, %v4614_v59  ;;  %v4625_v42 = vadd.f32 %v4624_v31, %v4623_v27 }
 0x819   :  { %v4688_v8 = vmul.f32 %v6541_v3, %v6541_v3  ;;  %v4689_v14 = vmul.f32 %v6543_v15, %v6543_v15  ;;  %v4690_v24 = vmul.f32 %v6545_v32, %v6545_v32  ;;  %v4691_v53 = vmul.f32 %v6547_v45, %v6547_v45 }
 0x81a   :  { %v4622_v48 = vmul.f32 %v6571_v28, %v6571_v28  ;;  %v4627_v18 = vadd.f32 %v4626_v49, %v4625_v42 }
 0x81b   :  { %v4757_v52 = vpop.xlane.xlu2 %4756  ;;  %v4692_v39 = vsel %vm1329_vm14, %v4688_v8, 0.0  ;;  %v4693_v60 = vsel %vm1329_vm14, %v4689_v14, 0.0  ;;  %v4695_v25 = vsel %vm1329_vm14, %v4690_v24, 0.0  ;;  %v4697_v63 = vsel %vm1329_vm14, %v4691_v53, 0.0 }
 0x81c   :  { %v4758_v61 = vmul.f32 %v4757_v52, %v5635_v4  ;;  %v4694_v21 = vadd.f32 %v4693_v60, %v4692_v39  ;;  %v4628_v51 = vsel %vm118_vm3, %v4622_v48, 0.0  ;;  %v6606_v52 = vpop.permute.xlu0 %4659 }
 0x81d   :  { %v4629_v33 = vadd.f32 %v4628_v51, %v4627_v18 }
 0x81e   :  { %v6573_v40 = vsub.f32 %v4599_v50, %v4758_v61  ;;  %v6575_v30 = vsub.f32 %v4600_v5, %v4758_v61  ;;  %v4696_v9 = vadd.f32 %v4695_v25, %v4694_v21  ;;  %v6577_v23 = vsub.f32 %v4601_v37, %v4758_v61 }
 0x81f   :  { %v6580_v62 = vsub.f32 %v4602_v7, %v4758_v61  ;;  %v4723_v25 = vrot.slane %v6606_v52, 4 }
 0x820   :  { %v4698_v22 = vadd.f32 %v4697_v63, %v4696_v9  ;;  %v4763_v26 = vmul.f32 %v6573_v40, %v6573_v40  ;;  %v4764_v17 = vmul.f32 %v6575_v30, %v6575_v30  ;;  %v4765_v34 = vmul.f32 %v6577_v23, %v6577_v23 }
 0x821   :  { %v4766_v29 = vmul.f32 %v6580_v62, %v6580_v62 }
 0x822   :  { %4699 = vadd.xlane.f32.xlu1 %v4698_v22  ;;  %v4767_v16 = vsel %vm1329_vm14, %v4763_v26, 0.0  ;;  %v4768_v11 = vsel %vm1329_vm14, %v4764_v17, 0.0  ;;  %v4770_v41 = vsel %vm1329_vm14, %v4765_v34, 0.0 }
 0x823   :  { %v4769_v19 = vadd.f32 %v4768_v11, %v4767_v16  ;;  %v4772_v43 = vsel %vm1329_vm14, %v4766_v29, 0.0 }
 0x825   :  { %v4771_v44 = vadd.f32 %v4770_v41, %v4769_v19  ;;  %v4798_v41 = vrot.slane %v6606_v52, 6 }
 0x827   :  { %v4773_v6 = vadd.f32 %v4772_v43, %v4771_v44 }
 0x829   :  { %4774 = vadd.xlane.f32.xlu2 %v4773_v6 }
 0x82a   :  { %4630 = vadd.xlane.f32.xlu1 %v4629_v33 }
 0x841   :  { %4650 = vperm.xlu2 %5165, %v4603_v58  }
 0x895   :  { %v4700_v50 = vpop.xlane.xlu1 %4699 }
 0x896   :  { %v4701_v5 = vmul.f32 %v4700_v50, %v5635_v4 }
 0x898   :  { %v4702_v37 = vadd.f32 1e-05, %v4701_v5 }
 0x89a   :  { %5181 = vrsqrt.f32 %v4702_v37  ;;  %vm4709_vm8 = vweird.f32 %v4702_v37 }
 0x89c   :  { %v4775_v7 = vpop.xlane.xlu2 %4774 }
 0x89d   :  { %v4776_v35 = vmul.f32 %v4775_v7, %v5635_v4  ;;  %v4631_v54 = vpop.xlane.xlu1 %4630 }
 0x89e   :  { %v4632_v36 = vmul.f32 %v4631_v54, %v5635_v4 }
 0x89f   :  { %v4777_v56 = vadd.f32 1e-05, %v4776_v35 }
 0x8a0   :  { %v5182_v57 = vpop.eup %5181  ;;  %v4633_v38 = vadd.f32 1e-05, %v4632_v36 }
 0x8a1   :  { %v4704_v12 = vmul.f32 %v5182_v57, %v4702_v37  ;;  %5183 = vrsqrt.f32 %v4777_v56  ;;  %vm4710_vm3 = vweird.f32 %v5182_v57  ;;  %vm4784_vm13 = vweird.f32 %v4777_v56 }
 0x8a2   :  { %5185 = vrsqrt.f32 %v4633_v38  ;;  %vm4711_vm9 = vmor %vm4709_vm8, %vm4710_vm3  ;;  %vm4640_vm4 = vweird.f32 %v4633_v38 }
 0x8a3   :  { %v4705_v20 = vmul.f32 %v5182_v57, %v4704_v12 }
 0x8a4   :  { %v4651_v8 = vpop.permute.xlu2 %4650 }
 0x8a5   :  { %v4706_v59 = vmul.f32 0.5, %v4705_v20  ;;  %v4717_v60 = vrot.slane %v4651_v8, 4  ;;  %v4792_v43 = vrot.slane %v4651_v8, 6 }
 0x8a7   :  { %v5184_v0 = vpop.eup %5183  ;;  %v4707_v46 = vsub.f32 1.5, %v4706_v59 }
 0x8a8   :  { %v5186_v13 = vpop.eup %5185  ;;  %v4779_v55 = vmul.f32 %v5184_v0, %v4777_v56  ;;  %vm4785_vm12 = vweird.f32 %v5184_v0 }
 0x8a9   :  { %v4708_v14 = vmul.f32 %v5182_v57, %v4707_v46  ;;  %v4635_v24 = vmul.f32 %v5186_v13, %v4633_v38  ;;  %vm4641_vm14 = vweird.f32 %v5186_v13  ;;  %vm4786_vm15 = vmor %vm4784_vm13, %vm4785_vm12 }
 0x8aa   :  { %v4780_v4 = vmul.f32 %v5184_v0, %v4779_v55  ;;  %vm4642_vm10 = vmor %vm4640_vm4, %vm4641_vm14 }
 0x8ab   :  { %v4712_v53 = vsel %vm4711_vm9, %v5182_v57, %v4708_v14  ;;  %v4636_v39 = vmul.f32 %v5186_v13, %v4635_v24 }
 0x8ac   :  { %v4713_v61 = vmul.f32 %v4712_v53, %v6541_v3  ;;  %v4714_v21 = vmul.f32 %v4712_v53, %v6543_v15  ;;  %v4715_v27 = vmul.f32 %v4712_v53, %v6545_v32  ;;  %v4716_v31 = vmul.f32 %v4712_v53, %v6547_v45 }
 0x8ad   :  { %v4781_v9 = vmul.f32 0.5, %v4780_v4  ;;  %v4637_v63 = vmul.f32 0.5, %v4636_v39 }
 0x8ae   :  { %v4719_v1 = vmul.f32 %v4717_v60, %v4713_v61  ;;  %v4720_v42 = vmul.f32 %v4717_v60, %v4714_v21  ;;  %v4721_v22 = vmul.f32 %v4717_v60, %v4715_v27  ;;  %v4722_v26 = vmul.f32 %v4717_v60, %v4716_v31 }
 0x8af   :  { %v4782_v17 = vsub.f32 1.5, %v4781_v9  ;;  %v4638_v34 = vsub.f32 1.5, %v4637_v63 }
 0x8b0   :  { %v4725_v3 = vadd.f32 %v4723_v25, %v4719_v1  ;;  %v4726_v29 = vadd.f32 %v4723_v25, %v4720_v42  ;;  %v4727_v15 = vadd.f32 %v4723_v25, %v4721_v22  ;;  %v4728_v16 = vadd.f32 %v4723_v25, %v4722_v26 }
 0x8b1   :  { %v4783_v32 = vmul.f32 %v5184_v0, %v4782_v17  ;;  %v4639_v45 = vmul.f32 %v5186_v13, %v4638_v34 }
 0x8b2   :  { %v4729_v11 = vmax.f32 %v4725_v3, 0.0  ;;  %v4730_v19 = vmax.f32 %v4726_v29, 0.0  ;;  %v4731_v48 = vmax.f32 %v4727_v15, 0.0  ;;  %v4732_v49 = vmax.f32 %v4728_v16, 0.0 }
 0x8b3   :  { %v4787_v18 = vsel %vm4786_vm15, %v5184_v0, %v4783_v32  ;;  %v4643_v44 = vsel %vm4642_vm10, %v5186_v13, %v4639_v45 }
 0x8b4   :  { %v4788_v6 = vmul.f32 %v4787_v18, %v6573_v40  ;;  %v4789_v51 = vmul.f32 %v4787_v18, %v6575_v30  ;;  %v4790_v33 = vmul.f32 %v4787_v18, %v6577_v23  ;;  %v4791_v58 = vmul.f32 %v4787_v18, %v6580_v62 }
 0x8b5   :  { %v4644_v50 = vmul.f32 %v4643_v44, %v6535_v47  ;;  %v4645_v5 = vmul.f32 %v4643_v44, %v6538_v10  ;;  %v4646_v37 = vmul.f32 %v4643_v44, %v6564_v2  ;;  %v4647_v7 = vmul.f32 %v4643_v44, %v6571_v28 }
 0x8b6   :  { %v4737_v35 = vrot.slane %v4729_v11, 4  ;;  %v4738_v54 = vrot.slane %v4730_v19, 4  ;;  %v4739_v36 = vrot.slane %v4731_v48, 4  ;;  %v4740_v56 = vrot.slane %v4732_v49, 4 }
 0x8b7   :  { %v4653_v57 = vmul.f32 %v4651_v8, %v4644_v50  ;;  %v4654_v40 = vmul.f32 %v4651_v8, %v4645_v5  ;;  %v4655_v38 = vmul.f32 %v4651_v8, %v4646_v37  ;;  %v4656_v30 = vmul.f32 %v4651_v8, %v4647_v7 }
 0x8b8   :  { %4745 = vst [vmem:[%s6673_s10] sm:$0x30] %v4737_v35  ;;  %v4794_v23 = vmul.f32 %v4792_v43, %v4788_v6  ;;  %v4795_v47 = vmul.f32 %v4792_v43, %v4789_v51  ;;  %v4796_v62 = vmul.f32 %v4792_v43, %v4790_v33  ;;  %v4797_v10 = vmul.f32 %v4792_v43, %v4791_v58 }
 0x8b9   :  { %v4662_v2 = vadd.f32 %v6606_v52, %v4653_v57  ;;  %v4663_v28 = vadd.f32 %v6606_v52, %v4654_v40  ;;  %v4664_v12 = vadd.f32 %v6606_v52, %v4655_v38  ;;  %v4665_v20 = vadd.f32 %v6606_v52, %v4656_v30  ;;  %4746 = vst [vmem:[%s6673_s10 + $0x8] sm:$0x30] %v4738_v54 }
 0x8ba   :  { %4747 = vst [vmem:[%s6673_s10 + $0x10] sm:$0x30] %v4739_v36  ;;  %v4800_v59 = vadd.f32 %v4798_v41, %v4794_v23  ;;  %v4801_v0 = vadd.f32 %v4798_v41, %v4795_v47  ;;  %v4802_v46 = vadd.f32 %v4798_v41, %v4796_v62  ;;  %v4803_v13 = vadd.f32 %v4798_v41, %v4797_v10 }
 0x8bb   :  { %v4666_v55 = vmax.f32 %v4662_v2, 0.0  ;;  %v4667_v8 = vmax.f32 %v4663_v28, 0.0  ;;  %v4668_v14 = vmax.f32 %v4664_v12, 0.0  ;;  %v4669_v24 = vmax.f32 %v4665_v20, 0.0  ;;  %4748 = vst [vmem:[%s6673_s10 + $0x18] sm:$0x30] %v4740_v56 }
 0x8bc   :  { %v4804_v52 = vmax.f32 %v4800_v59, 0.0  ;;  %v4805_v4 = vmax.f32 %v4801_v0, 0.0  ;;  %v4806_v53 = vmax.f32 %v4802_v46, 0.0  ;;  %v4807_v39 = vmax.f32 %v4803_v13, 0.0 }
 0x8bd   :  { %4670 = vst [vmem:[%s6673_s10] sm:$0xf] %v4666_v55 }
 0x8be   :  { %4671 = vst [vmem:[%s6673_s10 + $0x8] sm:$0xf] %v4667_v8  ;;  %v4812_v60 = vrot.slane %v4804_v52, 2  ;;  %v4813_v61 = vrot.slane %v4805_v4, 2  ;;  %v4814_v21 = vrot.slane %v4806_v53, 2  ;;  %v4815_v27 = vrot.slane %v4807_v39, 2 }
 0x8bf   :  { %4672 = vst [vmem:[%s6673_s10 + $0x10] sm:$0xf] %v4668_v14 }
 0x8c0   :  { %4673 = vst [vmem:[%s6673_s10 + $0x18] sm:$0xf] %v4669_v24 }
 0x8c1   :  { %4820 = vst [vmem:[%s6673_s10] sm:$0xc0] %v4812_v60 }
 0x8c2   :  { %4821 = vst [vmem:[%s6673_s10 + $0x8] sm:$0xc0] %v4813_v61 }
 0x8c3   :  { %4822 = vst [vmem:[%s6673_s10 + $0x10] sm:$0xc0] %v4814_v21 }
 0x8c4   :  { %4823 = vst [vmem:[%s6673_s10 + $0x18] sm:$0xc0] %v4815_v27 }

</bundles_post_ra>
